<compile_context>
chip_gen: v6e
topology: v6e:2x2x1
jax: 0.10.0
libtpu: 0.0.40
codegen_flags: <defaults>
</compile_context>

<pallas_src>
import functools

import jax
import jax.numpy as jnp
from jax import lax
from jax.experimental import pallas as pl
from jax.experimental.pallas import tpu as pltpu

_PAD = 8  # halo width in the padded VMEM scratch (sublane-aligned interior)


# ----------------------------- kernel ---------------------------------------

def _bottleneck_kernel(x_ref, w1_ref, b1_ref, w2_ref, b2_ref,
                       w3_ref, wd_ref, b3d_ref, o_ref, h1p_ref,
                       *, H, W, Cin, Cb, Cout):
    # x_ref: (1, H, W, Cin).  All conv weights already have the frozen-BN
    # scale folded into their output channels; b*_ref are the folded biases.
    x = x_ref[0].reshape(H * W, Cin)

    # --- conv1 (1x1) + bn1 + relu -------------------------------------------
    h1 = jnp.dot(x, w1_ref[...], preferred_element_type=jnp.float32)
    h1 = jnp.maximum(h1 + b1_ref[...], 0.0)

    # --- conv2 (3x3, pad=1) + bn2 + relu --------------------------------------
    # Stage h1 into a zero-padded VMEM scratch (1-row / 1-col halo; the left
    # halo sits at a sublane-aligned offset), then the 3x3 conv is 9 shifted
    # matmuls that never leave VMEM.
    h1p_ref[...] = jnp.zeros_like(h1p_ref)          # re-zero: parallel-safe
    h1p_ref[1:H + 1, _PAD:_PAD + W, :] = h1.reshape(H, W, Cb)
    h1p = h1p_ref[...]
    acc = jnp.zeros((H * W, Cb), jnp.float32)
    for dy in range(3):                              # static unroll
        for dx in range(3):
            c0 = _PAD - 1 + dx
            win = h1p[dy:dy + H, c0:c0 + W, :].reshape(H * W, Cb)
            acc = acc + jnp.dot(win, w2_ref[dy, dx],
                                preferred_element_type=jnp.float32)
    h2 = jnp.maximum(acc + b2_ref[...], 0.0)

    # --- conv3 (1x1)+bn3 and downsample (1x1)+bnd, residual add, relu --------
    # TODO(synk): could be a single fat-K matmul on [h2 | x] with stacked
    #   weights; kept as two MXU calls into one accumulator for robustness.
    out = jnp.dot(h2, w3_ref[...], preferred_element_type=jnp.float32)
    out = out + jnp.dot(x, wd_ref[...], preferred_element_type=jnp.float32)
    out = jnp.maximum(out + b3d_ref[...], 0.0)
    o_ref[...] = out.reshape(1, H, W, Cout).astype(o_ref.dtype)


# ----------------------------- wrapper ---------------------------------------

def _fold_bn(gamma, beta, mean, var):
    # FrozenBatchNorm2d (maskrcnn-benchmark): no eps.
    scale = gamma * lax.rsqrt(var)
    bias = beta - mean * scale
    return scale.astype(jnp.float32), bias.astype(jnp.float32)


def bottleneck_forward(x_nchw, params):
    """x_nchw: (N, Cin, H, W) f32 -> (N, Cout, H, W) f32."""
    x = jnp.transpose(x_nchw, (0, 2, 3, 1)).astype(jnp.float32)   # NCHW -> NHWC
    N, H, W, Cin = x.shape
    Cb = params["w1"].shape[1]
    Cout = params["w3"].shape[1]

    s1, b1 = _fold_bn(*params["bn1"])
    s2, b2 = _fold_bn(*params["bn2"])
    s3, b3 = _fold_bn(*params["bn3"])
    sd, bd = _fold_bn(*params["bnd"])

    # Fold BN scales into weight output-channels; merge conv3/downsample bias.
    w1f = params["w1"] * s1[None, :]
    w2f = params["w2"] * s2[None, None, None, :]
    w3f = params["w3"] * s3[None, :]
    wdf = params["wd"] * sd[None, :]
    b1r = b1[None, :]
    b2r = b2[None, :]
    b3dr = (b3 + bd)[None, :]

    kernel = functools.partial(_bottleneck_kernel,
                               H=H, W=W, Cin=Cin, Cb=Cb, Cout=Cout)
    out = pl.pallas_call(
        kernel,
        out_shape=jax.ShapeDtypeStruct((N, H, W, Cout), jnp.float32),
        grid_spec=pltpu.PrefetchScalarGridSpec(
            num_scalar_prefetch=0,
            grid=(N,),                                   # exact grid, no tail
            in_specs=[
                pl.BlockSpec((1, H, W, Cin), lambda n: (n, 0, 0, 0)),
                pl.BlockSpec((Cin, Cb), lambda n: (0, 0)),
                pl.BlockSpec((1, Cb), lambda n: (0, 0)),
                pl.BlockSpec((3, 3, Cb, Cb), lambda n: (0, 0, 0, 0)),
                pl.BlockSpec((1, Cb), lambda n: (0, 0)),
                pl.BlockSpec((Cb, Cout), lambda n: (0, 0)),
                pl.BlockSpec((Cin, Cout), lambda n: (0, 0)),
                pl.BlockSpec((1, Cout), lambda n: (0, 0)),
            ],
            out_specs=pl.BlockSpec((1, H, W, Cout), lambda n: (n, 0, 0, 0)),
            scratch_shapes=[
                pltpu.VMEM((H + 2, W + 2 * _PAD, Cb), jnp.float32)],
        ),
        compiler_params=pltpu.CompilerParams(
            dimension_semantics=("parallel",)),
    )(x, w1f, b1r, w2f, b2r, w3f, wdf, b3dr)
    return jnp.transpose(out, (0, 3, 1, 2))              # NHWC -> NCHW


# ----------------------------- reference -------------------------------------

def reference_forward(x_nchw, params):
    x = jnp.transpose(x_nchw, (0, 2, 3, 1))
    dn = ("NHWC", "HWIO", "NHWC")

    def bn(y, g, b, m, v):
        scale = g * lax.rsqrt(v)
        bias = b - m * scale
        return y * scale + bias

    h = lax.conv_general_dilated(x, params["w1"][None, None], (1, 1), "VALID",
                                 dimension_numbers=dn)
    h = jax.nn.relu(bn(h, *params["bn1"]))
    h = lax.conv_general_dilated(h, params["w2"], (1, 1), "SAME",
                                 dimension_numbers=dn)
    h = jax.nn.relu(bn(h, *params["bn2"]))
    h = lax.conv_general_dilated(h, params["w3"][None, None], (1, 1), "VALID",
                                 dimension_numbers=dn)
    h = bn(h, *params["bn3"])
    r = lax.conv_general_dilated(x, params["wd"][None, None], (1, 1), "VALID",
                                 dimension_numbers=dn)
    r = bn(r, *params["bnd"])
    out = jax.nn.relu(h + r)
    return jnp.transpose(out, (0, 3, 1, 2))


# ----------------------------- main -------------------------------------------

if __name__ == "__main__":
    # Small, forward-consistent shapes: stride=1, num_groups=1,
    # in_channels != out_channels so the downsample branch is active.
    # Cout=128 keeps the kernel output lane-dense; M = H*W = 256 per image.
    N, Cin, Cb, Cout, H, W = 2, 64, 32, 128, 16, 16

    key = jax.random.PRNGKey(0)
    ks = jax.random.split(key, 12)

    def bn_params(k, c):
        k1, k2, k3, k4 = jax.random.split(k, 4)
        gamma = jax.random.uniform(k1, (c,), jnp.float32, 0.5, 1.5)
        beta = jax.random.normal(k2, (c,), jnp.float32) * 0.1
        mean = jax.random.normal(k3, (c,), jnp.float32) * 0.1
        var = jax.random.uniform(k4, (c,), jnp.float32, 0.5, 1.5)
        return (gamma, beta, mean, var)

    params = {
        # 1x1 convs stored as (Cin, Cout); 3x3 conv stored as HWIO (3,3,Cb,Cb)
        "w1": jax.random.normal(ks[0], (Cin, Cb), jnp.float32) * 0.1,
        "w2": jax.random.normal(ks[1], (3, 3, Cb, Cb), jnp.float32) * 0.1,
        "w3": jax.random.normal(ks[2], (Cb, Cout), jnp.float32) * 0.1,
        "wd": jax.random.normal(ks[3], (Cin, Cout), jnp.float32) * 0.1,
        "bn1": bn_params(ks[4], Cb),
        "bn2": bn_params(ks[5], Cb),
        "bn3": bn_params(ks[6], Cout),
        "bnd": bn_params(ks[7], Cout),
    }

    x = jax.random.normal(ks[8], (N, Cin, H, W), jnp.float32)

    out = jax.block_until_ready(bottleneck_forward(x, params))
    ref = jax.block_until_ready(reference_forward(x, params))

    assert out.shape == (N, Cout, H, W), out.shape
    assert jnp.allclose(out, ref, atol=1e-3, rtol=1e-3), \
        float(jnp.max(jnp.abs(out - ref)))

    print("KERNEL_OK")
</pallas_src>

<mosaic_0001>
module attributes {stable_mosaic.version = 11 : i64} {
  func.func @_bottleneck_kernel(%arg0: i32, %arg1: memref<1x16x16x64xf32, #tpu.memory_space<vmem>>, %arg2: memref<64x32xf32, #tpu.memory_space<vmem>>, %arg3: memref<1x32xf32, #tpu.memory_space<vmem>>, %arg4: memref<3x3x32x32xf32, #tpu.memory_space<vmem>>, %arg5: memref<1x32xf32, #tpu.memory_space<vmem>>, %arg6: memref<32x128xf32, #tpu.memory_space<vmem>>, %arg7: memref<64x128xf32, #tpu.memory_space<vmem>>, %arg8: memref<1x128xf32, #tpu.memory_space<vmem>>, %arg9: memref<1x16x16x128xf32, #tpu.memory_space<vmem>>, %arg10: memref<18x32x32xf32, #tpu.memory_space<vmem>>) attributes {dimension_semantics = [#tpu.dimension_semantics<parallel>], iteration_bounds = array<i64: 2>, scalar_prefetch = 0 : i64, scratch_operands = 1 : i64, tpu.core_type = #tpu.core_type<tc>, window_params = [{transform_indices = @transform_0, window_bounds = array<i64: 1, 16, 16, 64>}, {pipeline_mode = #tpu.pipeline_mode<synchronous>, transform_indices = @transform_1, window_bounds = array<i64: 64, 32>}, {pipeline_mode = #tpu.pipeline_mode<synchronous>, transform_indices = @transform_2, window_bounds = array<i64: 1, 32>}, {pipeline_mode = #tpu.pipeline_mode<synchronous>, transform_indices = @transform_3, window_bounds = array<i64: 3, 3, 32, 32>}, {pipeline_mode = #tpu.pipeline_mode<synchronous>, transform_indices = @transform_4, window_bounds = array<i64: 1, 32>}, {pipeline_mode = #tpu.pipeline_mode<synchronous>, transform_indices = @transform_5, window_bounds = array<i64: 32, 128>}, {pipeline_mode = #tpu.pipeline_mode<synchronous>, transform_indices = @transform_6, window_bounds = array<i64: 64, 128>}, {pipeline_mode = #tpu.pipeline_mode<synchronous>, transform_indices = @transform_7, window_bounds = array<i64: 1, 128>}, {transform_indices = @transform_8, window_bounds = array<i64: 1, 16, 16, 128>}]} {
    %c0 = arith.constant 0 : index
    %c0_0 = arith.constant 0 : index
    %c0_1 = arith.constant 0 : index
    %c0_2 = arith.constant 0 : index
    %0 = vector.load %arg1[%c0, %c0_0, %c0_1, %c0_2] : memref<1x16x16x64xf32, #tpu.memory_space<vmem>>, vector<1x16x16x64xf32>
    %1 = vector.shape_cast %0 : vector<1x16x16x64xf32> to vector<16x16x64xf32>
    %2 = vector.shape_cast %1 : vector<16x16x64xf32> to vector<256x64xf32>
    %c0_3 = arith.constant 0 : index
    %c0_4 = arith.constant 0 : index
    %3 = vector.load %arg2[%c0_3, %c0_4] : memref<64x32xf32, #tpu.memory_space<vmem>>, vector<64x32xf32>
    %cst = arith.constant dense<0.000000e+00> : vector<256x32xf32>
    %4 = tpu.matmul %2, %3, %cst {dimension_numbers = #tpu.dot_dimension_numbers<[1], [0], [0], [1], [0, 0, 1, 1], [], []>} : vector<256x64xf32>, vector<64x32xf32>, vector<256x32xf32> -> vector<256x32xf32>
    %c0_5 = arith.constant 0 : index
    %c0_6 = arith.constant 0 : index
    %5 = vector.load %arg3[%c0_5, %c0_6] : memref<1x32xf32, #tpu.memory_space<vmem>>, vector<1x32xf32>
    %6 = vector.broadcast %5 : vector<1x32xf32> to vector<256x32xf32>
    %7 = arith.addf %4, %6 : vector<256x32xf32>
    %cst_7 = arith.constant 0.000000e+00 : f32
    %8 = vector.broadcast %cst_7 : f32 to vector<256x32xf32>
    %9 = arith.maximumf %7, %8 : vector<256x32xf32>
    %cst_8 = arith.constant 0.000000e+00 : f32
    %10 = vector.broadcast %cst_8 : f32 to vector<18x32x32xf32>
    %c0_9 = arith.constant 0 : index
    %c0_10 = arith.constant 0 : index
    %c0_11 = arith.constant 0 : index
    %11 = vector.load %arg10[%c0_9, %c0_10, %c0_11] : memref<18x32x32xf32, #tpu.memory_space<vmem>>, vector<18x32x32xf32>
    tpu.vector_store %arg10[%c0_9, %c0_10, %c0_11], %10 {strides = array<i32>} : memref<18x32x32xf32, #tpu.memory_space<vmem>>, vector<18x32x32xf32>,
    %12 = vector.shape_cast %9 : vector<256x32xf32> to vector<16x16x32xf32>
    %c1 = arith.constant 1 : index
    %c8 = arith.constant 8 : index
    %c0_12 = arith.constant 0 : index
    %13 = vector.load %arg10[%c1, %c8, %c0_12] : memref<18x32x32xf32, #tpu.memory_space<vmem>>, vector<16x16x32xf32>
    tpu.vector_store %arg10[%c1, %c8, %c0_12], %12 {strides = array<i32>} : memref<18x32x32xf32, #tpu.memory_space<vmem>>, vector<16x16x32xf32>,
    %c0_13 = arith.constant 0 : index
    %c0_14 = arith.constant 0 : index
    %c0_15 = arith.constant 0 : index
    %14 = vector.load %arg10[%c0_13, %c0_14, %c0_15] : memref<18x32x32xf32, #tpu.memory_space<vmem>>, vector<18x32x32xf32>
    %cst_16 = arith.constant 0.000000e+00 : f32
    %15 = vector.broadcast %cst_16 : f32 to vector<256x32xf32>
    %16 = vector.extract_strided_slice %14 {offsets = [0, 7, 0], sizes = [16, 16, 32], strides = [1, 1, 1]} : vector<18x32x32xf32> to vector<16x16x32xf32>
    %17 = vector.shape_cast %16 : vector<16x16x32xf32> to vector<256x32xf32>
    %c0_17 = arith.constant 0 : index
    %c0_18 = arith.constant 0 : index
    %c0_19 = arith.constant 0 : index
    %c0_20 = arith.constant 0 : index
    %18 = vector.load %arg4[%c0_17, %c0_18, %c0_19, %c0_20] : memref<3x3x32x32xf32, #tpu.memory_space<vmem>>, vector<1x1x32x32xf32>
    %19 = vector.shape_cast %18 : vector<1x1x32x32xf32> to vector<32x32xf32>
    %cst_21 = arith.constant dense<0.000000e+00> : vector<256x32xf32>
    %20 = tpu.matmul %17, %19, %cst_21 {dimension_numbers = #tpu.dot_dimension_numbers<[1], [0], [0], [1], [0, 0, 1, 1], [], []>} : vector<256x32xf32>, vector<32x32xf32>, vector<256x32xf32> -> vector<256x32xf32>
    %21 = arith.addf %15, %20 : vector<256x32xf32>
    %22 = vector.extract_strided_slice %14 {offsets = [0, 8, 0], sizes = [16, 16, 32], strides = [1, 1, 1]} : vector<18x32x32xf32> to vector<16x16x32xf32>
    %23 = vector.shape_cast %22 : vector<16x16x32xf32> to vector<256x32xf32>
    %c0_22 = arith.constant 0 : index
    %c1_23 = arith.constant 1 : index
    %c0_24 = arith.constant 0 : index
    %c0_25 = arith.constant 0 : index
    %24 = vector.load %arg4[%c0_22, %c1_23, %c0_24, %c0_25] : memref<3x3x32x32xf32, #tpu.memory_space<vmem>>, vector<1x1x32x32xf32>
    %25 = vector.shape_cast %24 : vector<1x1x32x32xf32> to vector<32x32xf32>
    %cst_26 = arith.constant dense<0.000000e+00> : vector<256x32xf32>
    %26 = tpu.matmul %23, %25, %cst_26 {dimension_numbers = #tpu.dot_dimension_numbers<[1], [0], [0], [1], [0, 0, 1, 1], [], []>} : vector<256x32xf32>, vector<32x32xf32>, vector<256x32xf32> -> vector<256x32xf32>
    %27 = arith.addf %21, %26 : vector<256x32xf32>
    %28 = vector.extract_strided_slice %14 {offsets = [0, 9, 0], sizes = [16, 16, 32], strides = [1, 1, 1]} : vector<18x32x32xf32> to vector<16x16x32xf32>
    %29 = vector.shape_cast %28 : vector<16x16x32xf32> to vector<256x32xf32>
    %c0_27 = arith.constant 0 : index
    %c2 = arith.constant 2 : index
    %c0_28 = arith.constant 0 : index
    %c0_29 = arith.constant 0 : index
    %30 = vector.load %arg4[%c0_27, %c2, %c0_28, %c0_29] : memref<3x3x32x32xf32, #tpu.memory_space<vmem>>, vector<1x1x32x32xf32>
    %31 = vector.shape_cast %30 : vector<1x1x32x32xf32> to vector<32x32xf32>
    %cst_30 = arith.constant dense<0.000000e+00> : vector<256x32xf32>
    %32 = tpu.matmul %29, %31, %cst_30 {dimension_numbers = #tpu.dot_dimension_numbers<[1], [0], [0], [1], [0, 0, 1, 1], [], []>} : vector<256x32xf32>, vector<32x32xf32>, vector<256x32xf32> -> vector<256x32xf32>
    %33 = arith.addf %27, %32 : vector<256x32xf32>
    %34 = vector.extract_strided_slice %14 {offsets = [1, 7, 0], sizes = [16, 16, 32], strides = [1, 1, 1]} : vector<18x32x32xf32> to vector<16x16x32xf32>
    %35 = vector.shape_cast %34 : vector<16x16x32xf32> to vector<256x32xf32>
    %c1_31 = arith.constant 1 : index
    %c0_32 = arith.constant 0 : index
    %c0_33 = arith.constant 0 : index
    %c0_34 = arith.constant 0 : index
    %36 = vector.load %arg4[%c1_31, %c0_32, %c0_33, %c0_34] : memref<3x3x32x32xf32, #tpu.memory_space<vmem>>, vector<1x1x32x32xf32>
    %37 = vector.shape_cast %36 : vector<1x1x32x32xf32> to vector<32x32xf32>
    %cst_35 = arith.constant dense<0.000000e+00> : vector<256x32xf32>
    %38 = tpu.matmul %35, %37, %cst_35 {dimension_numbers = #tpu.dot_dimension_numbers<[1], [0], [0], [1], [0, 0, 1, 1], [], []>} : vector<256x32xf32>, vector<32x32xf32>, vector<256x32xf32> -> vector<256x32xf32>
    %39 = arith.addf %33, %38 : vector<256x32xf32>
    %40 = vector.extract_strided_slice %14 {offsets = [1, 8, 0], sizes = [16, 16, 32], strides = [1, 1, 1]} : vector<18x32x32xf32> to vector<16x16x32xf32>
    %41 = vector.shape_cast %40 : vector<16x16x32xf32> to vector<256x32xf32>
    %c1_36 = arith.constant 1 : index
    %c1_37 = arith.constant 1 : index
    %c0_38 = arith.constant 0 : index
    %c0_39 = arith.constant 0 : index
    %42 = vector.load %arg4[%c1_36, %c1_37, %c0_38, %c0_39] : memref<3x3x32x32xf32, #tpu.memory_space<vmem>>, vector<1x1x32x32xf32>
    %43 = vector.shape_cast %42 : vector<1x1x32x32xf32> to vector<32x32xf32>
    %cst_40 = arith.constant dense<0.000000e+00> : vector<256x32xf32>
    %44 = tpu.matmul %41, %43, %cst_40 {dimension_numbers = #tpu.dot_dimension_numbers<[1], [0], [0], [1], [0, 0, 1, 1], [], []>} : vector<256x32xf32>, vector<32x32xf32>, vector<256x32xf32> -> vector<256x32xf32>
    %45 = arith.addf %39, %44 : vector<256x32xf32>
    %46 = vector.extract_strided_slice %14 {offsets = [1, 9, 0], sizes = [16, 16, 32], strides = [1, 1, 1]} : vector<18x32x32xf32> to vector<16x16x32xf32>
    %47 = vector.shape_cast %46 : vector<16x16x32xf32> to vector<256x32xf32>
    %c1_41 = arith.constant 1 : index
    %c2_42 = arith.constant 2 : index
    %c0_43 = arith.constant 0 : index
    %c0_44 = arith.constant 0 : index
    %48 = vector.load %arg4[%c1_41, %c2_42, %c0_43, %c0_44] : memref<3x3x32x32xf32, #tpu.memory_space<vmem>>, vector<1x1x32x32xf32>
    %49 = vector.shape_cast %48 : vector<1x1x32x32xf32> to vector<32x32xf32>
    %cst_45 = arith.constant dense<0.000000e+00> : vector<256x32xf32>
    %50 = tpu.matmul %47, %49, %cst_45 {dimension_numbers = #tpu.dot_dimension_numbers<[1], [0], [0], [1], [0, 0, 1, 1], [], []>} : vector<256x32xf32>, vector<32x32xf32>, vector<256x32xf32> -> vector<256x32xf32>
    %51 = arith.addf %45, %50 : vector<256x32xf32>
    %52 = vector.extract_strided_slice %14 {offsets = [2, 7, 0], sizes = [16, 16, 32], strides = [1, 1, 1]} : vector<18x32x32xf32> to vector<16x16x32xf32>
    %53 = vector.shape_cast %52 : vector<16x16x32xf32> to vector<256x32xf32>
    %c2_46 = arith.constant 2 : index
    %c0_47 = arith.constant 0 : index
    %c0_48 = arith.constant 0 : index
    %c0_49 = arith.constant 0 : index
    %54 = vector.load %arg4[%c2_46, %c0_47, %c0_48, %c0_49] : memref<3x3x32x32xf32, #tpu.memory_space<vmem>>, vector<1x1x32x32xf32>
    %55 = vector.shape_cast %54 : vector<1x1x32x32xf32> to vector<32x32xf32>
    %cst_50 = arith.constant dense<0.000000e+00> : vector<256x32xf32>
    %56 = tpu.matmul %53, %55, %cst_50 {dimension_numbers = #tpu.dot_dimension_numbers<[1], [0], [0], [1], [0, 0, 1, 1], [], []>} : vector<256x32xf32>, vector<32x32xf32>, vector<256x32xf32> -> vector<256x32xf32>
    %57 = arith.addf %51, %56 : vector<256x32xf32>
    %58 = vector.extract_strided_slice %14 {offsets = [2, 8, 0], sizes = [16, 16, 32], strides = [1, 1, 1]} : vector<18x32x32xf32> to vector<16x16x32xf32>
    %59 = vector.shape_cast %58 : vector<16x16x32xf32> to vector<256x32xf32>
    %c2_51 = arith.constant 2 : index
    %c1_52 = arith.constant 1 : index
    %c0_53 = arith.constant 0 : index
    %c0_54 = arith.constant 0 : index
    %60 = vector.load %arg4[%c2_51, %c1_52, %c0_53, %c0_54] : memref<3x3x32x32xf32, #tpu.memory_space<vmem>>, vector<1x1x32x32xf32>
    %61 = vector.shape_cast %60 : vector<1x1x32x32xf32> to vector<32x32xf32>
    %cst_55 = arith.constant dense<0.000000e+00> : vector<256x32xf32>
    %62 = tpu.matmul %59, %61, %cst_55 {dimension_numbers = #tpu.dot_dimension_numbers<[1], [0], [0], [1], [0, 0, 1, 1], [], []>} : vector<256x32xf32>, vector<32x32xf32>, vector<256x32xf32> -> vector<256x32xf32>
    %63 = arith.addf %57, %62 : vector<256x32xf32>
    %64 = vector.extract_strided_slice %14 {offsets = [2, 9, 0], sizes = [16, 16, 32], strides = [1, 1, 1]} : vector<18x32x32xf32> to vector<16x16x32xf32>
    %65 = vector.shape_cast %64 : vector<16x16x32xf32> to vector<256x32xf32>
    %c2_56 = arith.constant 2 : index
    %c2_57 = arith.constant 2 : index
    %c0_58 = arith.constant 0 : index
    %c0_59 = arith.constant 0 : index
    %66 = vector.load %arg4[%c2_56, %c2_57, %c0_58, %c0_59] : memref<3x3x32x32xf32, #tpu.memory_space<vmem>>, vector<1x1x32x32xf32>
    %67 = vector.shape_cast %66 : vector<1x1x32x32xf32> to vector<32x32xf32>
    %cst_60 = arith.constant dense<0.000000e+00> : vector<256x32xf32>
    %68 = tpu.matmul %65, %67, %cst_60 {dimension_numbers = #tpu.dot_dimension_numbers<[1], [0], [0], [1], [0, 0, 1, 1], [], []>} : vector<256x32xf32>, vector<32x32xf32>, vector<256x32xf32> -> vector<256x32xf32>
    %69 = arith.addf %63, %68 : vector<256x32xf32>
    %c0_61 = arith.constant 0 : index
    %c0_62 = arith.constant 0 : index
    %70 = vector.load %arg5[%c0_61, %c0_62] : memref<1x32xf32, #tpu.memory_space<vmem>>, vector<1x32xf32>
    %71 = vector.broadcast %70 : vector<1x32xf32> to vector<256x32xf32>
    %72 = arith.addf %69, %71 : vector<256x32xf32>
    %cst_63 = arith.constant 0.000000e+00 : f32
    %73 = vector.broadcast %cst_63 : f32 to vector<256x32xf32>
    %74 = arith.maximumf %72, %73 : vector<256x32xf32>
    %c0_64 = arith.constant 0 : index
    %c0_65 = arith.constant 0 : index
    %75 = vector.load %arg6[%c0_64, %c0_65] : memref<32x128xf32, #tpu.memory_space<vmem>>, vector<32x128xf32>
    %cst_66 = arith.constant dense<0.000000e+00> : vector<256x128xf32>
    %76 = tpu.matmul %74, %75, %cst_66 {dimension_numbers = #tpu.dot_dimension_numbers<[1], [0], [0], [1], [0, 0, 1, 1], [], []>} : vector<256x32xf32>, vector<32x128xf32>, vector<256x128xf32> -> vector<256x128xf32>
    %c0_67 = arith.constant 0 : index
    %c0_68 = arith.constant 0 : index
    %77 = vector.load %arg7[%c0_67, %c0_68] : memref<64x128xf32, #tpu.memory_space<vmem>>, vector<64x128xf32>
    %cst_69 = arith.constant dense<0.000000e+00> : vector<256x128xf32>
    %78 = tpu.matmul %2, %77, %cst_69 {dimension_numbers = #tpu.dot_dimension_numbers<[1], [0], [0], [1], [0, 0, 1, 1], [], []>} : vector<256x64xf32>, vector<64x128xf32>, vector<256x128xf32> -> vector<256x128xf32>
    %79 = arith.addf %76, %78 : vector<256x128xf32>
    %c0_70 = arith.constant 0 : index
    %c0_71 = arith.constant 0 : index
    %80 = vector.load %arg8[%c0_70, %c0_71] : memref<1x128xf32, #tpu.memory_space<vmem>>, vector<1x128xf32>
    %81 = vector.broadcast %80 : vector<1x128xf32> to vector<256x128xf32>
    %82 = arith.addf %79, %81 : vector<256x128xf32>
    %cst_72 = arith.constant 0.000000e+00 : f32
    %83 = vector.broadcast %cst_72 : f32 to vector<256x128xf32>
    %84 = arith.maximumf %82, %83 : vector<256x128xf32>
    %85 = vector.shape_cast %84 : vector<256x128xf32> to vector<1x16x16x128xf32>
    %c0_73 = arith.constant 0 : index
    %c0_74 = arith.constant 0 : index
    %c0_75 = arith.constant 0 : index
    %c0_76 = arith.constant 0 : index
    %86 = vector.load %arg9[%c0_73, %c0_74, %c0_75, %c0_76] : memref<1x16x16x128xf32, #tpu.memory_space<vmem>>, vector<1x16x16x128xf32>
    tpu.vector_store %arg9[%c0_73, %c0_74, %c0_75, %c0_76], %85 {strides = array<i32>} : memref<1x16x16x128xf32, #tpu.memory_space<vmem>>, vector<1x16x16x128xf32>,
    return
  }
  func.func @transform_0(%arg0: i32) -> (i32, i32, i32, i32) {
    %c0_i32 = arith.constant 0 : i32
    %c0_i32_0 = arith.constant 0 : i32
    %c0_i32_1 = arith.constant 0 : i32
    %c0_i32_2 = arith.constant 0 : i32
    return %arg0, %c0_i32, %c0_i32_0, %c0_i32_1 : i32, i32, i32, i32
  }
  func.func @transform_1(%arg0: i32) -> (i32, i32) {
    %c0_i32 = arith.constant 0 : i32
    %c0_i32_0 = arith.constant 0 : i32
    %c0_i32_1 = arith.constant 0 : i32
    return %c0_i32, %c0_i32_0 : i32, i32
  }
  func.func @transform_2(%arg0: i32) -> (i32, i32) {
    %c0_i32 = arith.constant 0 : i32
    %c0_i32_0 = arith.constant 0 : i32
    %c0_i32_1 = arith.constant 0 : i32
    return %c0_i32, %c0_i32_0 : i32, i32
  }
  func.func @transform_3(%arg0: i32) -> (i32, i32, i32, i32) {
    %c0_i32 = arith.constant 0 : i32
    %c0_i32_0 = arith.constant 0 : i32
    %c0_i32_1 = arith.constant 0 : i32
    %c0_i32_2 = arith.constant 0 : i32
    %c0_i32_3 = arith.constant 0 : i32
    return %c0_i32, %c0_i32_0, %c0_i32_1, %c0_i32_2 : i32, i32, i32, i32
  }
  func.func @transform_4(%arg0: i32) -> (i32, i32) {
    %c0_i32 = arith.constant 0 : i32
    %c0_i32_0 = arith.constant 0 : i32
    %c0_i32_1 = arith.constant 0 : i32
    return %c0_i32, %c0_i32_0 : i32, i32
  }
  func.func @transform_5(%arg0: i32) -> (i32, i32) {
    %c0_i32 = arith.constant 0 : i32
    %c0_i32_0 = arith.constant 0 : i32
    %c0_i32_1 = arith.constant 0 : i32
    return %c0_i32, %c0_i32_0 : i32, i32
  }
  func.func @transform_6(%arg0: i32) -> (i32, i32) {
    %c0_i32 = arith.constant 0 : i32
    %c0_i32_0 = arith.constant 0 : i32
    %c0_i32_1 = arith.constant 0 : i32
    return %c0_i32, %c0_i32_0 : i32, i32
  }
  func.func @transform_7(%arg0: i32) -> (i32, i32) {
    %c0_i32 = arith.constant 0 : i32
    %c0_i32_0 = arith.constant 0 : i32
    %c0_i32_1 = arith.constant 0 : i32
    return %c0_i32, %c0_i32_0 : i32, i32
  }
  func.func @transform_8(%arg0: i32) -> (i32, i32, i32, i32) {
    %c0_i32 = arith.constant 0 : i32
    %c0_i32_0 = arith.constant 0 : i32
    %c0_i32_1 = arith.constant 0 : i32
    %c0_i32_2 = arith.constant 0 : i32
    return %arg0, %c0_i32, %c0_i32_0, %c0_i32_1 : i32, i32, i32, i32
  }
}

</mosaic_0001>

<bundles_post_ra>
// kernel: tpu_custom_call.1
= control target key start
LH: loop header
LB: loop body
LE: loop exit
PB: predicated region body
PF: predicated region fallthrough
CT: control target
= control target key end

     0   :  { %s8745_s0 = inlined_call_operand.hbm [shape: f32[2,16,16,64], index: 0, kind: input, shape index: {}]   ;;  %s8746_s1 = inlined_call_operand.vmem [shape: f32[64,32], index: 1, kind: input, shape index: {}]   ;;  %s8747_s2 = inlined_call_operand.vmem [shape: f32[1,32], index: 2, kind: input, shape index: {}]   ;;  %s8748_s3 = inlined_call_operand.hbm [shape: f32[3,3,32,32], index: 3, kind: input, shape index: {}]   ;;  %s8749_s4 = inlined_call_operand.vmem [shape: f32[1,32], index: 4, kind: input, shape index: {}]   ;;  %s8750_s5 = inlined_call_operand.vmem [shape: f32[32,128], index: 5, kind: input, shape index: {}]   ;;  %s8751_s6 = inlined_call_operand.vmem [shape: f32[64,128], index: 6, kind: input, shape index: {}]   ;;  %s8752_s7 = inlined_call_operand.vmem [shape: f32[1,128], index: 7, kind: input, shape index: {}]   ;;  %s8753_s8 = inlined_call_operand.hbm [shape: f32[2,16,16,128], index: 8, kind: output, shape index: {}]  }
   0x1   :  { %8784 = sst [smem:[#allocation78_spill]] %s8748_s3 }
   0x2   :  { %13 = vsyncpa [#allocation4], 0 }
   0x3   :  { %15 = vsyncpa [#allocation4 + $0x1], 0 }
   0x4   :  { %16 = vsyncpa [#allocation7], 0 }
   0x5   :  { %17 = vsyncpa [#allocation5], 0 }
   0x6   :  { %19 = vsyncpa [#allocation5 + $0x1], 0  ;;  %s6350_s27 = smov 0   ;;  %s6352_s28 = smov 0  }
   0x7   :  { %s6354_s29 = smov 0   ;;  %s6356_s30 = smov 0  }
   0x8 LB: > { %s6371_s9 = sadd.s32 4294967295, %s6295_s30   ;;  %s4510_s10 = sadd.s32 4294967294, %s6295_s30   ;;  %s6295_s30 = sphi %s6356_s30, %s8996_s30   ;;  %s6291_s29 = sphi %s6354_s29, %s8999_s29   ;;  %s6287_s28 = sphi %s6352_s28, %s8998_s28   ;;  %s6283_s27 = sphi %s6350_s27, %s8997_s27  }
   0x9   : > { %p45_p0 = scmp.ne.s32.totalorder %s6287_s28, %s6283_s27  ;;  %p8757_p1 = scmp.eq.s32.totalorder %s6371_s9, 0 }
   0xa   : > { %p222_p3 = scmp.eq.s32.totalorder %s4510_s10, 1  ;;  %p4511_p5 = scmp.ge.s32.totalorder %s6295_s30, 1 }
   0xb   : > { %p6380_p4 = por %p8757_p1, %p45_p0  ;;  %p229_p7 = scmp.lt.s32.totalorder %s6295_s30, 3 }
   0xc   : > { %p6385_p6 = por %p222_p3, %p45_p0  ;;  %s6297_s14 = smov [#allocation6]  }
   0xd   : > { %s8785_s11 = scalar_select %p6380_p4, 1, 0 }
   0xe   : > { %s8786_s12 = scalar_select %p6385_p6, 1, 0 }
   0xf   : > { %p6390_p8 = pnand %p4511_p5, %p229_p7  ;;  %s247_s15 = sshll.u32 %s6297_s14, 4  ;;  %s248_s15 = int_to_ptr.vmem [resolvable:$true] %s247_s15 }
  0x10   : > { %s6404_s17 = sadd.s32 1, %s6295_s30   ;;  %s32_s18 = sadd.s32 1, %s6291_s29 }
  0x11   : > { %s8787_s13 = scalar_select %p6390_p8, 1, 0 }
  0x12   : > { %p6059_p9 = pneg %p6390_p8  ;;  %8789 = sst [smem:[#allocation12_spill]] %s6404_s17 }
  0x13   : > { %s29_s19 = ssub.s32 %s6295_s30, %s6404_s17  ;;  %s6184_s20 = scalar_lea.vmem %s248_s15, 4608 }
  0x14   : > { %p6399_p11 = pnand %p6059_p9, %p8757_p1  ;;  %p6185_p13 = scmp.ne.s32.totalorder %s248_s15, %s6184_s20 }
  0x15   : > { %p6192_p5 = scmp.lt.s32.totalorder %s248_s15, %s248_s15  ;;  %p6193_p7 = scmp.lt.s32.totalorder %s6184_s20, %s6184_s20 }
  0x16   : > { %p6175_p12 = pneg %p6399_p11 }
  0x17   : > { %p6194_p10 = por %p6193_p7, %p6192_p5 }
  0x18   : > { %p6187_p0 = pnand %p6185_p13, %p6175_p12 }
  0x1a   : > { %p6188_p3 = pneg %p6187_p0 }
  0x1c   : > { %p6195_p2 = pnand %p6194_p10, %p6188_p3 }
  0x1e   : > { %6198 = shalt.err (!%p6195_p2)
}
  0x1f   : > { %s8756_s21 = smov 128   ;;  %s8758_s22 = smov 8  }
  0x20   : > { %s8790_s3 = sld [smem:[#allocation78_spill]]  ;;  %p30_p2 = scmp.eq.s32.totalorder %s29_s19, 0 }
  0x21   : > { %p39_p9 = scmp.ne.s32.totalorder %s6291_s29, %s6287_s28  ;;  %p40_p10 = scmp.eq.s32.totalorder %s6295_s30, 0 }
  0x22   : > { %p6072_p12 = scmp.lt.s32.totalorder %s6295_s30, 2  ;;  %p8791_p0 = scmp.eq.s32.totalorder %s6371_s9, 1 }
  0x23   : > { %s6424_s25 = scalar_select %p30_p2, %s6291_s29, %s32_s18  }
  0x24   : > { %p41_p13 = por %p40_p10, %p39_p9  ;;  %p6428_p3 = por %p8791_p0, %p39_p9 }
  0x25   : > { %s273_s10 = sand.u32 1, %s6291_s29   ;;  %s4913_s14 = sshll.u32 %s6295_s30, 12 }
  0x26   : > { %6062 = dma.hbm_to_vmem [thread:$0]  (!%p6399_p11), %s8790_s3, 4608, %s248_s15, [#allocation7], %s8756_s21, %s8756_s21, %s8758_s22  }
  0x27   : > { %s8792_s26 = scalar_select %p6428_p3, 1, 0 }
  0x28   : > { %s4514_s16 = sshll.u32 %s273_s10, 8  ;;  %s6437_s23 = scalar_lea.hbm %s8745_s0, %s4913_s14 }
  0x29   : > { %s277_s15 = scalar_lea.vmem [#allocation3], %s4514_s16  ;;  %p6439_p11 = pnand %p6072_p12, %p41_p13 }
  0x2a   : > { %s284_s18 = sshll.u32 %s277_s15, 4  ;;  %s6445_s24 = scalar_lea.sflag [#allocation4], %s273_s10  ;;  %s6443_s18 = int_to_ptr.vmem [resolvable:$true] %s284_s18 }
  0x2b   : > { %s6199_s21 = scalar_lea.hbm %s6437_s23, 4096  ;;  %p6201_p7 = pneg %p6439_p11 }
  0x2c   : > { %p6200_p5 = scmp.ne.s32.totalorder %s6437_s23, %s6199_s21  ;;  %s6204_s16 = scalar_lea.hbm %s8745_s0, 8192 }
  0x2d   : > { %p6205_p10 = scmp.lt.s32.totalorder %s6437_s23, %s8745_s0  ;;  %p6206_p12 = scmp.lt.s32.totalorder %s6204_s16, %s6199_s21 }
  0x2e   : > { %p6202_p2 = pnand %p6201_p7, %p6200_p5 }
  0x2f   : > { %p6207_p13 = por %p6206_p12, %p6205_p10 }
  0x30   : > { %p6203_p9 = pneg %p6202_p2 }
  0x32   : > { %p6208_p0 = pnand %p6207_p13, %p6203_p9 }
  0x34   : > { %6211 = shalt.err (!%p6208_p0)
}
  0x35   : > { %s6212_s10 = scalar_lea.vmem %s6443_s18, 4096  ;;  %s6300_s22 = smov [#allocation3]  }
  0x36   : > { %p6213_p1 = scmp.ne.s32.totalorder %s6443_s18, %s6212_s10  ;;  %s6217_s3 = sshll.u32 %s6300_s22, 4  ;;  %s6218_s3 = int_to_ptr.vmem [resolvable:$false] %s6217_s3 }
  0x37   : > { %s6219_s17 = scalar_lea.vmem %s6218_s3, 8192  ;;  %p6220_p2 = scmp.lt.s32.totalorder %s6443_s18, %s6218_s3 }
  0x38   : > { %p6215_p6 = pnand %p6213_p1, %p6201_p7  ;;  %p6221_p3 = scmp.lt.s32.totalorder %s6219_s17, %s6212_s10 }
  0x3a   : > { %p6216_p5 = pneg %p6215_p6  ;;  %p6222_p4 = por %p6221_p3, %p6220_p2 }
  0x3c   : > { %p6223_p8 = pnand %p6222_p4, %p6216_p5 }
  0x3e   : > { %6226 = shalt.err (!%p6223_p8)
}
  0x3f   : > { %s8794_s21 = smov 8   ;;  %s8795_s14 = smov 128  }
  0x40   : > { %6066 = dma.hbm_to_vmem [thread:$0]  (!%p6439_p11), %s6437_s23, 4096, %s6443_s18, %s6445_s24, %s8795_s14, %s8795_s14, %s8794_s21  }
  0x41   : > { %p8796_p1 = scmp.ne.s32.totalorder %s8787_s13, 0 }
  0x43   : > { %296 = sbr.rel (%p8796_p1) target bundleno = 1035 (0x40b), region = 52 }
  0x48   : > { %s6472_s22 = sand.u32 1, %s6287_s28   ;;  %p8797_p4 = scmp.ne.s32.totalorder %s8785_s11, 0 }
  0x49   : > { %s4518_s3 = sshll.u32 %s6472_s22, 8  ;;  %s299_s16 = scalar_lea.sflag [#allocation4], %s6472_s22 }
  0x4a   : > { %s6478_s19 = scalar_lea.vmem [#allocation3], %s4518_s3 }
  0x4b   : > { %6270 = dma.done.wait (%p8797_p4), %s299_s16, 4096  }
  0x4c   : > { %6272 = vsyncadd (%p8797_p4), %s299_s16, 4294963200  ;;  %p8798_p6 = scmp.eq.s32.totalorder %s6371_s9, 0 }
  0x4e   : > { %6274 = dma.done.wait (%p8798_p6), [#allocation7], 4608   ;;  %p8799_p8 = pmov %p8798_p6 }
  0x4f   : > { %v378_v0 = vld [vmem:[%s8746_s1 + $0x38] sm:$0xff]  ;;  %v377_v1 = vld [vmem:[%s8746_s1 + $0x30] sm:$0xff]  ;;  %vm386_vm0 = vcmask 523264   ;;  %v376_v2 = vld [vmem:[%s8746_s1 + $0x28] sm:$0xff]  ;;  %vm740_vm1 = vcmask 261120   ;;  %v6301_v40 = vmov 0.0  }
  0x50   : > { %6276 = vsyncadd (%p8799_p8), [#allocation7], 4294962688  ;;  %5355 = vmatprep.subr.mxu0 %v378_v0  ;;  %v339_v3 = vld [vmem:[%s6478_s19] sm:$0xff]  ;;  %v374_v5 = vld [vmem:[%s8746_s1 + $0x18] sm:$0xff]  ;;  %747 = vst.msk [vmem:[#allocation2 + $0x30] sm:$0xff] %vm740_vm1, %v6301_v40  ;;  %vm1650_vm2 = vcmask 1046528  }
  0x51   : > { %5356 = vmatpush3.msra.mxu0 %v378_v0  ;;  %5371 = vmatprep.mubr.msk.f32.mxu0 %vm386_vm0, %v339_v3  ;;  %v375_v4 = vld [vmem:[%s8746_s1 + $0x20] sm:$0xff]  ;;  %v373_v6 = vld [vmem:[%s8746_s1 + $0x10] sm:$0xff]  ;;  %v372_v7 = vld [vmem:[%s8746_s1 + $0x8] sm:$0xff]  ;;  %741 = vst.msk [vmem:[#allocation2] sm:$0xff] %vm740_vm1, %v6301_v40  ;;  %vm966_vm3 = vcmask 1040384   ;;  %s8611_s21 = scalar_lea.vmem [#allocation8], %s4518_s3 }
  0x52   : > { %5357 = vmatprep.subr.mxu0 %v377_v1  ;;  %v371_v8 = vld [vmem:[%s8746_s1] sm:$0xff]  ;;  %v340_v9 = vld [vmem:[%s6478_s19 + $0x8] sm:$0xff]  ;;  %v341_v10 = vld [vmem:[%s6478_s19 + $0x10] sm:$0xff]  ;;  %742 = vst.msk [vmem:[#allocation2 + $0x8] sm:$0xff] %vm740_vm1, %v6301_v40  ;;  %s4914_s3 = sshll.u32 %s6371_s9, 12  ;;  %s4427_s14 = sshll.u32 %s8611_s21, 4  ;;  %s8700_s14 = int_to_ptr.vmem [resolvable:$true] %s4427_s14 }
  0x53   : > { %5358 = vmatpush3.msra.mxu0 %v377_v1  ;;  %v342_v11 = vld [vmem:[%s6478_s19 + $0x18] sm:$0xff]  ;;  %v343_v12 = vld [vmem:[%s6478_s19 + $0x20] sm:$0xff]  ;;  %v344_v13 = vld [vmem:[%s6478_s19 + $0x28] sm:$0xff]  ;;  %743 = vst.msk [vmem:[#allocation2 + $0x10] sm:$0xff] %vm740_vm1, %v6301_v40  ;;  %s8698_s23 = scalar_lea.hbm %s8753_s8, %s4914_s3  ;;  %s4414_s18 = scalar_lea.sflag [#allocation5], %s6472_s22 }
  0x54   : > { %5359 = vmatprep.subr.mxu0 %v376_v2  ;;  %v345_v14 = vld [vmem:[%s6478_s19 + $0x30] sm:$0xff]  ;;  %v346_v15 = vld [vmem:[%s6478_s19 + $0x38] sm:$0xff]  ;;  %v347_v16 = vld [vmem:[%s6478_s19 + $0x40] sm:$0xff]  ;;  %744 = vst.msk [vmem:[#allocation2 + $0x18] sm:$0xff] %vm740_vm1, %v6301_v40  ;;  %s6227_s9 = scalar_lea.vmem %s8700_s14, 4096  ;;  %p8993_p11 = scmp.ne.s32.totalorder %s8792_s26, 0 }
  0x55   : > { %5360 = vmatpush3.msra.mxu0 %v376_v2  ;;  %v348_v17 = vld [vmem:[%s6478_s19 + $0x48] sm:$0xff]  ;;  %v349_v18 = vld [vmem:[%s6478_s19 + $0x50] sm:$0xff]  ;;  %v350_v19 = vld [vmem:[%s6478_s19 + $0x58] sm:$0xff]  ;;  %745 = vst.msk [vmem:[#allocation2 + $0x20] sm:$0xff] %vm740_vm1, %v6301_v40  ;;  %p6228_p3 = scmp.ne.s32.totalorder %s8700_s14, %s6227_s9  ;;  %s6302_s24 = smov [#allocation8]  }
  0x56   : > { %5361 = vmatprep.subr.mxu0 %v375_v4  ;;  %v351_v20 = vld [vmem:[%s6478_s19 + $0x60] sm:$0xff]  ;;  %v352_v21 = vld [vmem:[%s6478_s19 + $0x68] sm:$0xff]  ;;  %v353_v22 = vld [vmem:[%s6478_s19 + $0x70] sm:$0xff]  ;;  %746 = vst.msk [vmem:[#allocation2 + $0x28] sm:$0xff] %vm740_vm1, %v6301_v40  ;;  %s6231_s11 = sshll.u32 %s6302_s24, 4  ;;  %s6232_s11 = int_to_ptr.vmem [resolvable:$false] %s6231_s11 }
  0x57   : > { %5362 = vmatpush3.msra.mxu0 %v375_v4  ;;  %v354_v23 = vld [vmem:[%s6478_s19 + $0x78] sm:$0xff]  ;;  %v355_v24 = vld [vmem:[%s6478_s19 + $0x80] sm:$0xff]  ;;  %v356_v25 = vld [vmem:[%s6478_s19 + $0x88] sm:$0xff]  ;;  %748 = vst.msk [vmem:[#allocation2 + $0x38] sm:$0xff] %vm740_vm1, %v6301_v40  ;;  %p6229_p7 = pnand %p6228_p3, %p8993_p11  ;;  %s6233_s20 = scalar_lea.vmem %s6232_s11, 8192 }
  0x58   : > { %5363 = vmatprep.subr.mxu0 %v374_v5  ;;  %v357_v26 = vld [vmem:[%s6478_s19 + $0x90] sm:$0xff]  ;;  %v358_v27 = vld [vmem:[%s6478_s19 + $0x98] sm:$0xff]  ;;  %v359_v28 = vld [vmem:[%s6478_s19 + $0xa0] sm:$0xff]  ;;  %749 = vst.msk [vmem:[#allocation2 + $0x40] sm:$0xff] %vm740_vm1, %v6301_v40  ;;  %p6234_p10 = scmp.lt.s32.totalorder %s8700_s14, %s6232_s11  ;;  %p6235_p12 = scmp.lt.s32.totalorder %s6233_s20, %s6227_s9 }
  0x59   : > { %5364 = vmatpush3.msra.mxu0 %v374_v5  ;;  %v360_v29 = vld [vmem:[%s6478_s19 + $0xa8] sm:$0xff]  ;;  %v361_v30 = vld [vmem:[%s6478_s19 + $0xb0] sm:$0xff]  ;;  %v362_v31 = vld [vmem:[%s6478_s19 + $0xb8] sm:$0xff]  ;;  %750 = vst.msk [vmem:[#allocation2 + $0x48] sm:$0xff] %vm740_vm1, %v6301_v40  ;;  %p6230_p9 = pneg %p6229_p7 }
  0x5a   : > { %5365 = vmatprep.subr.mxu0 %v373_v6  ;;  %v363_v32 = vld [vmem:[%s6478_s19 + $0xc0] sm:$0xff]  ;;  %v364_v33 = vld [vmem:[%s6478_s19 + $0xc8] sm:$0xff]  ;;  %v365_v34 = vld [vmem:[%s6478_s19 + $0xd0] sm:$0xff]  ;;  %751 = vst.msk [vmem:[#allocation2 + $0x50] sm:$0xff] %vm740_vm1, %v6301_v40  ;;  %p6236_p13 = por %p6235_p12, %p6234_p10 }
  0x5b   : > { %5366 = vmatpush3.msra.mxu0 %v373_v6  ;;  %v366_v35 = vld [vmem:[%s6478_s19 + $0xd8] sm:$0xff]  ;;  %v367_v36 = vld [vmem:[%s6478_s19 + $0xe0] sm:$0xff]  ;;  %v368_v37 = vld [vmem:[%s6478_s19 + $0xe8] sm:$0xff]  ;;  %752 = vst.msk [vmem:[#allocation2 + $0x58] sm:$0xff] %vm740_vm1, %v6301_v40 }
  0x5c   : > { %5367 = vmatprep.subr.mxu0 %v372_v7  ;;  %v369_v38 = vld [vmem:[%s6478_s19 + $0xf0] sm:$0xff]  ;;  %v370_v39 = vld [vmem:[%s6478_s19 + $0xf8] sm:$0xff]  ;;  %753 = vst.msk [vmem:[#allocation2 + $0x60] sm:$0xff] %vm740_vm1, %v6301_v40  ;;  %754 = vst.msk [vmem:[#allocation2 + $0x68] sm:$0xff] %vm740_vm1, %v6301_v40  ;;  %p6237_p0 = pnand %p6236_p13, %p6230_p9 }
  0x5d   : > { %5368 = vmatpush3.msra.mxu0 %v372_v7  ;;  %755 = vst.msk [vmem:[#allocation2 + $0x70] sm:$0xff] %vm740_vm1, %v6301_v40  ;;  %756 = vst.msk [vmem:[#allocation2 + $0x78] sm:$0xff] %vm740_vm1, %v6301_v40  ;;  %v1055_v41 = vld [vmem:[#allocation6 + $0x38] sm:$0xff]  ;;  %v1054_v42 = vld [vmem:[#allocation6 + $0x30] sm:$0xff] }
  0x5e   : > { %5369 = vmatprep.subr.mxu0 %v371_v8  ;;  %757 = vst.msk [vmem:[#allocation2 + $0x80] sm:$0xff] %vm740_vm1, %v6301_v40  ;;  %758 = vst.msk [vmem:[#allocation2 + $0x88] sm:$0xff] %vm740_vm1, %v6301_v40  ;;  %5419 = vmatprep.subr.mxu1 %v1055_v41  ;;  %v1053_v43 = vld [vmem:[#allocation6 + $0x28] sm:$0xff]  ;;  %v1735_v44 = vld [vmem:[#allocation6 + $0x58] sm:$0xff] }
  0x5f   : > { %5370 = vmatpush3.msra.mxu0 %v371_v8  ;;  %759 = vst.msk [vmem:[#allocation2 + $0x90] sm:$0xff] %vm740_vm1, %v6301_v40  ;;  %760 = vst.msk [vmem:[#allocation2 + $0x98] sm:$0xff] %vm740_vm1, %v6301_v40  ;;  %5420 = vmatpush3.msra.mxu1 %v1055_v41  ;;  %v1052_v45 = vld [vmem:[#allocation6 + $0x20] sm:$0xff]  ;;  %v6720_v46 = vld [vmem:[#allocation2 + $0x8] sm:$0xff] }
  0x60   : > { %5372 = vmatmul.mubr.msk.f32.vlgmr.msra.gmra.mxu0 %vm386_vm0, %v340_v9  ;;  %761 = vst.msk [vmem:[#allocation2 + $0xa0] sm:$0xff] %vm740_vm1, %v6301_v40  ;;  %762 = vst.msk [vmem:[#allocation2 + $0xa8] sm:$0xff] %vm740_vm1, %v6301_v40  ;;  %5421 = vmatprep.subr.mxu1 %v1054_v42  ;;  %v1734_v47 = vld [vmem:[#allocation6 + $0x50] sm:$0xff]  ;;  %v1733_v49 = vld [vmem:[#allocation6 + $0x48] sm:$0xff]  ;;  %v1651_v50 = vrot.slane %v6720_v46, 1  ;;  %v8762_v61 = vrot.slane %v6720_v46, 7 }
  0x61   : > { %5374 = vmatprep.mubr.msk.f32.mxu0 %vm386_vm0, %v341_v10  ;;  %763 = vst.msk [vmem:[#allocation2 + $0xb0] sm:$0xff] %vm740_vm1, %v6301_v40  ;;  %764 = vst.msk [vmem:[#allocation2 + $0xb8] sm:$0xff] %vm740_vm1, %v6301_v40  ;;  %5422 = vmatpush3.msra.mxu1 %v1054_v42  ;;  %v848_v48 = vld [vmem:[#allocation2 + $0x10] sm:$0xff]  ;;  %v849_v52 = vld [vmem:[#allocation2 + $0x18] sm:$0xff] }
  0x62   : > { %765 = vst.msk [vmem:[#allocation2 + $0xc0] sm:$0xff] %vm740_vm1, %v6301_v40  ;;  %766 = vst.msk [vmem:[#allocation2 + $0xc8] sm:$0xff] %vm740_vm1, %v6301_v40  ;;  %5423 = vmatprep.subr.mxu1 %v1053_v43  ;;  %5531 = vmatprep.subr.mxu0 %v1735_v44  ;;  %v1652_v51 = vrot.slane %v848_v48, 1  ;;  %v1732_v53 = vld [vmem:[#allocation6 + $0x40] sm:$0xff]  ;;  %v1654_v54 = vrot.slane %v849_v52, 1  ;;  %v1050_v57 = vld [vmem:[#allocation6 + $0x18] sm:$0xff] }
  0x63   : > { %767 = vst.msk [vmem:[#allocation2 + $0xd0] sm:$0xff] %vm740_vm1, %v6301_v40  ;;  %768 = vst.msk [vmem:[#allocation2 + $0xd8] sm:$0xff] %vm740_vm1, %v6301_v40  ;;  %5424 = vmatpush3.msra.mxu1 %v1053_v43  ;;  %5532 = vmatpush3.msra.mxu0 %v1735_v44  ;;  %v1049_v58 = vld [vmem:[#allocation6 + $0x10] sm:$0xff]  ;;  %v1048_v59 = vld [vmem:[#allocation6 + $0x8] sm:$0xff]  ;;  %v970_v62 = vrot.slane %v848_v48, 7 }
  0x64   : > { %5375 = vmatmul.mubr.msk.f32.gmra.mxu0 %vm386_vm0, %v342_v11  ;;  %769 = vst.msk [vmem:[#allocation2 + $0xe0] sm:$0xff] %vm740_vm1, %v6301_v40  ;;  %770 = vst.msk [vmem:[#allocation2 + $0xe8] sm:$0xff] %vm740_vm1, %v6301_v40  ;;  %5425 = vmatprep.subr.mxu1 %v1052_v45  ;;  %v1653_v55 = vsel %vm1650_vm2, %v1651_v50, %v1652_v51  ;;  %v1655_v56 = vsel %vm1650_vm2, %v1652_v51, %v1654_v54  ;;  %v1047_v60 = vld [vmem:[#allocation6] sm:$0xff]  ;;  %v2335_v63 = vld [vmem:[#allocation6 + $0x98] sm:$0xff] }
  0x65   : > { %5377 = vmatprep.mubr.msk.f32.mxu0 %vm386_vm0, %v343_v12  ;;  %771 = vst.msk [vmem:[#allocation2 + $0xf0] sm:$0xff] %vm740_vm1, %v6301_v40  ;;  %772 = vst.msk [vmem:[#allocation2 + $0xf8] sm:$0xff] %vm740_vm1, %v6301_v40  ;;  %5426 = vmatpush3.msra.mxu1 %v1052_v45  ;;  %v2334_v0 = vld [vmem:[#allocation6 + $0x90] sm:$0xff]  ;;  %v6731_v1 = vld [vmem:[#allocation6 + $0x78] sm:$0xff]  ;;  %v6736_v3 = vsel %vm966_vm3, %v8762_v61, %v970_v62 }
  0x66   : > { %773 = vst.msk [vmem:[#allocation2 + $0x100] sm:$0xff] %vm740_vm1, %v6301_v40  ;;  %774 = vst.msk [vmem:[#allocation2 + $0x108] sm:$0xff] %vm740_vm1, %v6301_v40  ;;  %5427 = vmatprep.mubr.msk.f32.mxu1 %vm740_vm1, %v6720_v46  ;;  %5533 = vmatprep.subr.mxu0 %v1734_v47  ;;  %v2333_v2 = vld [vmem:[#allocation6 + $0x88] sm:$0xff]  ;;  %v2332_v4 = vld [vmem:[#allocation6 + $0x80] sm:$0xff] }
  0x67   : > { %775 = vst.msk [vmem:[#allocation2 + $0x110] sm:$0xff] %vm740_vm1, %v6301_v40  ;;  %776 = vst.msk [vmem:[#allocation2 + $0x118] sm:$0xff] %vm740_vm1, %v6301_v40  ;;  %5428 = vmatmul.mubr.msk.f32.vlgmr.msra.gmra.mxu1 %vm740_vm1, %v848_v48  ;;  %5534 = vmatpush3.msra.mxu0 %v1734_v47  ;;  %v6742_v5 = vld [vmem:[%s8747_s2] ss:$0 sm:$0xff]  ;;  %v861_v51 = vld [vmem:[#allocation2 + $0x78] sm:$0xff] }
  0x68   : > { %5378 = vmatmul.mubr.msk.f32.gmra.mxu0 %vm386_vm0, %v344_v13  ;;  %777 = vst.msk [vmem:[#allocation2 + $0x120] sm:$0xff] %vm740_vm1, %v6301_v40  ;;  %778 = vst.msk [vmem:[#allocation2 + $0x128] sm:$0xff] %vm740_vm1, %v6301_v40  ;;  %5535 = vmatprep.subr.mxu0 %v1733_v49  ;;  %v1669_v62 = vrot.slane %v861_v51, 1 }
  0x69   : > { %5380 = vmatprep.mubr.msk.f32.mxu0 %vm386_vm0, %v345_v14  ;;  %779 = vst.msk [vmem:[#allocation2 + $0x130] sm:$0xff] %vm740_vm1, %v6301_v40  ;;  %780 = vst.msk [vmem:[#allocation2 + $0x138] sm:$0xff] %vm740_vm1, %v6301_v40  ;;  %5536 = vmatpush3.msra.mxu0 %v1733_v49 }
  0x6a   : > { %781 = vst.msk [vmem:[#allocation2 + $0x140] sm:$0xff] %vm740_vm1, %v6301_v40  ;;  %782 = vst.msk [vmem:[#allocation2 + $0x148] sm:$0xff] %vm740_vm1, %v6301_v40  ;;  %5537 = vmatprep.subr.mxu0 %v1732_v53  ;;  %5475 = vmatprep.subr.mxu1 %v1050_v57 }
  0x6b   : > { %783 = vst.msk [vmem:[#allocation2 + $0x150] sm:$0xff] %vm740_vm1, %v6301_v40  ;;  %784 = vst.msk [vmem:[#allocation2 + $0x158] sm:$0xff] %vm740_vm1, %v6301_v40  ;;  %5538 = vmatpush3.msra.mxu0 %v1732_v53  ;;  %5476 = vmatpush3.msra.mxu1 %v1050_v57 }
  0x6c   : > { %5381 = vmatmul.mubr.msk.f32.gmra.mxu0 %vm386_vm0, %v346_v15  ;;  %785 = vst.msk [vmem:[#allocation2 + $0x160] sm:$0xff] %vm740_vm1, %v6301_v40  ;;  %786 = vst.msk [vmem:[#allocation2 + $0x168] sm:$0xff] %vm740_vm1, %v6301_v40  ;;  %5477 = vmatprep.subr.mxu1 %v1049_v58 }
  0x6d   : > { %5383 = vmatprep.mubr.msk.f32.mxu0 %vm386_vm0, %v347_v16  ;;  %787 = vst.msk [vmem:[#allocation2 + $0x170] sm:$0xff] %vm740_vm1, %v6301_v40  ;;  %788 = vst.msk [vmem:[#allocation2 + $0x178] sm:$0xff] %vm740_vm1, %v6301_v40  ;;  %5478 = vmatpush3.msra.mxu1 %v1049_v58 }
  0x6e   : > { %789 = vst.msk [vmem:[#allocation2 + $0x180] sm:$0xff] %vm740_vm1, %v6301_v40  ;;  %790 = vst.msk [vmem:[#allocation2 + $0x188] sm:$0xff] %vm740_vm1, %v6301_v40  ;;  %5479 = vmatprep.subr.mxu1 %v1048_v59  ;;  %5643 = vmatprep.subr.mxu0 %v2335_v63 }
  0x6f   : > { %791 = vst.msk [vmem:[#allocation2 + $0x190] sm:$0xff] %vm740_vm1, %v6301_v40  ;;  %792 = vst.msk [vmem:[#allocation2 + $0x198] sm:$0xff] %vm740_vm1, %v6301_v40  ;;  %5480 = vmatpush3.msra.mxu1 %v1048_v59 }
  0x70   : > { %5384 = vmatmul.mubr.msk.f32.gmra.mxu0 %vm386_vm0, %v348_v17  ;;  %793 = vst.msk [vmem:[#allocation2 + $0x1a0] sm:$0xff] %vm740_vm1, %v6301_v40  ;;  %794 = vst.msk [vmem:[#allocation2 + $0x1a8] sm:$0xff] %vm740_vm1, %v6301_v40  ;;  %5481 = vmatprep.subr.mxu1 %v1047_v60  ;;  %v6750_v17 = vld [vmem:[#allocation6 + $0xd8] sm:$0xff] }
  0x71   : > { %5386 = vmatprep.mubr.msk.f32.mxu0 %vm386_vm0, %v349_v18  ;;  %795 = vst.msk [vmem:[#allocation2 + $0x1b0] sm:$0xff] %vm740_vm1, %v6301_v40  ;;  %796 = vst.msk [vmem:[#allocation2 + $0x1b8] sm:$0xff] %vm740_vm1, %v6301_v40  ;;  %5482 = vmatpush3.msra.mxu1 %v1047_v60 }
  0x72   : > { %797 = vst.msk [vmem:[#allocation2 + $0x1c0] sm:$0xff] %vm740_vm1, %v6301_v40  ;;  %798 = vst.msk [vmem:[#allocation2 + $0x1c8] sm:$0xff] %vm740_vm1, %v6301_v40  ;;  %5587 = vmatprep.subr.mxu1 %v6731_v1 }
  0x73   : > { %799 = vst.msk [vmem:[#allocation2 + $0x1d0] sm:$0xff] %vm740_vm1, %v6301_v40  ;;  %800 = vst.msk [vmem:[#allocation2 + $0x1d8] sm:$0xff] %vm740_vm1, %v6301_v40 }
  0x74   : > { %5387 = vmatmul.mubr.msk.f32.gmra.mxu0 %vm386_vm0, %v350_v19  ;;  %801 = vst.msk [vmem:[#allocation2 + $0x1e0] sm:$0xff] %vm740_vm1, %v6301_v40  ;;  %802 = vst.msk [vmem:[#allocation2 + $0x1e8] sm:$0xff] %vm740_vm1, %v6301_v40 }
  0x75   : > { %5389 = vmatprep.mubr.msk.f32.mxu0 %vm386_vm0, %v351_v20  ;;  %803 = vst.msk [vmem:[#allocation2 + $0x1f0] sm:$0xff] %vm740_vm1, %v6301_v40  ;;  %804 = vst.msk [vmem:[#allocation2 + $0x1f8] sm:$0xff] %vm740_vm1, %v6301_v40 }
  0x76   : > { %805 = vst.msk [vmem:[#allocation2 + $0x200] sm:$0xff] %vm740_vm1, %v6301_v40  ;;  %806 = vst.msk [vmem:[#allocation2 + $0x208] sm:$0xff] %vm740_vm1, %v6301_v40 }
  0x77   : > { %807 = vst.msk [vmem:[#allocation2 + $0x210] sm:$0xff] %vm740_vm1, %v6301_v40  ;;  %808 = vst.msk [vmem:[#allocation2 + $0x218] sm:$0xff] %vm740_vm1, %v6301_v40 }
  0x78   : > { %5390 = vmatmul.mubr.msk.f32.gmra.mxu0 %vm386_vm0, %v352_v21  ;;  %809 = vst.msk [vmem:[#allocation2 + $0x220] sm:$0xff] %vm740_vm1, %v6301_v40  ;;  %810 = vst.msk [vmem:[#allocation2 + $0x228] sm:$0xff] %vm740_vm1, %v6301_v40 }
  0x79   : > { %5392 = vmatprep.mubr.msk.f32.mxu0 %vm386_vm0, %v353_v22  ;;  %811 = vst.msk [vmem:[#allocation2 + $0x230] sm:$0xff] %vm740_vm1, %v6301_v40  ;;  %812 = vst.msk [vmem:[#allocation2 + $0x238] sm:$0xff] %vm740_vm1, %v6301_v40 }
  0x7c   : > { %5393 = vmatmul.mubr.msk.f32.gmra.mxu0 %vm386_vm0, %v354_v23 }
  0x7d   : > { %5395 = vmatprep.mubr.msk.f32.mxu0 %vm386_vm0, %v355_v24  ;;  %v853_v24 = vld [vmem:[#allocation2 + $0x38] sm:$0xff] }
  0x80   : > { %5396 = vmatmul.mubr.msk.f32.gmra.mxu0 %vm386_vm0, %v356_v25 }
  0x81   : > { %5398 = vmatprep.mubr.msk.f32.mxu0 %vm386_vm0, %v357_v26 }
  0x84   : > { %5399 = vmatmul.mubr.msk.f32.gmra.mxu0 %vm386_vm0, %v358_v27 }
  0x85   : > { %5401 = vmatprep.mubr.msk.f32.mxu0 %vm386_vm0, %v359_v28 }
  0x88   : > { %5402 = vmatmul.mubr.msk.f32.gmra.mxu0 %vm386_vm0, %v360_v29 }
  0x89   : > { %5404 = vmatprep.mubr.msk.f32.mxu0 %vm386_vm0, %v361_v30 }
  0x8c   : > { %5405 = vmatmul.mubr.msk.f32.gmra.mxu0 %vm386_vm0, %v362_v31 }
  0x8d   : > { %5407 = vmatprep.mubr.msk.f32.mxu0 %vm386_vm0, %v363_v32  ;;  %v1659_v32 = vrot.slane %v853_v24, 1 }
  0x90   : > { %5408 = vmatmul.mubr.msk.f32.gmra.mxu0 %vm386_vm0, %v364_v33 }
  0x91   : > { %5410 = vmatprep.mubr.msk.f32.mxu0 %vm386_vm0, %v365_v34 }
  0x94   : > { %5411 = vmatmul.mubr.msk.f32.gmra.mxu0 %vm386_vm0, %v366_v35 }
  0x95   : > { %5413 = vmatprep.mubr.msk.f32.mxu0 %vm386_vm0, %v367_v36  ;;  %v857_v36 = vld [vmem:[#allocation2 + $0x58] sm:$0xff] }
  0x96   : > { %v1664_v47 = vrot.slane %v857_v36, 1  ;;  %v873_v36 = vld [vmem:[#allocation2 + $0xd8] sm:$0xff] }
  0x97   : > { %v1684_v51 = vrot.slane %v873_v36, 1 }
  0x98   : > { %5414 = vmatmul.mubr.msk.f32.gmra.mxu0 %vm386_vm0, %v368_v37 }
  0x99   : > { %5416 = vmatprep.mubr.msk.f32.mxu0 %vm386_vm0, %v369_v38 }
  0x9c   : > { %5417 = vmatmul.mubr.msk.f32.gmra.mxu0 %vm386_vm0, %v370_v39 }
  0x9d   : > { %5539 = vmatprep.mubr.msk.f32.mxu0 %vm740_vm1, %v1653_v55 }
  0xa0   : > { %5540 = vmatmul.mubr.msk.f32.vlgmr.msra.gmra.mxu0 %vm740_vm1, %v1655_v56 }
  0xa1   : > { %5644 = vmatpush3.msra.mxu0 %v2335_v63 }
  0xa2   : > { %5645 = vmatprep.subr.mxu0 %v2334_v0 }
  0xa3   : > { %5646 = vmatpush3.msra.mxu0 %v2334_v0 }
  0xa4   : > { %5647 = vmatprep.subr.mxu0 %v2333_v2 }
  0xa5   : > { %5648 = vmatpush3.msra.mxu0 %v2333_v2 }
  0xa6   : > { %5649 = vmatprep.subr.mxu0 %v2332_v4 }
  0xa7   : > { %5650 = vmatpush3.msra.mxu0 %v2332_v4  ;;  %v865_v4 = vld [vmem:[#allocation2 + $0x98] sm:$0xff] }
  0xa8   : > { %5755 = vmatprep.subr.mxu0 %v6750_v17 }
 0x120   : > { %v5373_v6 = vpop.f32.mrf.mxu0 }
 0x121   : > { %v555_v7 = vadd.f32 %v5373_v6, %v6742_v5 }
 0x122   : > { %v549_v8 = vpop.f32.mrf.mxu0 }
 0x123   : > { %v709_v9 = vmax.f32 %v555_v7, 0.0  ;;  %v550_v10 = vadd.f32 %v6742_v5, %v549_v8 }
 0x124   : > { %v5376_v11 = vpop.f32.mrf.mxu0 }
 0x125   : > { %815 = vst.msk [vmem:[#allocation2 + $0x30] sm:$0xff] %vm740_vm1, %v709_v9  ;;  %v708_v12 = vmax.f32 %v550_v10, 0.0  ;;  %v565_v13 = vadd.f32 %v5376_v11, %v6742_v5 }
 0x126   : > { %v559_v14 = vpop.f32.mrf.mxu0 }
 0x127   : > { %814 = vst.msk [vmem:[#allocation2 + $0x28] sm:$0xff] %vm740_vm1, %v708_v12  ;;  %v711_v15 = vmax.f32 %v565_v13, 0.0  ;;  %v560_v16 = vadd.f32 %v6742_v5, %v559_v14 }
 0x128   : > { %v5379_v18 = vpop.f32.mrf.mxu0 }
 0x129   : > { %817 = vst.msk [vmem:[#allocation2 + $0x50] sm:$0xff] %vm740_vm1, %v711_v15  ;;  %v710_v19 = vmax.f32 %v560_v16, 0.0  ;;  %v575_v20 = vadd.f32 %v5379_v18, %v6742_v5  ;;  %v1674_v15 = vrot.slane %v865_v4, 1 }
 0x12a   : > { %v569_v21 = vpop.f32.mrf.mxu0 }
 0x12b   : > { %816 = vst.msk [vmem:[#allocation2 + $0x48] sm:$0xff] %vm740_vm1, %v710_v19  ;;  %v713_v22 = vmax.f32 %v575_v20, 0.0  ;;  %v570_v23 = vadd.f32 %v6742_v5, %v569_v21  ;;  %v869_v20 = vld [vmem:[#allocation2 + $0xb8] sm:$0xff] }
 0x12c   : > { %v5382_v25 = vpop.f32.mrf.mxu0  ;;  %v6757_v26 = vld [vmem:[#allocation2 + $0x30] sm:$0xff] }
 0x12d   : > { %819 = vst.msk [vmem:[#allocation2 + $0x70] sm:$0xff] %vm740_vm1, %v713_v22  ;;  %v712_v27 = vmax.f32 %v570_v23, 0.0  ;;  %v585_v28 = vadd.f32 %v5382_v25, %v6742_v5  ;;  %v1657_v31 = vrot.slane %v6757_v26, 1 }
 0x12e   : > { %v579_v29 = vpop.f32.mrf.mxu0  ;;  %v6761_v30 = vld [vmem:[#allocation2 + $0x28] sm:$0xff] }
 0x12f   : > { %818 = vst.msk [vmem:[#allocation2 + $0x68] sm:$0xff] %vm740_vm1, %v712_v27  ;;  %v715_v33 = vmax.f32 %v585_v28, 0.0  ;;  %v580_v34 = vadd.f32 %v6742_v5, %v579_v29  ;;  %5430 = vmatprep.mubr.msk.f32.mxu1 %vm740_vm1, %v6761_v30  ;;  %v1656_v35 = vrot.slane %v6761_v30, 1  ;;  %v6783_v44 = vsel %vm1650_vm2, %v1657_v31, %v1659_v32 }
 0x130   : > { %v5385_v37 = vpop.f32.mrf.mxu0  ;;  %5431 = vmatmul.mubr.msk.f32.gmra.mxu1 %vm740_vm1, %v6757_v26  ;;  %v6771_v38 = vld [vmem:[#allocation2 + $0x50] sm:$0xff]  ;;  %v1679_v32 = vrot.slane %v869_v20, 1 }
 0x131   : > { %821 = vst.msk [vmem:[#allocation2 + $0x90] sm:$0xff] %vm740_vm1, %v715_v33  ;;  %v714_v39 = vmax.f32 %v580_v34, 0.0  ;;  %v595_v40 = vadd.f32 %v5385_v37, %v6742_v5  ;;  %v6776_v41 = vsel %vm1650_vm2, %v1656_v35, %v1657_v31  ;;  %v1662_v45 = vrot.slane %v6771_v38, 1 }
 0x132   : > { %v589_v42 = vpop.f32.mrf.mxu0  ;;  %5542 = vmatprep.mubr.msk.f32.mxu0 %vm740_vm1, %v6776_v41  ;;  %v6780_v43 = vld [vmem:[#allocation2 + $0x48] sm:$0xff] }
 0x133   : > { %820 = vst.msk [vmem:[#allocation2 + $0x88] sm:$0xff] %vm740_vm1, %v714_v39  ;;  %v717_v48 = vmax.f32 %v595_v40, 0.0  ;;  %v590_v49 = vadd.f32 %v6742_v5, %v589_v42  ;;  %5433 = vmatprep.mubr.msk.f32.mxu1 %vm740_vm1, %v6780_v43  ;;  %5543 = vmatmul.mubr.msk.f32.gmra.mxu0 %vm740_vm1, %v6783_v44  ;;  %v1661_v50 = vrot.slane %v6780_v43, 1  ;;  %v6807_v59 = vsel %vm1650_vm2, %v1662_v45, %v1664_v47 }
 0x134   : > { %v5388_v52 = vpop.f32.mrf.mxu0  ;;  %5434 = vmatmul.mubr.msk.f32.gmra.mxu1 %vm740_vm1, %v6771_v38  ;;  %v6795_v53 = vld [vmem:[#allocation2 + $0x70] sm:$0xff] }
 0x135   : > { %823 = vst.msk [vmem:[#allocation2 + $0xb0] sm:$0xff] %vm740_vm1, %v717_v48  ;;  %v716_v54 = vmax.f32 %v590_v49, 0.0  ;;  %v605_v55 = vadd.f32 %v5388_v52, %v6742_v5  ;;  %v6800_v56 = vsel %vm1650_vm2, %v1661_v50, %v1662_v45  ;;  %v1667_v60 = vrot.slane %v6795_v53, 1 }
 0x136   : > { %v599_v57 = vpop.f32.mrf.mxu0  ;;  %5545 = vmatprep.mubr.msk.f32.mxu0 %vm740_vm1, %v6800_v56  ;;  %v6804_v58 = vld [vmem:[#allocation2 + $0x68] sm:$0xff] }
 0x137   : > { %822 = vst.msk [vmem:[#allocation2 + $0xa8] sm:$0xff] %vm740_vm1, %v716_v54  ;;  %v719_v63 = vmax.f32 %v605_v55, 0.0  ;;  %v600_v0 = vadd.f32 %v6742_v5, %v599_v57  ;;  %5436 = vmatprep.mubr.msk.f32.mxu1 %vm740_vm1, %v6804_v58  ;;  %5546 = vmatmul.mubr.msk.f32.gmra.mxu0 %vm740_vm1, %v6807_v59  ;;  %v1666_v2 = vrot.slane %v6804_v58, 1  ;;  %v6831_v13 = vsel %vm1650_vm2, %v1667_v60, %v1669_v62  ;;  %v877_v57 = vld [vmem:[#allocation2 + $0xf8] sm:$0xff] }
 0x138   : > { %v5391_v6 = vpop.f32.mrf.mxu0  ;;  %5437 = vmatmul.mubr.msk.f32.gmra.mxu1 %vm740_vm1, %v6795_v53  ;;  %v6819_v7 = vld [vmem:[#allocation2 + $0x90] sm:$0xff] }
 0x139   : > { %825 = vst.msk [vmem:[#allocation2 + $0xd0] sm:$0xff] %vm740_vm1, %v719_v63  ;;  %v718_v8 = vmax.f32 %v600_v0, 0.0  ;;  %v615_v9 = vadd.f32 %v5391_v6, %v6742_v5  ;;  %v6824_v10 = vsel %vm1650_vm2, %v1666_v2, %v1667_v60  ;;  %v1672_v14 = vrot.slane %v6819_v7, 1 }
 0x13a   : > { %v609_v11 = vpop.f32.mrf.mxu0  ;;  %5548 = vmatprep.mubr.msk.f32.mxu0 %vm740_vm1, %v6824_v10  ;;  %v6828_v12 = vld [vmem:[#allocation2 + $0x88] sm:$0xff] }
 0x13b   : > { %824 = vst.msk [vmem:[#allocation2 + $0xc8] sm:$0xff] %vm740_vm1, %v718_v8  ;;  %v721_v16 = vmax.f32 %v615_v9, 0.0  ;;  %v610_v18 = vadd.f32 %v6742_v5, %v609_v11  ;;  %5439 = vmatprep.mubr.msk.f32.mxu1 %vm740_vm1, %v6828_v12  ;;  %5549 = vmatmul.mubr.msk.f32.gmra.mxu0 %vm740_vm1, %v6831_v13  ;;  %v1671_v19 = vrot.slane %v6828_v12, 1  ;;  %v6855_v29 = vsel %vm1650_vm2, %v1672_v14, %v1674_v15 }
 0x13c   : > { %v5394_v21 = vpop.f32.mrf.mxu0  ;;  %5440 = vmatmul.mubr.msk.f32.gmra.mxu1 %vm740_vm1, %v6819_v7  ;;  %v6843_v22 = vld [vmem:[#allocation2 + $0xb0] sm:$0xff]  ;;  %v1689_v11 = vrot.slane %v877_v57, 1 }
 0x13d   : > { %827 = vst.msk [vmem:[#allocation2 + $0xf0] sm:$0xff] %vm740_vm1, %v721_v16  ;;  %v720_v23 = vmax.f32 %v610_v18, 0.0  ;;  %v625_v24 = vadd.f32 %v5394_v21, %v6742_v5  ;;  %v6848_v25 = vsel %vm1650_vm2, %v1671_v19, %v1672_v14  ;;  %v1677_v31 = vrot.slane %v6843_v22, 1  ;;  %v881_v18 = vld [vmem:[#allocation2 + $0x118] sm:$0xff] }
 0x13e   : > { %v619_v27 = vpop.f32.mrf.mxu0  ;;  %5551 = vmatprep.mubr.msk.f32.mxu0 %vm740_vm1, %v6848_v25  ;;  %v6852_v28 = vld [vmem:[#allocation2 + $0xa8] sm:$0xff] }
 0x13f   : > { %826 = vst.msk [vmem:[#allocation2 + $0xe8] sm:$0xff] %vm740_vm1, %v720_v23  ;;  %v723_v33 = vmax.f32 %v625_v24, 0.0  ;;  %v620_v34 = vadd.f32 %v6742_v5, %v619_v27  ;;  %5442 = vmatprep.mubr.msk.f32.mxu1 %vm740_vm1, %v6852_v28  ;;  %5552 = vmatmul.mubr.msk.f32.gmra.mxu0 %vm740_vm1, %v6855_v29  ;;  %v1676_v35 = vrot.slane %v6852_v28, 1  ;;  %v6879_v49 = vsel %vm1650_vm2, %v1677_v31, %v1679_v32 }
 0x140   : > { %v5397_v37 = vpop.f32.mrf.mxu0  ;;  %5443 = vmatmul.mubr.msk.f32.gmra.mxu1 %vm740_vm1, %v6843_v22  ;;  %v6867_v39 = vld [vmem:[#allocation2 + $0xd0] sm:$0xff] }
 0x141   : > { %829 = vst.msk [vmem:[#allocation2 + $0x110] sm:$0xff] %vm740_vm1, %v723_v33  ;;  %v722_v40 = vmax.f32 %v620_v34, 0.0  ;;  %v635_v42 = vadd.f32 %v5397_v37, %v6742_v5  ;;  %v6872_v45 = vsel %vm1650_vm2, %v1676_v35, %v1677_v31  ;;  %v1682_v50 = vrot.slane %v6867_v39, 1 }
 0x142   : > { %v629_v47 = vpop.f32.mrf.mxu0  ;;  %5554 = vmatprep.mubr.msk.f32.mxu0 %vm740_vm1, %v6872_v45  ;;  %v6876_v48 = vld [vmem:[#allocation2 + $0xc8] sm:$0xff]  ;;  %v1694_v34 = vrot.slane %v881_v18, 1 }
 0x143   : > { %828 = vst.msk [vmem:[#allocation2 + $0x108] sm:$0xff] %vm740_vm1, %v722_v40  ;;  %v725_v52 = vmax.f32 %v635_v42, 0.0  ;;  %v630_v54 = vadd.f32 %v6742_v5, %v629_v47  ;;  %5445 = vmatprep.mubr.msk.f32.mxu1 %vm740_vm1, %v6876_v48  ;;  %5555 = vmatmul.mubr.msk.f32.gmra.mxu0 %vm740_vm1, %v6879_v49  ;;  %v1681_v55 = vrot.slane %v6876_v48, 1  ;;  %v6903_v8 = vsel %vm1650_vm2, %v1682_v50, %v1684_v51  ;;  %v885_v40 = vld [vmem:[#allocation2 + $0x138] sm:$0xff] }
 0x144   : > { %v5400_v60 = vpop.f32.mrf.mxu0  ;;  %5446 = vmatmul.mubr.msk.f32.gmra.mxu1 %vm740_vm1, %v6867_v39  ;;  %v6891_v62 = vld [vmem:[#allocation2 + $0xf0] sm:$0xff] }
 0x145   : > { %831 = vst.msk [vmem:[#allocation2 + $0x130] sm:$0xff] %vm740_vm1, %v725_v52  ;;  %v724_v63 = vmax.f32 %v630_v54, 0.0  ;;  %v645_v0 = vadd.f32 %v5400_v60, %v6742_v5  ;;  %v6896_v2 = vsel %vm1650_vm2, %v1681_v55, %v1682_v50  ;;  %v1687_v9 = vrot.slane %v6891_v62, 1 }
 0x146   : > { %v639_v4 = vpop.f32.mrf.mxu0  ;;  %5557 = vmatprep.mubr.msk.f32.mxu0 %vm740_vm1, %v6896_v2  ;;  %v6900_v6 = vld [vmem:[#allocation2 + $0xe8] sm:$0xff] }
 0x147   : > { %830 = vst.msk [vmem:[#allocation2 + $0x128] sm:$0xff] %vm740_vm1, %v724_v63  ;;  %v727_v14 = vmax.f32 %v645_v0, 0.0  ;;  %v640_v15 = vadd.f32 %v6742_v5, %v639_v4  ;;  %5448 = vmatprep.mubr.msk.f32.mxu1 %vm740_vm1, %v6900_v6  ;;  %5558 = vmatmul.mubr.msk.f32.gmra.mxu0 %vm740_vm1, %v6903_v8  ;;  %v1686_v16 = vrot.slane %v6900_v6, 1  ;;  %v6927_v32 = vsel %vm1650_vm2, %v1687_v9, %v1689_v11  ;;  %v889_v11 = vld [vmem:[#allocation2 + $0x158] sm:$0xff] }
 0x148   : > { %v5403_v19 = vpop.f32.mrf.mxu0  ;;  %5449 = vmatmul.mubr.msk.f32.gmra.mxu1 %vm740_vm1, %v6891_v62  ;;  %v6915_v20 = vld [vmem:[#allocation2 + $0x110] sm:$0xff]  ;;  %v1699_v63 = vrot.slane %v885_v40, 1  ;;  %v893_v40 = vld [vmem:[#allocation2 + $0x178] sm:$0xff] }
 0x149   : > { %833 = vst.msk [vmem:[#allocation2 + $0x150] sm:$0xff] %vm740_vm1, %v727_v14  ;;  %v726_v21 = vmax.f32 %v640_v15, 0.0  ;;  %v655_v23 = vadd.f32 %v5403_v19, %v6742_v5  ;;  %v6920_v24 = vsel %vm1650_vm2, %v1686_v16, %v1687_v9  ;;  %v1692_v33 = vrot.slane %v6915_v20, 1 }
 0x14a   : > { %v649_v27 = vpop.f32.mrf.mxu0  ;;  %5560 = vmatprep.mubr.msk.f32.mxu0 %vm740_vm1, %v6920_v24  ;;  %v6924_v31 = vld [vmem:[#allocation2 + $0x108] sm:$0xff] }
 0x14b   : > { %832 = vst.msk [vmem:[#allocation2 + $0x148] sm:$0xff] %vm740_vm1, %v726_v21  ;;  %v729_v35 = vmax.f32 %v655_v23, 0.0  ;;  %v650_v36 = vadd.f32 %v6742_v5, %v649_v27  ;;  %5451 = vmatprep.mubr.msk.f32.mxu1 %vm740_vm1, %v6924_v31  ;;  %5561 = vmatmul.mubr.msk.f32.gmra.mxu0 %vm740_vm1, %v6927_v32  ;;  %v1691_v37 = vrot.slane %v6924_v31, 1  ;;  %v6951_v57 = vsel %vm1650_vm2, %v1692_v33, %v1694_v34 }
 0x14c   : > { %v5406_v42 = vpop.f32.mrf.mxu0  ;;  %5452 = vmatmul.mubr.msk.f32.gmra.mxu1 %vm740_vm1, %v6915_v20  ;;  %v6939_v47 = vld [vmem:[#allocation2 + $0x130] sm:$0xff]  ;;  %v1704_v34 = vrot.slane %v889_v11, 1  ;;  %v1709_v11 = vrot.slane %v893_v40, 1 }
 0x14d   : > { %835 = vst.msk [vmem:[#allocation2 + $0x170] sm:$0xff] %vm740_vm1, %v729_v35  ;;  %v728_v50 = vmax.f32 %v650_v36, 0.0  ;;  %v665_v51 = vadd.f32 %v5406_v42, %v6742_v5  ;;  %v6944_v52 = vsel %vm1650_vm2, %v1691_v37, %v1692_v33  ;;  %v1697_v60 = vrot.slane %v6939_v47, 1 }
 0x14e   : > { %v659_v54 = vpop.f32.mrf.mxu0  ;;  %5563 = vmatprep.mubr.msk.f32.mxu0 %vm740_vm1, %v6944_v52  ;;  %v6948_v55 = vld [vmem:[#allocation2 + $0x128] sm:$0xff] }
 0x14f   : > { %834 = vst.msk [vmem:[#allocation2 + $0x168] sm:$0xff] %vm740_vm1, %v728_v50  ;;  %v731_v0 = vmax.f32 %v665_v51, 0.0  ;;  %v660_v4 = vadd.f32 %v6742_v5, %v659_v54  ;;  %5454 = vmatprep.mubr.msk.f32.mxu1 %vm740_vm1, %v6948_v55  ;;  %5564 = vmatmul.mubr.msk.f32.gmra.mxu0 %vm740_vm1, %v6951_v57  ;;  %v1696_v9 = vrot.slane %v6948_v55, 1  ;;  %v6975_v27 = vsel %vm1650_vm2, %v1697_v60, %v1699_v63 }
 0x150   : > { %v5409_v14 = vpop.f32.mrf.mxu0  ;;  %5455 = vmatmul.mubr.msk.f32.gmra.mxu1 %vm740_vm1, %v6939_v47  ;;  %v6963_v15 = vld [vmem:[#allocation2 + $0x150] sm:$0xff] }
 0x151   : > { %837 = vst.msk [vmem:[#allocation2 + $0x190] sm:$0xff] %vm740_vm1, %v731_v0  ;;  %v730_v16 = vmax.f32 %v660_v4, 0.0  ;;  %v675_v18 = vadd.f32 %v5409_v14, %v6742_v5  ;;  %v6968_v19 = vsel %vm1650_vm2, %v1696_v9, %v1697_v60  ;;  %v1702_v33 = vrot.slane %v6963_v15, 1 }
 0x152   : > { %v669_v21 = vpop.f32.mrf.mxu0  ;;  %5566 = vmatprep.mubr.msk.f32.mxu0 %vm740_vm1, %v6968_v19  ;;  %v6972_v23 = vld [vmem:[#allocation2 + $0x148] sm:$0xff] }
 0x153   : > { %836 = vst.msk [vmem:[#allocation2 + $0x188] sm:$0xff] %vm740_vm1, %v730_v16  ;;  %v733_v35 = vmax.f32 %v675_v18, 0.0  ;;  %v670_v36 = vadd.f32 %v6742_v5, %v669_v21  ;;  %5457 = vmatprep.mubr.msk.f32.mxu1 %vm740_vm1, %v6972_v23  ;;  %5567 = vmatmul.mubr.msk.f32.gmra.mxu0 %vm740_vm1, %v6975_v27  ;;  %v1701_v37 = vrot.slane %v6972_v23, 1  ;;  %v6999_v4 = vsel %vm1650_vm2, %v1702_v33, %v1704_v34  ;;  %v897_v21 = vld [vmem:[#allocation2 + $0x198] sm:$0xff] }
 0x154   : > { %v5412_v42 = vpop.f32.mrf.mxu0  ;;  %5458 = vmatmul.mubr.msk.f32.gmra.mxu1 %vm740_vm1, %v6963_v15  ;;  %v6987_v50 = vld [vmem:[#allocation2 + $0x170] sm:$0xff]  ;;  %8801 = vst [vmem:[#allocation14_spill] sm:$0xff] %v6999_v4 }
 0x155   : > { %839 = vst.msk [vmem:[#allocation2 + $0x1b0] sm:$0xff] %vm740_vm1, %v733_v35  ;;  %v732_v51 = vmax.f32 %v670_v36, 0.0  ;;  %v685_v54 = vadd.f32 %v5412_v42, %v6742_v5  ;;  %v6992_v60 = vsel %vm1650_vm2, %v1701_v37, %v1702_v33  ;;  %v1707_v9 = vrot.slane %v6987_v50, 1 }
 0x156   : > { %8800 = vst [vmem:[#allocation13_spill] sm:$0xff] %v6992_v60  ;;  %v679_v63 = vpop.f32.mrf.mxu0  ;;  %5569 = vmatprep.mubr.msk.f32.mxu0 %vm740_vm1, %v6992_v60  ;;  %v6996_v0 = vld [vmem:[#allocation2 + $0x168] sm:$0xff] }
 0x157   : > { %838 = vst.msk [vmem:[#allocation2 + $0x1a8] sm:$0xff] %vm740_vm1, %v732_v51  ;;  %v735_v14 = vmax.f32 %v685_v54, 0.0  ;;  %v680_v16 = vadd.f32 %v6742_v5, %v679_v63  ;;  %5460 = vmatprep.mubr.msk.f32.mxu1 %vm740_vm1, %v6996_v0  ;;  %5570 = vmatmul.mubr.msk.f32.gmra.mxu0 %vm740_vm1, %v6999_v4  ;;  %v1706_v18 = vrot.slane %v6996_v0, 1  ;;  %v7023_v51 = vsel %vm1650_vm2, %v1707_v9, %v1709_v11 }
 0x158   : > { %v5415_v35 = vpop.f32.mrf.mxu0  ;;  %5461 = vmatmul.mubr.msk.f32.gmra.mxu1 %vm740_vm1, %v6987_v50  ;;  %v7011_v33 = vld [vmem:[#allocation2 + $0x190] sm:$0xff]  ;;  %8803 = vst [vmem:[#allocation16_spill] sm:$0xff] %v7023_v51  ;;  %v1714_v63 = vrot.slane %v897_v21, 1 }
 0x159   : > { %841 = vst.msk [vmem:[#allocation2 + $0x1d0] sm:$0xff] %vm740_vm1, %v735_v14  ;;  %v734_v34 = vmax.f32 %v680_v16, 0.0  ;;  %v695_v36 = vadd.f32 %v5415_v35, %v6742_v5  ;;  %v7016_v37 = vsel %vm1650_vm2, %v1706_v18, %v1707_v9  ;;  %v1712_v54 = vrot.slane %v7011_v33, 1  ;;  %v901_v35 = vld [vmem:[#allocation2 + $0x1b8] sm:$0xff] }
 0x15a   : > { %8802 = vst [vmem:[#allocation15_spill] sm:$0xff] %v7016_v37  ;;  %v689_v40 = vpop.f32.mrf.mxu0  ;;  %5572 = vmatprep.mubr.msk.f32.mxu0 %vm740_vm1, %v7016_v37  ;;  %v7020_v42 = vld [vmem:[#allocation2 + $0x188] sm:$0xff]  ;;  %v1719_v37 = vrot.slane %v901_v35, 1 }
 0x15b   : > { %840 = vst.msk [vmem:[#allocation2 + $0x1c8] sm:$0xff] %vm740_vm1, %v734_v34  ;;  %v737_v14 = vmax.f32 %v695_v36, 0.0  ;;  %v690_v16 = vadd.f32 %v6742_v5, %v689_v40  ;;  %5463 = vmatprep.mubr.msk.f32.mxu1 %vm740_vm1, %v7020_v42  ;;  %5573 = vmatmul.mubr.msk.f32.gmra.mxu0 %vm740_vm1, %v7023_v51  ;;  %v1711_v18 = vrot.slane %v7020_v42, 1  ;;  %v7047_v61 = vsel %vm1650_vm2, %v1712_v54, %v1714_v63 }
 0x15c   : > { %5464 = vmatmul.mubr.msk.f32.gmra.mxu1 %vm740_vm1, %v7011_v33  ;;  %v7035_v9 = vld [vmem:[#allocation2 + $0x1b0] sm:$0xff]  ;;  %v5418_v11 = vpop.f32.mrf.mxu0  ;;  %8805 = vst [vmem:[#allocation18_spill] sm:$0xff] %v7047_v61 }
 0x15d   : > { %843 = vst.msk [vmem:[#allocation2 + $0x1f0] sm:$0xff] %vm740_vm1, %v737_v14  ;;  %v736_v21 = vmax.f32 %v690_v16, 0.0  ;;  %v7039_v34 = vsel %vm1650_vm2, %v1711_v18, %v1712_v54  ;;  %v705_v36 = vadd.f32 %v5418_v11, %v6742_v5  ;;  %v1717_v51 = vrot.slane %v7035_v9, 1  ;;  %v905_v16 = vld [vmem:[#allocation2 + $0x1d8] sm:$0xff]  ;;  %v846_v18 = vld [vmem:[#allocation2] sm:$0xff] }
 0x15e   : > { %8804 = vst [vmem:[#allocation17_spill] sm:$0xff] %v7039_v34  ;;  %5575 = vmatprep.mubr.msk.f32.mxu0 %vm740_vm1, %v7039_v34  ;;  %v7044_v40 = vld [vmem:[#allocation2 + $0x1a8] sm:$0xff]  ;;  %v699_v4 = vpop.f32.mrf.mxu0  ;;  %v967_v34 = vrot.slane %v846_v18, 7 }
 0x15f   : > { %842 = vst.msk [vmem:[#allocation2 + $0x1e8] sm:$0xff] %vm740_vm1, %v736_v21  ;;  %5466 = vmatprep.mubr.msk.f32.mxu1 %vm740_vm1, %v7044_v40  ;;  %5576 = vmatmul.mubr.msk.f32.gmra.mxu0 %vm740_vm1, %v7047_v61  ;;  %v1716_v14 = vrot.slane %v7044_v40, 1  ;;  %v739_v11 = vmax.f32 %v705_v36, 0.0  ;;  %v700_v54 = vadd.f32 %v6742_v5, %v699_v4  ;;  %v7070_v36 = vsel %vm1650_vm2, %v1717_v51, %v1719_v37 }
 0x160   : > { %5467 = vmatmul.mubr.msk.f32.gmra.mxu1 %vm740_vm1, %v7035_v9  ;;  %v7059_v63 = vld [vmem:[#allocation2 + $0x1d0] sm:$0xff]  ;;  %8807 = vst [vmem:[#allocation20_spill] sm:$0xff] %v7070_v36  ;;  %v1724_v4 = vrot.slane %v905_v16, 1  ;;  %v850_v16 = vld [vmem:[#allocation2 + $0x20] sm:$0xff] }
 0x161   : > { %v7062_v35 = vsel %vm1650_vm2, %v1716_v14, %v1717_v51  ;;  %845 = vst.msk [vmem:[#allocation2 + $0x210] sm:$0xff] %vm740_vm1, %v739_v11  ;;  %v738_v21 = vmax.f32 %v700_v54, 0.0  ;;  %v1722_v5 = vrot.slane %v7059_v63, 1  ;;  %v909_v11 = vld [vmem:[#allocation2 + $0x1f8] sm:$0xff] }
 0x162   : > { %8806 = vst [vmem:[#allocation19_spill] sm:$0xff] %v7062_v35  ;;  %5578 = vmatprep.mubr.msk.f32.mxu0 %vm740_vm1, %v7062_v35  ;;  %v7067_v61 = vld [vmem:[#allocation2 + $0x1c8] sm:$0xff]  ;;  %v1729_v60 = vrot.slane %v909_v11, 1  ;;  %v2068_v11 = vld [vmem:[#allocation6 + $0x70] sm:$0xff] }
 0x163   : > { %5469 = vmatprep.mubr.msk.f32.mxu1 %vm740_vm1, %v7067_v61  ;;  %5579 = vmatmul.mubr.msk.f32.gmra.mxu0 %vm740_vm1, %v7070_v36  ;;  %v1721_v14 = vrot.slane %v7067_v61, 1  ;;  %844 = vst.msk [vmem:[#allocation2 + $0x208] sm:$0xff] %vm740_vm1, %v738_v21  ;;  %v7091_v54 = vsel %vm1650_vm2, %v1722_v5, %v1724_v4  ;;  %v8809_v21 = vrot.slane %v6720_v46, 7  ;;  %v854_v46 = vld [vmem:[#allocation2 + $0x40] sm:$0xff] }
 0x164   : > { %5470 = vmatmul.mubr.msk.f32.gmra.mxu1 %vm740_vm1, %v7059_v63  ;;  %v7081_v37 = vld [vmem:[#allocation2 + $0x1f0] sm:$0xff] }
 0x165   : > { %v7084_v51 = vsel %vm1650_vm2, %v1721_v14, %v1722_v5  ;;  %v1727_v36 = vrot.slane %v7081_v37, 1  ;;  %v969_v35 = vsel %vm966_vm3, %v967_v34, %v8809_v21  ;;  %v972_v5 = vrot.slane %v850_v16, 7 }
 0x166   : > { %8808 = vst [vmem:[#allocation21_spill] sm:$0xff] %v7084_v51  ;;  %5581 = vmatprep.mubr.msk.f32.mxu0 %vm740_vm1, %v7084_v51  ;;  %v7088_v18 = vld [vmem:[#allocation2 + $0x1e8] sm:$0xff]  ;;  %v973_v51 = vrot.slane %v6761_v30, 7  ;;  %v978_v21 = vrot.slane %v6780_v43, 7 }
 0x167   : > { %5472 = vmatprep.mubr.msk.f32.mxu1 %vm740_vm1, %v7088_v18  ;;  %5582 = vmatmul.mubr.msk.f32.gmra.mxu0 %vm740_vm1, %v7091_v54  ;;  %v1726_v14 = vrot.slane %v7088_v18, 1  ;;  %v7112_v34 = vsel %vm1650_vm2, %v1727_v36, %v1729_v60  ;;  %v858_v60 = vld [vmem:[#allocation2 + $0x60] sm:$0xff] }
 0x168   : > { %5473 = vmatmul.mubr.msk.f32.gmra.mxu1 %vm740_vm1, %v7081_v37  ;;  %v7121_v16 = vsel %vm966_vm3, %v972_v5, %v973_v51  ;;  %v983_v5 = vrot.slane %v6804_v58, 7 }
 0x169   : > { %v7106_v4 = vsel %vm1650_vm2, %v1726_v14, %v1727_v36  ;;  %5483 = vmatprep.mubr.msk.f32.mxu1 %vm740_vm1, %v969_v35  ;;  %v977_v35 = vrot.slane %v854_v46, 7  ;;  %v975_v14 = vrot.slane %v6757_v26, 7  ;;  %v2067_v36 = vld [vmem:[#allocation6 + $0x68] sm:$0xff]  ;;  %v2066_v46 = vld [vmem:[#allocation6 + $0x60] sm:$0xff] }
 0x16a   : > { %5584 = vmatprep.mubr.msk.f32.mxu0 %vm740_vm1, %v7106_v4 }
 0x16b   : > { %5585 = vmatmul.mubr.msk.f32.gmra.mxu0 %vm740_vm1, %v7112_v34 }
 0x16c   : > { %5484 = vmatmul.mubr.msk.f32.vlgmr.msra.gmra.mxu1 %vm740_vm1, %v6736_v3  ;;  %5651 = vmatprep.mubr.msk.f32.mxu0 %vm740_vm1, %v6761_v30  ;;  %v7131_v3 = vsel %vm966_vm3, %v973_v51, %v975_v14  ;;  %v982_v30 = vrot.slane %v858_v60, 7  ;;  %v862_v51 = vld [vmem:[#allocation2 + $0x80] sm:$0xff]  ;;  %v988_v60 = vrot.slane %v6828_v12, 7 }
 0x16d   : > { %5588 = vmatpush3.msra.mxu1 %v6731_v1  ;;  %5486 = vmatprep.mubr.msk.f32.mxu1 %vm740_vm1, %v7121_v16  ;;  %v7138_v1 = vsel %vm966_vm3, %v977_v35, %v978_v21  ;;  %v7150_v35 = vld [vmem:[#allocation6 + $0xb8] sm:$0xff] }
 0x16e   : > { %5589 = vmatprep.subr.mxu1 %v2068_v11  ;;  %v7157_v14 = vsel %vm966_vm3, %v982_v30, %v983_v5 }
 0x16f   : > { %5652 = vmatmul.mubr.msk.f32.vlgmr.msra.gmra.mxu0 %vm740_vm1, %v6757_v26  ;;  %5590 = vmatpush3.msra.mxu1 %v2068_v11  ;;  %v980_v26 = vrot.slane %v6771_v38, 7  ;;  %v2880_v11 = vld [vmem:[#allocation6 + $0xd0] sm:$0xff] }
 0x170   : > { %5487 = vmatmul.mubr.msk.f32.gmra.mxu1 %vm740_vm1, %v7131_v3  ;;  %5654 = vmatprep.mubr.msk.f32.mxu0 %vm740_vm1, %v6780_v43 }
 0x171   : > { %5489 = vmatprep.mubr.msk.f32.mxu1 %vm740_vm1, %v7138_v1  ;;  %5591 = vmatprep.subr.mxu1 %v2067_v36  ;;  %v7148_v43 = vsel %vm966_vm3, %v978_v21, %v980_v26  ;;  %v866_v21 = vld [vmem:[#allocation2 + $0xa0] sm:$0xff]  ;;  %v993_v26 = vrot.slane %v6852_v28, 7 }
 0x172   : > { %5592 = vmatpush3.msra.mxu1 %v2067_v36  ;;  %5756 = vmatpush3.msra.mxu0 %v6750_v17  ;;  %v987_v17 = vrot.slane %v862_v51, 7  ;;  %v2879_v36 = vld [vmem:[#allocation6 + $0xc8] sm:$0xff] }
 0x173   : > { %5655 = vmatmul.mubr.msk.f32.gmra.mxu0 %vm740_vm1, %v6771_v38  ;;  %5593 = vmatprep.subr.mxu1 %v2066_v46  ;;  %v985_v38 = vrot.slane %v6795_v53, 7 }
 0x174   : > { %5490 = vmatmul.mubr.msk.f32.gmra.mxu1 %vm740_vm1, %v7148_v43  ;;  %5657 = vmatprep.mubr.msk.f32.mxu0 %vm740_vm1, %v6804_v58  ;;  %v7174_v30 = vsel %vm966_vm3, %v987_v17, %v988_v60 }
 0x175   : > { %5492 = vmatprep.mubr.msk.f32.mxu1 %vm740_vm1, %v7157_v14  ;;  %5594 = vmatpush3.msra.mxu1 %v2066_v46  ;;  %v7167_v58 = vsel %vm966_vm3, %v983_v5, %v985_v38  ;;  %v992_v46 = vrot.slane %v866_v21, 7  ;;  %v870_v5 = vld [vmem:[#allocation2 + $0xc0] sm:$0xff] }
 0x176   : > { %5757 = vmatprep.subr.mxu0 %v2880_v11  ;;  %5699 = vmatprep.subr.mxu1 %v7150_v35  ;;  %v997_v38 = vrot.slane %v870_v5, 7 }
 0x177   : > { %5658 = vmatmul.mubr.msk.f32.gmra.mxu0 %vm740_vm1, %v6795_v53  ;;  %v990_v53 = vrot.slane %v6819_v7, 7  ;;  %v7190_v17 = vsel %vm966_vm3, %v992_v46, %v993_v26 }
 0x178   : > { %5493 = vmatmul.mubr.msk.f32.gmra.mxu1 %vm740_vm1, %v7167_v58  ;;  %5660 = vmatprep.mubr.msk.f32.mxu0 %vm740_vm1, %v6828_v12  ;;  %v2878_v12 = vld [vmem:[#allocation6 + $0xc0] sm:$0xff] }
 0x179   : > { %5495 = vmatprep.mubr.msk.f32.mxu1 %vm740_vm1, %v7174_v30  ;;  %5758 = vmatpush3.msra.mxu0 %v2880_v11  ;;  %v7183_v51 = vsel %vm966_vm3, %v988_v60, %v990_v53  ;;  %v998_v11 = vrot.slane %v6876_v48, 7  ;;  %v874_v60 = vld [vmem:[#allocation2 + $0xe0] sm:$0xff] }
 0x17a   : > { %5759 = vmatprep.subr.mxu0 %v2879_v36  ;;  %v1002_v53 = vrot.slane %v874_v60, 7 }
 0x17b   : > { %5661 = vmatmul.mubr.msk.f32.gmra.mxu0 %vm740_vm1, %v6819_v7  ;;  %v995_v7 = vrot.slane %v6843_v22, 7  ;;  %v7208_v46 = vsel %vm966_vm3, %v997_v38, %v998_v11 }
 0x17c   : > { %5496 = vmatmul.mubr.msk.f32.gmra.mxu1 %vm740_vm1, %v7183_v51  ;;  %5663 = vmatprep.mubr.msk.f32.mxu0 %vm740_vm1, %v6852_v28  ;;  %v7201_v28 = vld [vmem:[#allocation6 + $0x118] sm:$0xff] }
 0x17d   : > { %5498 = vmatprep.mubr.msk.f32.mxu1 %vm740_vm1, %v7190_v17  ;;  %5760 = vmatpush3.msra.mxu0 %v2879_v36  ;;  %v7199_v21 = vsel %vm966_vm3, %v993_v26, %v995_v7  ;;  %v1003_v36 = vrot.slane %v6900_v6, 7  ;;  %v878_v26 = vld [vmem:[#allocation2 + $0x100] sm:$0xff] }
 0x17e   : > { %5761 = vmatprep.subr.mxu0 %v2878_v12  ;;  %v1007_v38 = vrot.slane %v878_v26, 7  ;;  %v882_v7 = vld [vmem:[#allocation2 + $0x120] sm:$0xff] }
 0x17f   : > { %5664 = vmatmul.mubr.msk.f32.gmra.mxu0 %vm740_vm1, %v6843_v22  ;;  %v1000_v22 = vrot.slane %v6867_v39, 7  ;;  %v7225_v5 = vsel %vm966_vm3, %v1002_v53, %v1003_v36  ;;  %v1012_v60 = vrot.slane %v882_v7, 7  ;;  %v1013_v53 = vrot.slane %v6948_v55, 7 }
 0x180   : > { %5499 = vmatmul.mubr.msk.f32.gmra.mxu1 %vm740_vm1, %v7199_v21  ;;  %5666 = vmatprep.mubr.msk.f32.mxu0 %vm740_vm1, %v6876_v48 }
 0x181   : > { %5501 = vmatprep.mubr.msk.f32.mxu1 %vm740_vm1, %v7208_v46  ;;  %5762 = vmatpush3.msra.mxu0 %v2878_v12  ;;  %v7218_v48 = vsel %vm966_vm3, %v998_v11, %v1000_v22  ;;  %v1008_v12 = vrot.slane %v6924_v31, 7  ;;  %v886_v22 = vld [vmem:[#allocation2 + $0x140] sm:$0xff] }
 0x182   : > { %5867 = vmatprep.subr.mxu0 %v7201_v28  ;;  %v1017_v26 = vrot.slane %v886_v22, 7 }
 0x183   : > { %5667 = vmatmul.mubr.msk.f32.gmra.mxu0 %vm740_vm1, %v6867_v39  ;;  %v1005_v39 = vrot.slane %v6891_v62, 7 }
 0x184   : > { %5502 = vmatmul.mubr.msk.f32.gmra.mxu1 %vm740_vm1, %v7218_v48  ;;  %5669 = vmatprep.mubr.msk.f32.mxu0 %vm740_vm1, %v6900_v6  ;;  %v7241_v6 = vsel %vm966_vm3, %v1007_v38, %v1008_v12  ;;  %v1018_v38 = vrot.slane %v6972_v23, 7 }
 0x185   : > { %5504 = vmatprep.mubr.msk.f32.mxu1 %vm740_vm1, %v7225_v5  ;;  %v7234_v11 = vsel %vm966_vm3, %v1003_v36, %v1005_v39  ;;  %v890_v39 = vld [vmem:[#allocation2 + $0x160] sm:$0xff] }
 0x186   : > { %v1022_v7 = vrot.slane %v890_v39, 7 }
 0x187   : > { %5670 = vmatmul.mubr.msk.f32.gmra.mxu0 %vm740_vm1, %v6891_v62  ;;  %v1010_v62 = vrot.slane %v6915_v20, 7 }
 0x188   : > { %5505 = vmatmul.mubr.msk.f32.gmra.mxu1 %vm740_vm1, %v7234_v11  ;;  %5672 = vmatprep.mubr.msk.f32.mxu0 %vm740_vm1, %v6924_v31  ;;  %v7257_v31 = vsel %vm966_vm3, %v1012_v60, %v1013_v53  ;;  %v1023_v60 = vrot.slane %v6996_v0, 7 }
 0x189   : > { %5507 = vmatprep.mubr.msk.f32.mxu1 %vm740_vm1, %v7241_v6  ;;  %v7250_v36 = vsel %vm966_vm3, %v1008_v12, %v1010_v62  ;;  %v894_v62 = vld [vmem:[#allocation2 + $0x180] sm:$0xff] }
 0x18a   : > { %v1027_v22 = vrot.slane %v894_v62, 7 }
 0x18b   : > { %5673 = vmatmul.mubr.msk.f32.gmra.mxu0 %vm740_vm1, %v6915_v20  ;;  %v1015_v20 = vrot.slane %v6939_v47, 7 }
 0x18c   : > { %5508 = vmatmul.mubr.msk.f32.gmra.mxu1 %vm740_vm1, %v7250_v36  ;;  %5675 = vmatprep.mubr.msk.f32.mxu0 %vm740_vm1, %v6948_v55  ;;  %v7273_v55 = vsel %vm966_vm3, %v1017_v26, %v1018_v38  ;;  %v1028_v26 = vrot.slane %v7020_v42, 7 }
 0x18d   : > { %5510 = vmatprep.mubr.msk.f32.mxu1 %vm740_vm1, %v7257_v31  ;;  %v7266_v12 = vsel %vm966_vm3, %v1013_v53, %v1015_v20  ;;  %v898_v20 = vld [vmem:[#allocation2 + $0x1a0] sm:$0xff] }
 0x18e   : > { %v1032_v39 = vrot.slane %v898_v20, 7 }
 0x18f   : > { %5676 = vmatmul.mubr.msk.f32.gmra.mxu0 %vm740_vm1, %v6939_v47  ;;  %v1020_v47 = vrot.slane %v6963_v15, 7 }
 0x190   : > { %5511 = vmatmul.mubr.msk.f32.gmra.mxu1 %vm740_vm1, %v7266_v12  ;;  %5678 = vmatprep.mubr.msk.f32.mxu0 %vm740_vm1, %v6972_v23  ;;  %v7289_v23 = vsel %vm966_vm3, %v1022_v7, %v1023_v60  ;;  %v1033_v7 = vrot.slane %v7044_v40, 7 }
 0x191   : > { %5513 = vmatprep.mubr.msk.f32.mxu1 %vm740_vm1, %v7273_v55  ;;  %v7282_v53 = vsel %vm966_vm3, %v1018_v38, %v1020_v47  ;;  %v902_v47 = vld [vmem:[#allocation2 + $0x1c0] sm:$0xff] }
 0x192   : > { %v1037_v62 = vrot.slane %v902_v47, 7  ;;  %v7358_v47 = vld [vmem:[#allocation2 + $0x208] sm:$0xff] }
 0x193   : > { %5679 = vmatmul.mubr.msk.f32.gmra.mxu0 %vm740_vm1, %v6963_v15  ;;  %v1025_v15 = vrot.slane %v6987_v50, 7 }
 0x194   : > { %5514 = vmatmul.mubr.msk.f32.gmra.mxu1 %vm740_vm1, %v7282_v53  ;;  %5681 = vmatprep.mubr.msk.f32.mxu0 %vm740_vm1, %v6996_v0  ;;  %v7305_v0 = vsel %vm966_vm3, %v1027_v22, %v1028_v26  ;;  %v1038_v22 = vrot.slane %v7067_v61, 7 }
 0x195   : > { %5516 = vmatprep.mubr.msk.f32.mxu1 %vm740_vm1, %v7289_v23  ;;  %v7298_v38 = vsel %vm966_vm3, %v1023_v60, %v1025_v15  ;;  %v906_v15 = vld [vmem:[#allocation2 + $0x1e0] sm:$0xff] }
 0x196   : > { %v1042_v20 = vrot.slane %v906_v15, 7 }
 0x197   : > { %5682 = vmatmul.mubr.msk.f32.gmra.mxu0 %vm740_vm1, %v6987_v50  ;;  %v1030_v50 = vrot.slane %v7011_v33, 7 }
 0x198   : > { %5517 = vmatmul.mubr.msk.f32.gmra.mxu1 %vm740_vm1, %v7298_v38  ;;  %5684 = vmatprep.mubr.msk.f32.mxu0 %vm740_vm1, %v7020_v42  ;;  %v7321_v42 = vsel %vm966_vm3, %v1032_v39, %v1033_v7  ;;  %v1043_v39 = vrot.slane %v7088_v18, 7 }
 0x199   : > { %5519 = vmatprep.mubr.msk.f32.mxu1 %vm740_vm1, %v7305_v0  ;;  %v7314_v60 = vsel %vm966_vm3, %v1028_v26, %v1030_v50  ;;  %v1045_v50 = vrot.slane %v7081_v37, 7 }
 0x19b   : > { %5685 = vmatmul.mubr.msk.f32.gmra.mxu0 %vm740_vm1, %v7011_v33  ;;  %v1035_v33 = vrot.slane %v7035_v9, 7 }
 0x19c   : > { %5520 = vmatmul.mubr.msk.f32.gmra.mxu1 %vm740_vm1, %v7314_v60  ;;  %5687 = vmatprep.mubr.msk.f32.mxu0 %vm740_vm1, %v7044_v40  ;;  %v7337_v40 = vsel %vm966_vm3, %v1037_v62, %v1038_v22  ;;  %v2606_v62 = vld [vmem:[#allocation6 + $0xb0] sm:$0xff] }
 0x19d   : > { %5522 = vmatprep.mubr.msk.f32.mxu1 %vm740_vm1, %v7321_v42  ;;  %v7330_v26 = vsel %vm966_vm3, %v1033_v7, %v1035_v33 }
 0x19f   : > { %5688 = vmatmul.mubr.msk.f32.gmra.mxu0 %vm740_vm1, %v7035_v9  ;;  %v1040_v9 = vrot.slane %v7059_v63, 7 }
 0x1a0   : > { %5523 = vmatmul.mubr.msk.f32.gmra.mxu1 %vm740_vm1, %v7330_v26  ;;  %5690 = vmatprep.mubr.msk.f32.mxu0 %vm740_vm1, %v7067_v61  ;;  %v7353_v61 = vsel %vm966_vm3, %v1042_v20, %v1043_v39 }
 0x1a1   : > { %5525 = vmatprep.mubr.msk.f32.mxu1 %vm740_vm1, %v7337_v40  ;;  %v7346_v7 = vsel %vm966_vm3, %v1038_v22, %v1040_v9 }
 0x1a3   : > { %5691 = vmatmul.mubr.msk.f32.gmra.mxu0 %vm740_vm1, %v7059_v63  ;;  %v7363_v63 = vsel %vm966_vm3, %v1043_v39, %v1045_v50 }
 0x1a4   : > { %5526 = vmatmul.mubr.msk.f32.gmra.mxu1 %vm740_vm1, %v7346_v7  ;;  %5693 = vmatprep.mubr.msk.f32.mxu0 %vm740_vm1, %v7088_v18  ;;  %v7369_v18 = vld [vmem:[#allocation2 + $0x210] sm:$0xff] }
 0x1a5   : > { %5528 = vmatprep.mubr.msk.f32.mxu1 %vm740_vm1, %v7353_v61  ;;  %8810 = vst [vmem:[#allocation22_spill] sm:$0xff] %v7369_v18 }
 0x1a7   : > { %5694 = vmatmul.mubr.msk.f32.gmra.mxu0 %vm740_vm1, %v7081_v37  ;;  %v2605_v37 = vld [vmem:[#allocation6 + $0xa8] sm:$0xff] }
 0x1a8   : > { %5529 = vmatmul.mubr.msk.f32.gmra.mxu1 %vm740_vm1, %v7363_v63  ;;  %5696 = vmatprep.mubr.msk.f32.mxu0 %vm740_vm1, %v7358_v47 }
 0x1a9   : > { %5595 = vmatprep.mubr.msk.f32.mxu1 %vm740_vm1, %v7121_v16  ;;  %v2604_v16 = vld [vmem:[#allocation6 + $0xa0] sm:$0xff] }
 0x1ab   : > { %5697 = vmatmul.mubr.msk.f32.gmra.mxu0 %vm740_vm1, %v7369_v18 }
 0x1ac   : > { %5596 = vmatmul.mubr.msk.f32.vlgmr.msra.gmra.mxu1 %vm740_vm1, %v7131_v3  ;;  %5763 = vmatprep.mubr.msk.f32.mxu0 %vm740_vm1, %v7138_v1  ;;  %v3418_v3 = vld [vmem:[#allocation6 + $0x110] sm:$0xff] }
 0x1ad   : > { %5700 = vmatpush3.msra.mxu1 %v7150_v35  ;;  %5598 = vmatprep.mubr.msk.f32.mxu1 %vm740_vm1, %v7138_v1  ;;  %v7393_v1 = vld [vmem:[#allocation6 + $0xf8] sm:$0xff]  ;;  %v3416_v35 = vld [vmem:[#allocation6 + $0x100] sm:$0xff] }
 0x1ae   : > { %5701 = vmatprep.subr.mxu1 %v2606_v62 }
 0x1af   : > { %5764 = vmatmul.mubr.msk.f32.vlgmr.msra.gmra.mxu0 %vm740_vm1, %v7148_v43  ;;  %5702 = vmatpush3.msra.mxu1 %v2606_v62 }
 0x1b0   : > { %5599 = vmatmul.mubr.msk.f32.gmra.mxu1 %vm740_vm1, %v7148_v43  ;;  %5766 = vmatprep.mubr.msk.f32.mxu0 %vm740_vm1, %v7157_v14  ;;  %v3417_v43 = vld [vmem:[#allocation6 + $0x108] sm:$0xff] }
 0x1b1   : > { %5601 = vmatprep.mubr.msk.f32.mxu1 %vm740_vm1, %v7157_v14  ;;  %5703 = vmatprep.subr.mxu1 %v2605_v37  ;;  %v910_v14 = vld [vmem:[#allocation2 + $0x200] sm:$0xff] }
 0x1b2   : > { %5704 = vmatpush3.msra.mxu1 %v2605_v37  ;;  %5868 = vmatpush3.msra.mxu0 %v7201_v28 }
 0x1b3   : > { %5767 = vmatmul.mubr.msk.f32.gmra.mxu0 %vm740_vm1, %v7167_v58  ;;  %5705 = vmatprep.subr.mxu1 %v2604_v16 }
 0x1b4   : > { %5602 = vmatmul.mubr.msk.f32.gmra.mxu1 %vm740_vm1, %v7167_v58  ;;  %5769 = vmatprep.mubr.msk.f32.mxu0 %vm740_vm1, %v7174_v30  ;;  %v2061_v58 = vrot.slane %v7358_v47, 7 }
 0x1b5   : > { %5604 = vmatprep.mubr.msk.f32.mxu1 %vm740_vm1, %v7174_v30  ;;  %5706 = vmatpush3.msra.mxu1 %v2604_v16  ;;  %v2060_v30 = vrot.slane %v910_v14, 7  ;;  %v8816_v16 = vld [vmem:[#allocation14_spill] sm:$0xff]  ;;  %v8819_v14 = vld [vmem:[#allocation16_spill] sm:$0xff] }
 0x1b6   : > { %5869 = vmatprep.subr.mxu0 %v3418_v3  ;;  %5811 = vmatprep.subr.mxu1 %v7393_v1 }
 0x1b7   : > { %5770 = vmatmul.mubr.msk.f32.gmra.mxu0 %vm740_vm1, %v7183_v51 }
 0x1b8   : > { %5605 = vmatmul.mubr.msk.f32.gmra.mxu1 %vm740_vm1, %v7183_v51  ;;  %5772 = vmatprep.mubr.msk.f32.mxu0 %vm740_vm1, %v7190_v17  ;;  %v914_v51 = vld [vmem:[#allocation2 + $0x220] sm:$0xff] }
 0x1b9   : > { %5607 = vmatprep.mubr.msk.f32.mxu1 %vm740_vm1, %v7190_v17  ;;  %5870 = vmatpush3.msra.mxu0 %v3418_v3  ;;  %v7483_v17 = vld [vmem:[#allocation2 + $0x228] sm:$0xff]  ;;  %v2872_v28 = vrot.slane %v914_v51, 7 }
 0x1ba   : > { %5871 = vmatprep.subr.mxu0 %v3417_v43  ;;  %8811 = vst [vmem:[#allocation23_spill] sm:$0xff] %v7483_v17 }
 0x1bb   : > { %5773 = vmatmul.mubr.msk.f32.gmra.mxu0 %vm740_vm1, %v7199_v21 }
 0x1bc   : > { %5608 = vmatmul.mubr.msk.f32.gmra.mxu1 %vm740_vm1, %v7199_v21  ;;  %5775 = vmatprep.mubr.msk.f32.mxu0 %vm740_vm1, %v7208_v46  ;;  %v2062_v21 = vsel %vm966_vm3, %v2060_v30, %v2061_v58  ;;  %v8820_v30 = vld [vmem:[#allocation17_spill] sm:$0xff] }
 0x1bd   : > { %5610 = vmatprep.mubr.msk.f32.mxu1 %vm740_vm1, %v7208_v46  ;;  %5872 = vmatpush3.msra.mxu0 %v3417_v43  ;;  %v2873_v46 = vrot.slane %v7483_v17, 7 }
 0x1be   : > { %5873 = vmatprep.subr.mxu0 %v3416_v35 }
 0x1bf   : > { %5776 = vmatmul.mubr.msk.f32.gmra.mxu0 %vm740_vm1, %v7218_v48 }
 0x1c0   : > { %5611 = vmatmul.mubr.msk.f32.gmra.mxu1 %vm740_vm1, %v7218_v48  ;;  %5778 = vmatprep.mubr.msk.f32.mxu0 %vm740_vm1, %v7225_v5  ;;  %v7495_v48 = vld [vmem:[#allocation2 + $0x230] sm:$0xff] }
 0x1c1   : > { %5613 = vmatprep.mubr.msk.f32.mxu1 %vm740_vm1, %v7225_v5  ;;  %5874 = vmatpush3.msra.mxu0 %v3416_v35  ;;  %8812 = vst [vmem:[#allocation24_spill] sm:$0xff] %v7495_v48  ;;  %v2063_v5 = vrot.slane %v7369_v18, 7 }
 0x1c3   : > { %5779 = vmatmul.mubr.msk.f32.gmra.mxu0 %vm740_vm1, %v7234_v11 }
 0x1c4   : > { %5614 = vmatmul.mubr.msk.f32.gmra.mxu1 %vm740_vm1, %v7234_v11  ;;  %5781 = vmatprep.mubr.msk.f32.mxu0 %vm740_vm1, %v7241_v6  ;;  %v2875_v11 = vrot.slane %v7495_v48, 7 }
 0x1c5   : > { %5616 = vmatprep.mubr.msk.f32.mxu1 %vm740_vm1, %v7241_v6  ;;  %v2874_v6 = vsel %vm966_vm3, %v2872_v28, %v2873_v46 }
 0x1c7   : > { %5782 = vmatmul.mubr.msk.f32.gmra.mxu0 %vm740_vm1, %v7250_v36 }
 0x1c8   : > { %5617 = vmatmul.mubr.msk.f32.gmra.mxu1 %vm740_vm1, %v7250_v36  ;;  %5784 = vmatprep.mubr.msk.f32.mxu0 %vm740_vm1, %v7257_v31  ;;  %v2064_v36 = vsel %vm966_vm3, %v2061_v58, %v2063_v5 }
 0x1c9   : > { %5619 = vmatprep.mubr.msk.f32.mxu1 %vm740_vm1, %v7257_v31  ;;  %v2876_v31 = vsel %vm966_vm3, %v2873_v46, %v2875_v11  ;;  %v8822_v46 = vld [vmem:[#allocation18_spill] sm:$0xff]  ;;  %v8823_v11 = vld [vmem:[#allocation19_spill] sm:$0xff] }
 0x1cb   : > { %5785 = vmatmul.mubr.msk.f32.gmra.mxu0 %vm740_vm1, %v7266_v12 }
 0x1cc   : > { %5620 = vmatmul.mubr.msk.f32.gmra.mxu1 %vm740_vm1, %v7266_v12  ;;  %5787 = vmatprep.mubr.msk.f32.mxu0 %vm740_vm1, %v7273_v55  ;;  %v7513_v12 = vpop.f32.mrf.mxu1 }
 0x1cd   : > { %5622 = vmatprep.mubr.msk.f32.mxu1 %vm740_vm1, %v7273_v55  ;;  %8813 = vst [vmem:[#allocation25_spill] sm:$0xff] %v7513_v12  ;;  %v7516_v55 = vpop.f32.mrf.mxu0 }
 0x1ce   : > { %8814 = vst [vmem:[#allocation26_spill] sm:$0xff] %v7516_v55 }
 0x1cf   : > { %5788 = vmatmul.mubr.msk.f32.gmra.mxu0 %vm740_vm1, %v7282_v53 }
 0x1d0   : > { %5623 = vmatmul.mubr.msk.f32.gmra.mxu1 %vm740_vm1, %v7282_v53  ;;  %5790 = vmatprep.mubr.msk.f32.mxu0 %vm740_vm1, %v7289_v23  ;;  %v3146_v53 = vld [vmem:[#allocation6 + $0xf0] sm:$0xff] }
 0x1d1   : > { %5625 = vmatprep.mubr.msk.f32.mxu1 %vm740_vm1, %v7289_v23  ;;  %v7525_v23 = vpop.f32.mrf.mxu1 }
 0x1d3   : > { %5791 = vmatmul.mubr.msk.f32.gmra.mxu0 %vm740_vm1, %v7298_v38 }
 0x1d4   : > { %5626 = vmatmul.mubr.msk.f32.gmra.mxu1 %vm740_vm1, %v7298_v38  ;;  %5793 = vmatprep.mubr.msk.f32.mxu0 %vm740_vm1, %v7305_v0  ;;  %v7529_v38 = vpop.f32.mrf.mxu0 }
 0x1d5   : > { %5628 = vmatprep.mubr.msk.f32.mxu1 %vm740_vm1, %v7305_v0 }
 0x1d7   : > { %5794 = vmatmul.mubr.msk.f32.gmra.mxu0 %vm740_vm1, %v7314_v60 }
 0x1d8   : > { %5629 = vmatmul.mubr.msk.f32.gmra.mxu1 %vm740_vm1, %v7314_v60  ;;  %5796 = vmatprep.mubr.msk.f32.mxu0 %vm740_vm1, %v7321_v42 }
 0x1d9   : > { %5631 = vmatprep.mubr.msk.f32.mxu1 %vm740_vm1, %v7321_v42 }
 0x1db   : > { %5797 = vmatmul.mubr.msk.f32.gmra.mxu0 %vm740_vm1, %v7330_v26 }
 0x1dc   : > { %5632 = vmatmul.mubr.msk.f32.gmra.mxu1 %vm740_vm1, %v7330_v26  ;;  %5799 = vmatprep.mubr.msk.f32.mxu0 %vm740_vm1, %v7337_v40 }
 0x1dd   : > { %5634 = vmatprep.mubr.msk.f32.mxu1 %vm740_vm1, %v7337_v40 }
 0x1df   : > { %5800 = vmatmul.mubr.msk.f32.gmra.mxu0 %vm740_vm1, %v7346_v7 }
 0x1e0   : > { %5635 = vmatmul.mubr.msk.f32.gmra.mxu1 %vm740_vm1, %v7346_v7  ;;  %5802 = vmatprep.mubr.msk.f32.mxu0 %vm740_vm1, %v7353_v61 }
 0x1e1   : > { %5637 = vmatprep.mubr.msk.f32.mxu1 %vm740_vm1, %v7353_v61 }
 0x1e3   : > { %5803 = vmatmul.mubr.msk.f32.gmra.mxu0 %vm740_vm1, %v7363_v63 }
 0x1e4   : > { %5638 = vmatmul.mubr.msk.f32.gmra.mxu1 %vm740_vm1, %v7363_v63  ;;  %5805 = vmatprep.mubr.msk.f32.mxu0 %vm740_vm1, %v2062_v21 }
 0x1e5   : > { %5640 = vmatprep.mubr.msk.f32.mxu1 %vm740_vm1, %v2062_v21 }
 0x1e7   : > { %5806 = vmatmul.mubr.msk.f32.gmra.mxu0 %vm740_vm1, %v2064_v36 }
 0x1e8   : > { %5641 = vmatmul.mubr.msk.f32.gmra.mxu1 %vm740_vm1, %v2064_v36  ;;  %5808 = vmatprep.mubr.msk.f32.mxu0 %vm740_vm1, %v2874_v6 }
 0x1e9   : > { %5707 = vmatprep.mubr.msk.f32.mxu1 %vm740_vm1, %v6776_v41  ;;  %v3145_v41 = vld [vmem:[#allocation6 + $0xe8] sm:$0xff] }
 0x1eb   : > { %5809 = vmatmul.mubr.msk.f32.gmra.mxu0 %vm740_vm1, %v2876_v31 }
 0x1ec   : > { %5708 = vmatmul.mubr.msk.f32.vlgmr.msra.gmra.mxu1 %vm740_vm1, %v6783_v44  ;;  %5875 = vmatprep.mubr.msk.f32.mxu0 %vm740_vm1, %v6800_v56  ;;  %v3144_v44 = vld [vmem:[#allocation6 + $0xe0] sm:$0xff] }
 0x1ed   : > { %5812 = vmatpush3.msra.mxu1 %v7393_v1  ;;  %5710 = vmatprep.mubr.msk.f32.mxu1 %vm740_vm1, %v6800_v56 }
 0x1ee   : > { %5813 = vmatprep.subr.mxu1 %v3146_v53 }
 0x1ef   : > { %5876 = vmatmul.mubr.msk.f32.vlgmr.msra.gmra.mxu0 %vm740_vm1, %v6807_v59  ;;  %5814 = vmatpush3.msra.mxu1 %v3146_v53  ;;  %v8825_v53 = vld [vmem:[#allocation20_spill] sm:$0xff] }
 0x1f0   : > { %v7531_v0 = vpop.f32.mrf.mxu1  ;;  %5711 = vmatmul.mubr.msk.f32.gmra.mxu1 %vm740_vm1, %v6807_v59  ;;  %5878 = vmatprep.mubr.msk.f32.mxu0 %vm740_vm1, %v6824_v10 }
 0x1f1   : > { %5713 = vmatprep.mubr.msk.f32.mxu1 %vm740_vm1, %v6824_v10  ;;  %5815 = vmatprep.subr.mxu1 %v3145_v41 }
 0x1f2   : > { %v7539_v56 = vpop.f32.mrf.mxu1  ;;  %5816 = vmatpush3.msra.mxu1 %v3145_v41 }
 0x1f3   : > { %v7541_v60 = vpop.f32.mrf.mxu0  ;;  %5879 = vmatmul.mubr.msk.f32.gmra.mxu0 %vm740_vm1, %v6831_v13  ;;  %5817 = vmatprep.subr.mxu1 %v3144_v44 }
 0x1f4   : > { %v7545_v42 = vpop.f32.mrf.mxu1  ;;  %5714 = vmatmul.mubr.msk.f32.gmra.mxu1 %vm740_vm1, %v6831_v13  ;;  %5881 = vmatprep.mubr.msk.f32.mxu0 %vm740_vm1, %v6848_v25 }
 0x1f5   : > { %v7551_v59 = vpop.f32.mrf.mxu0  ;;  %5716 = vmatprep.mubr.msk.f32.mxu1 %vm740_vm1, %v6848_v25  ;;  %5818 = vmatpush3.msra.mxu1 %v3144_v44  ;;  %v8826_v44 = vld [vmem:[#allocation21_spill] sm:$0xff] }
 0x1f6   : > { %v7555_v10 = vpop.f32.mrf.mxu1 }
 0x1f7   : > { %v7557_v22 = vpop.f32.mrf.mxu0  ;;  %5882 = vmatmul.mubr.msk.f32.gmra.mxu0 %vm740_vm1, %v6855_v29 }
 0x1f8   : > { %v7561_v33 = vpop.f32.mrf.mxu1  ;;  %5717 = vmatmul.mubr.msk.f32.gmra.mxu1 %vm740_vm1, %v6855_v29  ;;  %5884 = vmatprep.mubr.msk.f32.mxu0 %vm740_vm1, %v6872_v45 }
 0x1f9   : > { %v7567_v13 = vpop.f32.mrf.mxu0  ;;  %5719 = vmatprep.mubr.msk.f32.mxu1 %vm740_vm1, %v6872_v45 }
 0x1fa   : > { %v7571_v25 = vpop.f32.mrf.mxu1 }
 0x1fb   : > { %v7573_v15 = vpop.f32.mrf.mxu0  ;;  %5885 = vmatmul.mubr.msk.f32.gmra.mxu0 %vm740_vm1, %v6879_v49 }
 0x1fc   : > { %v7577_v26 = vpop.f32.mrf.mxu1  ;;  %5720 = vmatmul.mubr.msk.f32.gmra.mxu1 %vm740_vm1, %v6879_v49  ;;  %5887 = vmatprep.mubr.msk.f32.mxu0 %vm740_vm1, %v6896_v2 }
 0x1fd   : > { %v7583_v29 = vpop.f32.mrf.mxu0  ;;  %5722 = vmatprep.mubr.msk.f32.mxu1 %vm740_vm1, %v6896_v2 }
 0x1fe   : > { %v7587_v45 = vpop.f32.mrf.mxu1 }
 0x1ff   : > { %v7589_v40 = vpop.f32.mrf.mxu0  ;;  %5888 = vmatmul.mubr.msk.f32.gmra.mxu0 %vm740_vm1, %v6903_v8 }
 0x200   : > { %v7593_v20 = vpop.f32.mrf.mxu1  ;;  %5723 = vmatmul.mubr.msk.f32.gmra.mxu1 %vm740_vm1, %v6903_v8  ;;  %5890 = vmatprep.mubr.msk.f32.mxu0 %vm740_vm1, %v6920_v24 }
 0x201   : > { %v7599_v49 = vpop.f32.mrf.mxu0  ;;  %5725 = vmatprep.mubr.msk.f32.mxu1 %vm740_vm1, %v6920_v24 }
 0x202   : > { %v7603_v2 = vpop.f32.mrf.mxu1 }
 0x203   : > { %v7605_v39 = vpop.f32.mrf.mxu0  ;;  %5891 = vmatmul.mubr.msk.f32.gmra.mxu0 %vm740_vm1, %v6927_v32 }
 0x204   : > { %v7609_v9 = vpop.f32.mrf.mxu1  ;;  %5726 = vmatmul.mubr.msk.f32.gmra.mxu1 %vm740_vm1, %v6927_v32  ;;  %5893 = vmatprep.mubr.msk.f32.mxu0 %vm740_vm1, %v6944_v52 }
 0x205   : > { %v7615_v8 = vpop.f32.mrf.mxu0  ;;  %5728 = vmatprep.mubr.msk.f32.mxu1 %vm740_vm1, %v6944_v52 }
 0x206   : > { %v7619_v24 = vpop.f32.mrf.mxu1 }
 0x207   : > { %v7621_v7 = vpop.f32.mrf.mxu0  ;;  %5894 = vmatmul.mubr.msk.f32.gmra.mxu0 %vm740_vm1, %v6951_v57 }
 0x208   : > { %v7625_v61 = vpop.f32.mrf.mxu1  ;;  %5729 = vmatmul.mubr.msk.f32.gmra.mxu1 %vm740_vm1, %v6951_v57  ;;  %5896 = vmatprep.mubr.msk.f32.mxu0 %vm740_vm1, %v6968_v19  ;;  %v8815_v57 = vld [vmem:[#allocation13_spill] sm:$0xff] }
 0x209   : > { %v7631_v32 = vpop.f32.mrf.mxu0  ;;  %5731 = vmatprep.mubr.msk.f32.mxu1 %vm740_vm1, %v6968_v19 }
 0x20a   : > { %v7635_v52 = vpop.f32.mrf.mxu1 }
 0x20b   : > { %v7637_v50 = vpop.f32.mrf.mxu0  ;;  %5897 = vmatmul.mubr.msk.f32.gmra.mxu0 %vm740_vm1, %v6975_v27 }
 0x20c   : > { %v7641_v63 = vpop.f32.mrf.mxu1  ;;  %5732 = vmatmul.mubr.msk.f32.gmra.mxu1 %vm740_vm1, %v6975_v27  ;;  %5899 = vmatprep.mubr.msk.f32.mxu0 %vm740_vm1, %v8815_v57  ;;  %v8817_v27 = vld [vmem:[#allocation15_spill] sm:$0xff] }
 0x20d   : > { %v7647_v62 = vpop.f32.mrf.mxu0  ;;  %5734 = vmatprep.mubr.msk.f32.mxu1 %vm740_vm1, %v8815_v57 }
 0x20e   : > { %v7651_v19 = vpop.f32.mrf.mxu1 }
 0x20f   : > { %v7653_v37 = vpop.f32.mrf.mxu0  ;;  %5900 = vmatmul.mubr.msk.f32.gmra.mxu0 %vm740_vm1, %v8816_v16 }
 0x210   : > { %v7657_v3 = vpop.f32.mrf.mxu1  ;;  %5735 = vmatmul.mubr.msk.f32.gmra.mxu1 %vm740_vm1, %v8816_v16  ;;  %5902 = vmatprep.mubr.msk.f32.mxu0 %vm740_vm1, %v8817_v27 }
 0x211   : > { %v7663_v1 = vpop.f32.mrf.mxu0  ;;  %5737 = vmatprep.mubr.msk.f32.mxu1 %vm740_vm1, %v8817_v27  ;;  %v2598_v27 = vrot.slane %v7358_v47, 1 }
 0x212   : > { %8818 = vst [vmem:[#allocation13_spill] sm:$0xff] %v7663_v1  ;;  %v7667_v43 = vpop.f32.mrf.mxu1 }
 0x213   : > { %v7669_v35 = vpop.f32.mrf.mxu0  ;;  %5903 = vmatmul.mubr.msk.f32.gmra.mxu0 %vm740_vm1, %v8819_v14 }
 0x214   : > { %v7673_v58 = vpop.f32.mrf.mxu1  ;;  %5738 = vmatmul.mubr.msk.f32.gmra.mxu1 %vm740_vm1, %v8819_v14  ;;  %5905 = vmatprep.mubr.msk.f32.mxu0 %vm740_vm1, %v8820_v30  ;;  %v2599_v14 = vrot.slane %v7369_v18, 1 }
 0x215   : > { %v7679_v51 = vpop.f32.mrf.mxu0  ;;  %5740 = vmatprep.mubr.msk.f32.mxu1 %vm740_vm1, %v8820_v30 }
 0x216   : > { %8821 = vst [vmem:[#allocation14_spill] sm:$0xff] %v7679_v51  ;;  %v7683_v21 = vpop.f32.mrf.mxu1 }
 0x217   : > { %v7685_v28 = vpop.f32.mrf.mxu0  ;;  %5906 = vmatmul.mubr.msk.f32.gmra.mxu0 %vm740_vm1, %v8822_v46 }
 0x218   : > { %v7689_v5 = vpop.f32.mrf.mxu1  ;;  %5741 = vmatmul.mubr.msk.f32.gmra.mxu1 %vm740_vm1, %v8822_v46  ;;  %5908 = vmatprep.mubr.msk.f32.mxu0 %vm740_vm1, %v8823_v11  ;;  %v913_v46 = vld [vmem:[#allocation2 + $0x218] sm:$0xff] }
 0x219   : > { %v7695_v6 = vpop.f32.mrf.mxu0  ;;  %5743 = vmatprep.mubr.msk.f32.mxu1 %vm740_vm1, %v8823_v11  ;;  %v2601_v1 = vrot.slane %v913_v46, 1 }
 0x21a   : > { %8824 = vst [vmem:[#allocation15_spill] sm:$0xff] %v7695_v6  ;;  %v7699_v36 = vpop.f32.mrf.mxu1  ;;  %v917_v6 = vld [vmem:[#allocation2 + $0x238] sm:$0xff] }
 0x21b   : > { %v7701_v31 = vpop.f32.mrf.mxu0  ;;  %5909 = vmatmul.mubr.msk.f32.gmra.mxu0 %vm740_vm1, %v8825_v53 }
 0x21c   : > { %v7705_v41 = vpop.f32.mrf.mxu1  ;;  %5744 = vmatmul.mubr.msk.f32.gmra.mxu1 %vm740_vm1, %v8825_v53  ;;  %5911 = vmatprep.mubr.msk.f32.mxu0 %vm740_vm1, %v8826_v44 }
 0x21d   : > { %v7711_v57 = vpop.f32.mrf.mxu0  ;;  %5746 = vmatprep.mubr.msk.f32.mxu1 %vm740_vm1, %v8826_v44  ;;  %v3410_v44 = vrot.slane %v7483_v17, 1  ;;  %v2602_v17 = vsel %vm1650_vm2, %v2599_v14, %v2601_v1 }
 0x21e   : > { %8827 = vst [vmem:[#allocation16_spill] sm:$0xff] %v7711_v57  ;;  %v7715_v16 = vpop.f32.mrf.mxu1  ;;  %v3411_v57 = vrot.slane %v7495_v48, 1 }
 0x21f   : > { %v7719_v30 = vpop.f32.mrf.mxu0  ;;  %5912 = vmatmul.mubr.msk.f32.gmra.mxu0 %vm740_vm1, %v7091_v54 }
 0x220   : > { %v7723_v11 = vpop.f32.mrf.mxu1  ;;  %5747 = vmatmul.mubr.msk.f32.gmra.mxu1 %vm740_vm1, %v7091_v54  ;;  %5914 = vmatprep.mubr.msk.f32.mxu0 %vm740_vm1, %v7106_v4  ;;  %v2600_v54 = vsel %vm1650_vm2, %v2598_v27, %v2599_v14  ;;  %v3412_v46 = vsel %vm1650_vm2, %v3410_v44, %v3411_v57 }
 0x221   : > { %v7729_v53 = vpop.f32.mrf.mxu0  ;;  %5749 = vmatprep.mubr.msk.f32.mxu1 %vm740_vm1, %v7106_v4  ;;  %v3413_v4 = vrot.slane %v917_v6, 1 }
 0x222   : > { %8828 = vst [vmem:[#allocation17_spill] sm:$0xff] %v7729_v53  ;;  %v7735_v51 = vpop.f32.mrf.mxu1 }
 0x223   : > { %v7737_v55 = vpop.f32.mrf.mxu0  ;;  %5915 = vmatmul.mubr.msk.f32.gmra.mxu0 %vm740_vm1, %v7112_v34 }
 0x224   : > { %v7742_v12 = vpop.f32.mrf.mxu1  ;;  %5750 = vmatmul.mubr.msk.f32.gmra.mxu1 %vm740_vm1, %v7112_v34  ;;  %5917 = vmatprep.mubr.msk.f32.mxu0 %vm740_vm1, %v2600_v54  ;;  %v3414_v34 = vsel %vm1650_vm2, %v3411_v57, %v3413_v4 }
 0x225   : > { %v7747_v53 = vpop.f32.mrf.mxu0  ;;  %5752 = vmatprep.mubr.msk.f32.mxu1 %vm740_vm1, %v2600_v54  ;;  %v6113_v54 = vld [vmem:[#allocation2 + $0x48] sm:$0xff] }
 0x226   : > { %8829 = vst [vmem:[#allocation18_spill] sm:$0xff] %v7747_v53  ;;  %v7751_v48 = vpop.f32.mrf.mxu1  ;;  %v6114_v53 = vld [vmem:[#allocation2 + $0x50] sm:$0xff] }
 0x227   : > { %v7754_v18 = vpop.f32.mrf.mxu0  ;;  %5918 = vmatmul.mubr.msk.f32.gmra.mxu0 %vm740_vm1, %v2602_v17 }
 0x228   : > { %v7757_v27 = vpop.f32.mrf.mxu1  ;;  %5753 = vmatmul.mubr.msk.f32.gmra.mxu1 %vm740_vm1, %v2602_v17  ;;  %5920 = vmatprep.mubr.msk.f32.mxu0 %vm740_vm1, %v3412_v46  ;;  %v6115_v46 = vld [vmem:[#allocation2 + $0x68] sm:$0xff] }
 0x229   : > { %8830 = vst [vmem:[#allocation19_spill] sm:$0xff] %v7757_v27  ;;  %v7762_v6 = vpop.f32.mrf.mxu0  ;;  %5819 = vmatprep.mubr.msk.f32.mxu1 %vm740_vm1, %v6113_v54  ;;  %v6117_v27 = vld [vmem:[#allocation2 + $0x88] sm:$0xff] }
 0x22a   : > { %8831 = vst [vmem:[#allocation20_spill] sm:$0xff] %v7762_v6  ;;  %v7765_v44 = vpop.f32.mrf.mxu1 }
 0x22b   : > { %8832 = vst [vmem:[#allocation21_spill] sm:$0xff] %v7765_v44  ;;  %v7767_v1 = vpop.f32.mrf.mxu0  ;;  %5921 = vmatmul.mubr.msk.f32.gmra.mxu0 %vm740_vm1, %v3414_v34  ;;  %v6116_v44 = vld [vmem:[#allocation2 + $0x70] sm:$0xff] }
 0x22c   : > { %8833 = vst [vmem:[#allocation27_spill] sm:$0xff] %v7767_v1  ;;  %v7770_v14 = vpop.f32.mrf.mxu1  ;;  %5820 = vmatmul.mubr.msk.f32.vlgmr.msra.gmra.mxu1 %vm740_vm1, %v6114_v53 }
 0x22d   : > { %v7773_v17 = vpop.f32.mrf.mxu0  ;;  %5822 = vmatprep.mubr.msk.f32.mxu1 %vm740_vm1, %v6115_v46 }
 0x22e   : > { %8834 = vst [vmem:[#allocation28_spill] sm:$0xff] %v7773_v17  ;;  %v1475_v57 = vpop.f32.mrf.mxu1 }
 0x22f   : > { %v1476_v4 = vadd.f32 %v1475_v57, %v7525_v23  ;;  %v7777_v54 = vpop.f32.mrf.mxu0 }
 0x230   : > { %v5488_v6 = vpop.f32.mrf.mxu1  ;;  %5823 = vmatmul.mubr.msk.f32.gmra.mxu1 %vm740_vm1, %v6116_v44  ;;  %v6118_v44 = vld [vmem:[#allocation2 + $0x90] sm:$0xff] }
 0x231   : > { %v1491_v34 = vadd.f32 %v5488_v6, %v7531_v0  ;;  %v7781_v1 = vpop.f32.mrf.mxu0  ;;  %5825 = vmatprep.mubr.msk.f32.mxu1 %vm740_vm1, %v6117_v27  ;;  %v7785_v53 = vadd.f32 %v7529_v38, %v1476_v4  ;;  %v3763_v0 = vld [vmem:[%s8751_s6 + $0x38] sm:$0xff]  ;;  %v6119_v4 = vld [vmem:[#allocation2 + $0xa8] sm:$0xff] }
 0x232   : > { %8835 = vst [vmem:[#allocation29_spill] sm:$0xff] %v7781_v1  ;;  %v1485_v46 = vpop.f32.mrf.mxu1  ;;  %5923 = vmatprep.subr.mxu1 %v3763_v0 }
 0x233   : > { %v1486_v17 = vadd.f32 %v1485_v46, %v7539_v56  ;;  %v7788_v23 = vpop.f32.mrf.mxu0  ;;  %v7791_v57 = vadd.f32 %v7541_v60, %v1491_v34  ;;  %5924 = vmatpush3.msra.mxu1 %v3763_v0 }
 0x234   : > { %8836 = vst [vmem:[#allocation30_spill] sm:$0xff] %v7788_v23  ;;  %v5491_v6 = vpop.f32.mrf.mxu1  ;;  %5826 = vmatmul.mubr.msk.f32.gmra.mxu1 %vm740_vm1, %v6118_v44  ;;  %v6120_v23 = vld [vmem:[#allocation2 + $0xb0] sm:$0xff] }
 0x235   : > { %v1501_v38 = vadd.f32 %v5491_v6, %v7545_v42  ;;  %v7798_v27 = vpop.f32.mrf.mxu0  ;;  %5828 = vmatprep.mubr.msk.f32.mxu1 %vm740_vm1, %v6119_v4  ;;  %v7802_v56 = vadd.f32 %v7551_v59, %v1486_v17  ;;  %v6121_v4 = vld [vmem:[#allocation2 + $0xc8] sm:$0xff] }
 0x236   : > { %8837 = vst [vmem:[#allocation31_spill] sm:$0xff] %v7798_v27  ;;  %v1495_v60 = vpop.f32.mrf.mxu1 }
 0x237   : > { %v1496_v34 = vadd.f32 %v1495_v60, %v7555_v10  ;;  %v7805_v46 = vpop.f32.mrf.mxu0  ;;  %v7808_v1 = vadd.f32 %v7557_v22, %v1501_v38 }
 0x238   : > { %v5494_v44 = vpop.f32.mrf.mxu1  ;;  %5829 = vmatmul.mubr.msk.f32.gmra.mxu1 %vm740_vm1, %v6120_v23  ;;  %v7830_v23 = vld [vmem:[%s8750_s5 + $0x18] sm:$0xff] }
 0x239   : > { %v1511_v42 = vadd.f32 %v5494_v44, %v7561_v33  ;;  %v7812_v6 = vpop.f32.mrf.mxu0  ;;  %5831 = vmatprep.mubr.msk.f32.mxu1 %vm740_vm1, %v6121_v4  ;;  %v7816_v59 = vadd.f32 %v7567_v13, %v1496_v34  ;;  %v3762_v33 = vld [vmem:[%s8751_s6 + $0x30] sm:$0xff]  ;;  %5987 = vmatprep.subr.mxu0 %v7830_v23 }
 0x23a   : > { %8838 = vst [vmem:[#allocation32_spill] sm:$0xff] %v7812_v6  ;;  %v1505_v10 = vpop.f32.mrf.mxu1  ;;  %v6122_v13 = vld [vmem:[#allocation2 + $0xd0] sm:$0xff]  ;;  %5925 = vmatprep.subr.mxu1 %v3762_v33  ;;  %5988 = vmatpush3.msra.mxu0 %v7830_v23 }
 0x23b   : > { %v1506_v17 = vadd.f32 %v1505_v10, %v7571_v25  ;;  %v7819_v0 = vpop.f32.mrf.mxu0  ;;  %v7822_v22 = vadd.f32 %v7573_v15, %v1511_v42  ;;  %v6123_v15 = vld [vmem:[#allocation2 + $0xe8] sm:$0xff]  ;;  %5926 = vmatpush3.msra.mxu1 %v3762_v33 }
 0x23c   : > { %v5497_v38 = vpop.f32.mrf.mxu1  ;;  %5832 = vmatmul.mubr.msk.f32.gmra.mxu1 %vm740_vm1, %v6122_v13  ;;  %v6125_v13 = vld [vmem:[#allocation2 + $0x108] sm:$0xff] }
 0x23d   : > { %v1521_v25 = vadd.f32 %v5497_v38, %v7577_v26  ;;  %v7834_v60 = vpop.f32.mrf.mxu0  ;;  %5834 = vmatprep.mubr.msk.f32.mxu1 %vm740_vm1, %v6123_v15  ;;  %v7838_v34 = vadd.f32 %v7583_v29, %v1506_v17  ;;  %v6124_v38 = vld [vmem:[#allocation2 + $0xf0] sm:$0xff] }
 0x23e   : > { %8839 = vst [vmem:[#allocation33_spill] sm:$0xff] %v7834_v60  ;;  %v1515_v44 = vpop.f32.mrf.mxu1 }
 0x23f   : > { %v1516_v42 = vadd.f32 %v1515_v44, %v7587_v45  ;;  %v7843_v4 = vpop.f32.mrf.mxu0  ;;  %v7846_v26 = vadd.f32 %v7589_v40, %v1521_v25 }
 0x240   : > { %v5500_v10 = vpop.f32.mrf.mxu1  ;;  %5835 = vmatmul.mubr.msk.f32.gmra.mxu1 %vm740_vm1, %v6124_v38  ;;  %v6127_v38 = vld [vmem:[#allocation2 + $0x128] sm:$0xff] }
 0x241   : > { %v1531_v29 = vadd.f32 %v5500_v10, %v7593_v20  ;;  %v7850_v17 = vpop.f32.mrf.mxu0  ;;  %5837 = vmatprep.mubr.msk.f32.mxu1 %vm740_vm1, %v6125_v13  ;;  %v7854_v33 = vadd.f32 %v7599_v49, %v1516_v42  ;;  %v3761_v20 = vld [vmem:[%s8751_s6 + $0x28] sm:$0xff]  ;;  %v6126_v10 = vld [vmem:[#allocation2 + $0x110] sm:$0xff] }
 0x242   : > { %8840 = vst [vmem:[#allocation34_spill] sm:$0xff] %v7850_v17  ;;  %v1525_v45 = vpop.f32.mrf.mxu1  ;;  %5927 = vmatprep.subr.mxu1 %v3761_v20  ;;  %v6128_v17 = vld [vmem:[#allocation2 + $0x130] sm:$0xff] }
 0x243   : > { %v1526_v15 = vadd.f32 %v1525_v45, %v7603_v2  ;;  %v7857_v44 = vpop.f32.mrf.mxu0  ;;  %v7860_v40 = vadd.f32 %v7605_v39, %v1531_v29  ;;  %5928 = vmatpush3.msra.mxu1 %v3761_v20 }
 0x244   : > { %v5503_v25 = vpop.f32.mrf.mxu1  ;;  %5838 = vmatmul.mubr.msk.f32.gmra.mxu1 %vm740_vm1, %v6126_v10 }
 0x245   : > { %v1541_v49 = vadd.f32 %v5503_v25, %v7609_v9  ;;  %v7867_v42 = vpop.f32.mrf.mxu0  ;;  %5840 = vmatprep.mubr.msk.f32.mxu1 %vm740_vm1, %v6127_v38  ;;  %v7871_v2 = vadd.f32 %v7615_v8, %v1526_v15  ;;  %v6129_v38 = vld [vmem:[#allocation2 + $0x148] sm:$0xff] }
 0x246   : > { %8841 = vst [vmem:[#allocation35_spill] sm:$0xff] %v7867_v42  ;;  %v1535_v39 = vpop.f32.mrf.mxu1  ;;  %v6137_v42 = vld [vmem:[#allocation2 + $0x1c8] sm:$0xff] }
 0x247   : > { %v1536_v29 = vadd.f32 %v1535_v39, %v7619_v24  ;;  %v7874_v13 = vpop.f32.mrf.mxu0  ;;  %v7877_v45 = vadd.f32 %v7621_v7, %v1541_v49 }
 0x248   : > { %v5506_v10 = vpop.f32.mrf.mxu1  ;;  %5841 = vmatmul.mubr.msk.f32.gmra.mxu1 %vm740_vm1, %v6128_v17  ;;  %v7899_v17 = vld [vmem:[%s8750_s5 + $0x10] sm:$0xff] }
 0x249   : > { %v1551_v9 = vadd.f32 %v5506_v10, %v7625_v61  ;;  %v7881_v25 = vpop.f32.mrf.mxu0  ;;  %5843 = vmatprep.mubr.msk.f32.mxu1 %vm740_vm1, %v6129_v38  ;;  %v7885_v8 = vadd.f32 %v7631_v32, %v1536_v29  ;;  %v3760_v61 = vld [vmem:[%s8751_s6 + $0x20] sm:$0xff]  ;;  %v6130_v32 = vld [vmem:[#allocation2 + $0x150] sm:$0xff]  ;;  %5989 = vmatprep.subr.mxu0 %v7899_v17 }
 0x24a   : > { %8842 = vst [vmem:[#allocation36_spill] sm:$0xff] %v7881_v25  ;;  %v1545_v24 = vpop.f32.mrf.mxu1  ;;  %5929 = vmatprep.subr.mxu1 %v3760_v61  ;;  %5990 = vmatpush3.msra.mxu0 %v7899_v17 }
 0x24b   : > { %v1546_v15 = vadd.f32 %v1545_v24, %v7635_v52  ;;  %v7888_v20 = vpop.f32.mrf.mxu0  ;;  %v7891_v7 = vadd.f32 %v7637_v50, %v1551_v9  ;;  %v6131_v50 = vld [vmem:[#allocation2 + $0x168] sm:$0xff]  ;;  %5930 = vmatpush3.msra.mxu1 %v3760_v61 }
 0x24c   : > { %v5509_v49 = vpop.f32.mrf.mxu1  ;;  %5844 = vmatmul.mubr.msk.f32.gmra.mxu1 %vm740_vm1, %v6130_v32  ;;  %v6133_v32 = vld [vmem:[#allocation2 + $0x188] sm:$0xff] }
 0x24d   : > { %v1561_v52 = vadd.f32 %v5509_v49, %v7641_v63  ;;  %v7903_v39 = vpop.f32.mrf.mxu0  ;;  %5846 = vmatprep.mubr.msk.f32.mxu1 %vm740_vm1, %v6131_v50  ;;  %v7907_v29 = vadd.f32 %v7647_v62, %v1546_v15  ;;  %v6132_v49 = vld [vmem:[#allocation2 + $0x170] sm:$0xff] }
 0x24e   : > { %v1555_v10 = vpop.f32.mrf.mxu1 }
 0x24f   : > { %v7912_v9 = vadd.f32 %v1555_v10, %v7651_v19  ;;  %v7914_v38 = vpop.f32.mrf.mxu0  ;;  %v7917_v63 = vadd.f32 %v7653_v37, %v1561_v52  ;;  %v3759_v52 = vld [vmem:[%s8751_s6 + $0x18] sm:$0xff] }
 0x250   : > { %v5512_v24 = vpop.f32.mrf.mxu1  ;;  %5847 = vmatmul.mubr.msk.f32.gmra.mxu1 %vm740_vm1, %v6132_v49  ;;  %5931 = vmatprep.subr.mxu1 %v3759_v52 }
 0x251   : > { %v1571_v62 = vadd.f32 %v5512_v24, %v7657_v3  ;;  %v7921_v15 = vpop.f32.mrf.mxu0  ;;  %5849 = vmatprep.mubr.msk.f32.mxu1 %vm740_vm1, %v6133_v32  ;;  %v6134_v3 = vld [vmem:[#allocation2 + $0x190] sm:$0xff]  ;;  %5932 = vmatpush3.msra.mxu1 %v3759_v52 }
 0x252   : > { %v1565_v61 = vpop.f32.mrf.mxu1 }
 0x253   : > { %v7925_v19 = vadd.f32 %v1565_v61, %v7667_v43  ;;  %v7927_v50 = vpop.f32.mrf.mxu0  ;;  %v7930_v37 = vadd.f32 %v7669_v35, %v1571_v62  ;;  %v6135_v43 = vld [vmem:[#allocation2 + $0x1a8] sm:$0xff] }
 0x254   : > { %v5515_v10 = vpop.f32.mrf.mxu1  ;;  %5850 = vmatmul.mubr.msk.f32.gmra.mxu1 %vm740_vm1, %v6134_v3  ;;  %v6136_v3 = vld [vmem:[#allocation2 + $0x1b0] sm:$0xff] }
 0x255   : > { %v1581_v24 = vadd.f32 %v5515_v10, %v7673_v58  ;;  %v7937_v49 = vpop.f32.mrf.mxu0  ;;  %5852 = vmatprep.mubr.msk.f32.mxu1 %vm740_vm1, %v6135_v43 }
 0x256   : > { %v1575_v32 = vpop.f32.mrf.mxu1 }
 0x257   : > { %v7941_v35 = vadd.f32 %v1575_v32, %v7683_v21  ;;  %v7943_v62 = vpop.f32.mrf.mxu0  ;;  %v7946_v61 = vadd.f32 %v7685_v28, %v1581_v24  ;;  %v3758_v24 = vld [vmem:[%s8751_s6 + $0x10] sm:$0xff] }
 0x258   : > { %v5518_v25 = vpop.f32.mrf.mxu1  ;;  %5853 = vmatmul.mubr.msk.f32.gmra.mxu1 %vm740_vm1, %v6136_v3  ;;  %5933 = vmatprep.subr.mxu1 %v3758_v24 }
 0x259   : > { %v1591_v58 = vadd.f32 %v5518_v25, %v7689_v5  ;;  %v7950_v10 = vpop.f32.mrf.mxu0  ;;  %5855 = vmatprep.mubr.msk.f32.mxu1 %vm740_vm1, %v6137_v42  ;;  %v7967_v5 = vld [vmem:[%s8750_s5 + $0x8] sm:$0xff]  ;;  %v6138_v42 = vld [vmem:[#allocation2 + $0x1d0] sm:$0xff]  ;;  %5934 = vmatpush3.msra.mxu1 %v3758_v24 }
 0x25a   : > { %v1585_v52 = vpop.f32.mrf.mxu1  ;;  %5991 = vmatprep.subr.mxu0 %v7967_v5 }
 0x25b   : > { %v7954_v21 = vadd.f32 %v1585_v52, %v7699_v36  ;;  %v7956_v43 = vpop.f32.mrf.mxu0  ;;  %v7959_v28 = vadd.f32 %v7701_v31, %v1591_v58  ;;  %v6139_v31 = vld [vmem:[#allocation2 + $0x1e8] sm:$0xff]  ;;  %5992 = vmatpush3.msra.mxu0 %v7967_v5 }
 0x25c   : > { %v5521_v25 = vpop.f32.mrf.mxu1  ;;  %5856 = vmatmul.mubr.msk.f32.gmra.mxu1 %vm740_vm1, %v6138_v42 }
 0x25d   : > { %v1601_v36 = vadd.f32 %v5521_v25, %v7705_v41  ;;  %v7971_v32 = vpop.f32.mrf.mxu0  ;;  %5858 = vmatprep.mubr.msk.f32.mxu1 %vm740_vm1, %v6139_v31  ;;  %v6140_v25 = vld [vmem:[#allocation2 + $0x1f0] sm:$0xff] }
 0x25e   : > { %v1595_v3 = vpop.f32.mrf.mxu1 }
 0x25f   : > { %v7977_v58 = vadd.f32 %v1595_v3, %v7715_v16  ;;  %v7979_v52 = vpop.f32.mrf.mxu0  ;;  %v7982_v42 = vadd.f32 %v7719_v30, %v1601_v36  ;;  %v3757_v36 = vld [vmem:[%s8751_s6 + $0x8] sm:$0xff] }
 0x260   : > { %v5524_v41 = vpop.f32.mrf.mxu1  ;;  %5859 = vmatmul.mubr.msk.f32.gmra.mxu1 %vm740_vm1, %v6140_v25  ;;  %5935 = vmatprep.subr.mxu1 %v3757_v36 }
 0x261   : > { %v1611_v31 = vadd.f32 %v5524_v41, %v7723_v11  ;;  %v7986_v60 = vpop.f32.mrf.mxu0  ;;  %5861 = vmatprep.mubr.msk.f32.mxu1 %vm740_vm1, %v7358_v47  ;;  %v8844_v11 = vld [vmem:[#allocation22_spill] sm:$0xff]  ;;  %5936 = vmatpush3.msra.mxu1 %v3757_v36  ;;  %v6141_v36 = vld [vmem:[%s6478_s19] sm:$0xff] }
 0x262   : > { %v1605_v24 = vpop.f32.mrf.mxu1 }
 0x263   : > { %v7991_v16 = vadd.f32 %v1605_v24, %v7735_v51  ;;  %v7993_v3 = vpop.f32.mrf.mxu0  ;;  %v7996_v30 = vadd.f32 %v7737_v55, %v1611_v31  ;;  %v8846_v51 = vld [vmem:[#allocation23_spill] sm:$0xff]  ;;  %v8847_v31 = vld [vmem:[#allocation25_spill] sm:$0xff] }
 0x264   : > { %8843 = vst [vmem:[#allocation37_spill] sm:$0xff] %v7993_v3  ;;  %v5527_v25 = vpop.f32.mrf.mxu1  ;;  %5862 = vmatmul.mubr.msk.f32.gmra.mxu1 %vm740_vm1, %v8844_v11  ;;  %v1481_v24 = vadd.f32 %v7770_v14, %v8847_v31 }
 0x265   : > { %v1621_v47 = vadd.f32 %v5527_v25, %v7742_v12  ;;  %v8004_v41 = vpop.f32.mrf.mxu0  ;;  %5864 = vmatprep.mubr.msk.f32.mxu1 %vm740_vm1, %v8846_v51  ;;  %v8850_v12 = vld [vmem:[#allocation24_spill] sm:$0xff]  ;;  %v8851_v25 = vld [vmem:[#allocation19_spill] sm:$0xff] }
 0x266   : > { %8845 = vst [vmem:[#allocation22_spill] sm:$0xff] %v8004_v41  ;;  %v1615_v55 = vpop.f32.mrf.mxu1 }
 0x267   : > { %v8011_v6 = vadd.f32 %v1615_v55, %v7751_v48  ;;  %v8013_v27 = vpop.f32.mrf.mxu0  ;;  %v8016_v11 = vadd.f32 %v7754_v18, %v1621_v47  ;;  %v8852_v48 = vld [vmem:[#allocation21_spill] sm:$0xff]  ;;  %v8853_v18 = vld [vmem:[#allocation26_spill] sm:$0xff] }
 0x268   : > { %8849 = vst [vmem:[#allocation25_spill] sm:$0xff] %v8013_v27  ;;  %v5530_v3 = vpop.f32.mrf.mxu1  ;;  %5865 = vmatmul.mubr.msk.f32.gmra.mxu1 %vm740_vm1, %v8850_v12  ;;  %v2026_v47 = vadd.f32 %v8853_v18, %v1481_v24  ;;  %v8854_v27 = vld [vmem:[#allocation27_spill] sm:$0xff]  ;;  %v3752_v12 = vld [vmem:[%s8750_s5] sm:$0xff] }
 0x269   : > { %8848 = vst [vmem:[#allocation23_spill] sm:$0xff] %v8011_v6  ;;  %v1631_v41 = vadd.f32 %v5530_v3, %v8851_v25  ;;  %v8021_v51 = vpop.f32.mrf.mxu0  ;;  %5939 = vmatprep.mubr.msk.f32.mxu1 %vm386_vm0, %v6141_v36  ;;  %v3756_v3 = vld [vmem:[%s8751_s6] sm:$0xff]  ;;  %5993 = vmatprep.subr.mxu0 %v3752_v12 }
 0x26a   : > { %v1625_v14 = vpop.f32.mrf.mxu1  ;;  %5937 = vmatprep.subr.mxu1 %v3756_v3  ;;  %5994 = vmatpush3.msra.mxu0 %v3752_v12 }
 0x26b   : > { %v8026_v55 = vadd.f32 %v1625_v14, %v8852_v48  ;;  %v8028_v31 = vpop.f32.mrf.mxu0  ;;  %v8032_v6 = vadd.f32 %v8854_v27, %v1631_v41  ;;  %5938 = vmatpush3.msra.mxu1 %v3756_v3  ;;  %v6142_v27 = vld [vmem:[%s6478_s19 + $0x8] sm:$0xff] }
 0x26c   : > { %v5597_v25 = vpop.f32.mrf.mxu1  ;;  %5940 = vmatmul.mubr.msk.f32.vlgmr.msra.gmra.mxu1 %vm386_vm0, %v6142_v27  ;;  %6043 = vmatprep.subr.mxu1 %v7830_v23 }
 0x26d   : > { %v2300_v36 = vadd.f32 %v5597_v25, %v2026_v47  ;;  %v8040_v14 = vpop.f32.mrf.mxu0  ;;  %6047 = vmatpush3.msra.mxu1 %v7830_v23  ;;  %v6143_v47 = vld [vmem:[%s6478_s19 + $0x10] sm:$0xff] }
 0x26e   : > { %v2140_v24 = vpop.f32.mrf.mxu1  ;;  %5942 = vmatprep.mubr.msk.f32.mxu1 %vm386_vm0, %v6143_v47  ;;  %6044 = vmatprep.subr.mxu1 %v7899_v17 }
 0x26f   : > { %v8046_v41 = vadd.f32 %v2140_v24, %v7785_v53  ;;  %v8048_v48 = vpop.f32.mrf.mxu0  ;;  %v8051_v18 = vadd.f32 %v7777_v54, %v2300_v36  ;;  %6048 = vmatpush3.msra.mxu1 %v7899_v17  ;;  %v6144_v24 = vld [vmem:[%s6478_s19 + $0x18] sm:$0xff]  ;;  %v8856_v36 = vld [vmem:[#allocation30_spill] sm:$0xff] }
 0x270   : > { %v5600_v3 = vpop.f32.mrf.mxu1  ;;  %5943 = vmatmul.mubr.msk.f32.gmra.mxu1 %vm386_vm0, %v6144_v24  ;;  %6045 = vmatprep.subr.mxu1 %v7967_v5 }
 0x271   : > { %v2302_v25 = vadd.f32 %v5600_v3, %v7791_v57  ;;  %v8058_v27 = vpop.f32.mrf.mxu0  ;;  %v6145_v57 = vld [vmem:[%s6478_s19 + $0x20] sm:$0xff]  ;;  %6049 = vmatpush3.msra.mxu1 %v7967_v5 }
 0x272   : > { %v2150_v53 = vpop.f32.mrf.mxu1  ;;  %5945 = vmatprep.mubr.msk.f32.mxu1 %vm386_vm0, %v6145_v57  ;;  %6046 = vmatprep.subr.mxu1 %v3752_v12  ;;  %v6147_v57 = vld [vmem:[%s6478_s19 + $0x30] sm:$0xff] }
 0x273   : > { %v8065_v54 = vadd.f32 %v2150_v53, %v7802_v56  ;;  %v8067_v23 = vpop.f32.mrf.mxu0  ;;  %v8070_v47 = vadd.f32 %v8856_v36, %v2302_v25  ;;  %6050 = vmatpush3.msra.mxu1 %v3752_v12  ;;  %v6146_v53 = vld [vmem:[%s6478_s19 + $0x28] sm:$0xff] }
 0x274   : > { %8855 = vst [vmem:[#allocation24_spill] sm:$0xff] %v8067_v23  ;;  %v5603_v17 = vpop.f32.mrf.mxu1  ;;  %5946 = vmatmul.mubr.msk.f32.gmra.mxu1 %vm386_vm0, %v6146_v53  ;;  %v6148_v23 = vld [vmem:[%s6478_s19 + $0x38] sm:$0xff] }
 0x275   : > { %v2304_v3 = vadd.f32 %v5603_v17, %v7808_v1  ;;  %v8076_v24 = vpop.f32.mrf.mxu0  ;;  %5948 = vmatprep.mubr.msk.f32.mxu1 %vm386_vm0, %v6147_v57 }
 0x276   : > { %8857 = vst [vmem:[#allocation19_spill] sm:$0xff] %v8076_v24  ;;  %v2160_v56 = vpop.f32.mrf.mxu1 }
 0x277   : > { %v8081_v25 = vadd.f32 %v2160_v56, %v7816_v59  ;;  %v8083_v36 = vpop.f32.mrf.mxu0  ;;  %v8086_v5 = vadd.f32 %v7805_v46, %v2304_v3  ;;  %v6149_v3 = vld [vmem:[%s6478_s19 + $0x40] sm:$0xff] }
 0x278   : > { %v5606_v1 = vpop.f32.mrf.mxu1  ;;  %5949 = vmatmul.mubr.msk.f32.gmra.mxu1 %vm386_vm0, %v6148_v23 }
 0x279   : > { %v2306_v12 = vadd.f32 %v5606_v1, %v7822_v22  ;;  %v8091_v17 = vpop.f32.mrf.mxu0  ;;  %5951 = vmatprep.mubr.msk.f32.mxu1 %vm386_vm0, %v6149_v3 }
 0x27a   : > { %8858 = vst [vmem:[#allocation21_spill] sm:$0xff] %v8091_v17  ;;  %v2170_v24 = vpop.f32.mrf.mxu1  ;;  %v6150_v17 = vld [vmem:[%s6478_s19 + $0x48] sm:$0xff] }
 0x27b   : > { %v8096_v59 = vadd.f32 %v2170_v24, %v7838_v34  ;;  %v8098_v56 = vpop.f32.mrf.mxu0  ;;  %v8101_v46 = vadd.f32 %v7819_v0, %v2306_v12  ;;  %v6151_v24 = vld [vmem:[%s6478_s19 + $0x50] sm:$0xff] }
 0x27c   : > { %v5609_v22 = vpop.f32.mrf.mxu1  ;;  %5952 = vmatmul.mubr.msk.f32.gmra.mxu1 %vm386_vm0, %v6150_v17 }
 0x27d   : > { %v2308_v53 = vadd.f32 %v5609_v22, %v7846_v26  ;;  %v8106_v57 = vpop.f32.mrf.mxu0  ;;  %5954 = vmatprep.mubr.msk.f32.mxu1 %vm386_vm0, %v6151_v24 }
 0x27e   : > { %8859 = vst [vmem:[#allocation26_spill] sm:$0xff] %v8106_v57  ;;  %v2180_v1 = vpop.f32.mrf.mxu1  ;;  %v6152_v57 = vld [vmem:[%s6478_s19 + $0x58] sm:$0xff] }
 0x27f   : > { %v8111_v34 = vadd.f32 %v2180_v1, %v7854_v33  ;;  %v8113_v23 = vpop.f32.mrf.mxu0  ;;  %v8116_v0 = vadd.f32 %v7843_v4, %v2308_v53  ;;  %v6153_v53 = vld [vmem:[%s6478_s19 + $0x60] sm:$0xff] }
 0x280   : > { %v5612_v26 = vpop.f32.mrf.mxu1  ;;  %5955 = vmatmul.mubr.msk.f32.gmra.mxu1 %vm386_vm0, %v6152_v57 }
 0x281   : > { %v2310_v12 = vadd.f32 %v5612_v26, %v7860_v40  ;;  %v8121_v3 = vpop.f32.mrf.mxu0  ;;  %5957 = vmatprep.mubr.msk.f32.mxu1 %vm386_vm0, %v6153_v53 }
 0x282   : > { %8860 = vst [vmem:[#allocation27_spill] sm:$0xff] %v8121_v3  ;;  %v2190_v22 = vpop.f32.mrf.mxu1  ;;  %v6154_v3 = vld [vmem:[%s6478_s19 + $0x68] sm:$0xff] }
 0x283   : > { %v8126_v33 = vadd.f32 %v2190_v22, %v7871_v2  ;;  %v8128_v17 = vpop.f32.mrf.mxu0  ;;  %v8131_v4 = vadd.f32 %v7857_v44, %v2310_v12  ;;  %v6155_v12 = vld [vmem:[%s6478_s19 + $0x70] sm:$0xff] }
 0x284   : > { %v5615_v40 = vpop.f32.mrf.mxu1  ;;  %5958 = vmatmul.mubr.msk.f32.gmra.mxu1 %vm386_vm0, %v6154_v3 }
 0x285   : > { %v2312_v1 = vadd.f32 %v5615_v40, %v7877_v45  ;;  %v8136_v24 = vpop.f32.mrf.mxu0  ;;  %5960 = vmatprep.mubr.msk.f32.mxu1 %vm386_vm0, %v6155_v12 }
 0x286   : > { %8861 = vst [vmem:[#allocation30_spill] sm:$0xff] %v8136_v24  ;;  %v2200_v26 = vpop.f32.mrf.mxu1  ;;  %v6156_v24 = vld [vmem:[%s6478_s19 + $0x78] sm:$0xff] }
 0x287   : > { %v8141_v2 = vadd.f32 %v2200_v26, %v7885_v8  ;;  %v8143_v57 = vpop.f32.mrf.mxu0  ;;  %v8146_v44 = vadd.f32 %v7874_v13, %v2312_v1  ;;  %v6157_v1 = vld [vmem:[%s6478_s19 + $0x80] sm:$0xff] }
 0x288   : > { %v5618_v22 = vpop.f32.mrf.mxu1  ;;  %5961 = vmatmul.mubr.msk.f32.gmra.mxu1 %vm386_vm0, %v6156_v24 }
 0x289   : > { %v2314_v45 = vadd.f32 %v5618_v22, %v7891_v7  ;;  %v8151_v53 = vpop.f32.mrf.mxu0  ;;  %5963 = vmatprep.mubr.msk.f32.mxu1 %vm386_vm0, %v6157_v1  ;;  %v8865_v22 = vld [vmem:[#allocation13_spill] sm:$0xff] }
 0x28a   : > { %8862 = vst [vmem:[#allocation38_spill] sm:$0xff] %v8151_v53  ;;  %v2210_v40 = vpop.f32.mrf.mxu1  ;;  %v2041_v53 = vadd.f32 %v8865_v22, %v7912_v9 }
 0x28b   : > { %v2313_v8 = vadd.f32 %v2210_v40, %v7907_v29  ;;  %v8156_v3 = vpop.f32.mrf.mxu0  ;;  %v8159_v13 = vadd.f32 %v7888_v20, %v2314_v45  ;;  %v6158_v40 = vld [vmem:[%s6478_s19 + $0x88] sm:$0xff] }
 0x28c   : > { %8863 = vst [vmem:[#allocation39_spill] sm:$0xff] %v8156_v3  ;;  %v5621_v26 = vpop.f32.mrf.mxu1  ;;  %5964 = vmatmul.mubr.msk.f32.gmra.mxu1 %vm386_vm0, %v6158_v40  ;;  %v6160_v40 = vld [vmem:[%s6478_s19 + $0x98] sm:$0xff] }
 0x28d   : > { %v2316_v7 = vadd.f32 %v5621_v26, %v7917_v63  ;;  %v8164_v12 = vpop.f32.mrf.mxu0  ;;  %v8169_v29 = vadd.f32 %v7903_v39, %v2313_v8  ;;  %v6159_v63 = vld [vmem:[%s6478_s19 + $0x90] sm:$0xff]  ;;  %v8869_v39 = vld [vmem:[#allocation14_spill] sm:$0xff] }
 0x28e   : > { %8864 = vst [vmem:[#allocation40_spill] sm:$0xff] %v8164_v12  ;;  %v2220_v24 = vpop.f32.mrf.mxu1  ;;  %5966 = vmatprep.mubr.msk.f32.mxu1 %vm386_vm0, %v6159_v63  ;;  %v2043_v8 = vadd.f32 %v8869_v39, %v7925_v19 }
 0x28f   : > { %v2315_v20 = vadd.f32 %v2220_v24, %v2041_v53  ;;  %v8173_v45 = vpop.f32.mrf.mxu0  ;;  %v8176_v1 = vadd.f32 %v7914_v38, %v2316_v7 }
 0x290   : > { %8866 = vst [vmem:[#allocation13_spill] sm:$0xff] %v8173_v45  ;;  %v5624_v26 = vpop.f32.mrf.mxu1  ;;  %5967 = vmatmul.mubr.msk.f32.gmra.mxu1 %vm386_vm0, %v6160_v40  ;;  %v6162_v40 = vld [vmem:[%s6478_s19 + $0xa8] sm:$0xff] }
 0x291   : > { %8867 = vst [vmem:[#allocation41_spill] sm:$0xff] %v8176_v1  ;;  %v2318_v9 = vadd.f32 %v5624_v26, %v7930_v37  ;;  %v8181_v22 = vpop.f32.mrf.mxu0  ;;  %v8186_v53 = vadd.f32 %v7921_v15, %v2315_v20  ;;  %v6161_v37 = vld [vmem:[%s6478_s19 + $0xa0] sm:$0xff]  ;;  %v8874_v15 = vld [vmem:[#allocation15_spill] sm:$0xff] }
 0x292   : > { %8868 = vst [vmem:[#allocation42_spill] sm:$0xff] %v8181_v22  ;;  %v2230_v24 = vpop.f32.mrf.mxu1  ;;  %5969 = vmatprep.mubr.msk.f32.mxu1 %vm386_vm0, %v6161_v37  ;;  %v2045_v20 = vadd.f32 %v8874_v15, %v7941_v35 }
 0x293   : > { %8870 = vst [vmem:[#allocation14_spill] sm:$0xff] %v8186_v53  ;;  %v2317_v38 = vadd.f32 %v2230_v24, %v2043_v8  ;;  %v8190_v7 = vpop.f32.mrf.mxu0  ;;  %v8193_v63 = vadd.f32 %v7927_v50, %v2318_v9 }
 0x294   : > { %8871 = vst [vmem:[#allocation43_spill] sm:$0xff] %v8190_v7  ;;  %v5627_v26 = vpop.f32.mrf.mxu1  ;;  %5970 = vmatmul.mubr.msk.f32.gmra.mxu1 %vm386_vm0, %v6162_v40  ;;  %v6164_v40 = vld [vmem:[%s6478_s19 + $0xb8] sm:$0xff] }
 0x295   : > { %8872 = vst [vmem:[#allocation44_spill] sm:$0xff] %v8193_v63  ;;  %v2320_v19 = vadd.f32 %v5627_v26, %v7946_v61  ;;  %v8198_v39 = vpop.f32.mrf.mxu0  ;;  %v8203_v8 = vadd.f32 %v7937_v49, %v2317_v38  ;;  %v6163_v61 = vld [vmem:[%s6478_s19 + $0xb0] sm:$0xff]  ;;  %v8879_v49 = vld [vmem:[#allocation16_spill] sm:$0xff] }
 0x296   : > { %8873 = vst [vmem:[#allocation45_spill] sm:$0xff] %v8198_v39  ;;  %v2240_v24 = vpop.f32.mrf.mxu1  ;;  %5972 = vmatprep.mubr.msk.f32.mxu1 %vm386_vm0, %v6163_v61  ;;  %v2047_v38 = vadd.f32 %v8879_v49, %v7954_v21 }
 0x297   : > { %8875 = vst [vmem:[#allocation15_spill] sm:$0xff] %v8203_v8  ;;  %v2319_v50 = vadd.f32 %v2240_v24, %v2045_v20  ;;  %v8207_v9 = vpop.f32.mrf.mxu0  ;;  %v8210_v37 = vadd.f32 %v7943_v62, %v2320_v19 }
 0x298   : > { %8876 = vst [vmem:[#allocation46_spill] sm:$0xff] %v8207_v9  ;;  %v5630_v26 = vpop.f32.mrf.mxu1  ;;  %5973 = vmatmul.mubr.msk.f32.gmra.mxu1 %vm386_vm0, %v6164_v40  ;;  %v6166_v40 = vld [vmem:[%s6478_s19 + $0xc8] sm:$0xff] }
 0x299   : > { %8877 = vst [vmem:[#allocation47_spill] sm:$0xff] %v8210_v37  ;;  %v2322_v35 = vadd.f32 %v5630_v26, %v7959_v28  ;;  %v8215_v15 = vpop.f32.mrf.mxu0  ;;  %v8220_v20 = vadd.f32 %v7950_v10, %v2319_v50  ;;  %v6165_v28 = vld [vmem:[%s6478_s19 + $0xc0] sm:$0xff] }
 0x29a   : > { %8878 = vst [vmem:[#allocation48_spill] sm:$0xff] %v8215_v15  ;;  %v2250_v24 = vpop.f32.mrf.mxu1  ;;  %5975 = vmatprep.mubr.msk.f32.mxu1 %vm386_vm0, %v6165_v28  ;;  %v8884_v10 = vld [vmem:[#allocation17_spill] sm:$0xff] }
 0x29b   : > { %8880 = vst [vmem:[#allocation16_spill] sm:$0xff] %v8220_v20  ;;  %v2321_v62 = vadd.f32 %v2250_v24, %v2047_v38  ;;  %v8224_v19 = vpop.f32.mrf.mxu0  ;;  %v8227_v61 = vadd.f32 %v7956_v43, %v2322_v35  ;;  %v2049_v50 = vadd.f32 %v8884_v10, %v7977_v58 }
 0x29c   : > { %8881 = vst [vmem:[#allocation49_spill] sm:$0xff] %v8224_v19  ;;  %v5633_v26 = vpop.f32.mrf.mxu1  ;;  %5976 = vmatmul.mubr.msk.f32.gmra.mxu1 %vm386_vm0, %v6166_v40  ;;  %v6168_v40 = vld [vmem:[%s6478_s19 + $0xd8] sm:$0xff] }
 0x29d   : > { %8882 = vst [vmem:[#allocation50_spill] sm:$0xff] %v8227_v61  ;;  %v2324_v21 = vadd.f32 %v5633_v26, %v7982_v42  ;;  %v8232_v49 = vpop.f32.mrf.mxu0  ;;  %v8237_v38 = vadd.f32 %v7971_v32, %v2321_v62  ;;  %v6167_v42 = vld [vmem:[%s6478_s19 + $0xd0] sm:$0xff]  ;;  %v8889_v32 = vld [vmem:[#allocation18_spill] sm:$0xff] }
 0x29e   : > { %8883 = vst [vmem:[#allocation51_spill] sm:$0xff] %v8232_v49  ;;  %v2260_v24 = vpop.f32.mrf.mxu1  ;;  %5978 = vmatprep.mubr.msk.f32.mxu1 %vm386_vm0, %v6167_v42  ;;  %v2051_v62 = vadd.f32 %v8889_v32, %v7991_v16  ;;  %v8892_v42 = vld [vmem:[#allocation37_spill] sm:$0xff]  ;;  %v8897_v49 = vld [vmem:[#allocation22_spill] sm:$0xff] }
 0x29f   : > { %8885 = vst [vmem:[#allocation17_spill] sm:$0xff] %v8237_v38  ;;  %v2323_v43 = vadd.f32 %v2260_v24, %v2049_v50  ;;  %v8241_v35 = vpop.f32.mrf.mxu0  ;;  %v8244_v28 = vadd.f32 %v7979_v52, %v2324_v21 }
 0x2a0   : > { %8886 = vst [vmem:[#allocation52_spill] sm:$0xff] %v8241_v35  ;;  %v5636_v26 = vpop.f32.mrf.mxu1  ;;  %5979 = vmatmul.mubr.msk.f32.gmra.mxu1 %vm386_vm0, %v6168_v40  ;;  %v6170_v40 = vld [vmem:[%s6478_s19 + $0xe8] sm:$0xff] }
 0x2a1   : > { %8887 = vst [vmem:[#allocation53_spill] sm:$0xff] %v8244_v28  ;;  %v2326_v58 = vadd.f32 %v5636_v26, %v7996_v30  ;;  %v8249_v10 = vpop.f32.mrf.mxu0  ;;  %v8254_v50 = vadd.f32 %v7986_v60, %v2323_v43  ;;  %v6169_v30 = vld [vmem:[%s6478_s19 + $0xe0] sm:$0xff]  ;;  %v8895_v60 = vld [vmem:[#allocation23_spill] sm:$0xff]  ;;  %v8896_v43 = vld [vmem:[#allocation20_spill] sm:$0xff] }
 0x2a2   : > { %8888 = vst [vmem:[#allocation54_spill] sm:$0xff] %v8249_v10  ;;  %v2270_v24 = vpop.f32.mrf.mxu1  ;;  %5981 = vmatprep.mubr.msk.f32.mxu1 %vm386_vm0, %v6169_v30  ;;  %v2053_v10 = vadd.f32 %v8896_v43, %v8895_v60  ;;  %v8900_v30 = vld [vmem:[#allocation25_spill] sm:$0xff] }
 0x2a3   : > { %8890 = vst [vmem:[#allocation18_spill] sm:$0xff] %v8254_v50  ;;  %v2325_v52 = vadd.f32 %v2270_v24, %v2051_v62  ;;  %v8258_v21 = vpop.f32.mrf.mxu0  ;;  %v8261_v35 = vadd.f32 %v8892_v42, %v2326_v58 }
 0x2a4   : > { %8891 = vst [vmem:[#allocation55_spill] sm:$0xff] %v8258_v21  ;;  %v5639_v26 = vpop.f32.mrf.mxu1  ;;  %5982 = vmatmul.mubr.msk.f32.gmra.mxu1 %vm386_vm0, %v6170_v40 }
 0x2a5   : > { %8893 = vst [vmem:[#allocation37_spill] sm:$0xff] %v8261_v35  ;;  %v2328_v16 = vadd.f32 %v5639_v26, %v8016_v11  ;;  %v8266_v32 = vpop.f32.mrf.mxu0  ;;  %v8271_v62 = vadd.f32 %v8897_v49, %v2325_v52  ;;  %v6171_v11 = vld [vmem:[%s6478_s19 + $0xf0] sm:$0xff]  ;;  %v8903_v49 = vld [vmem:[#allocation28_spill] sm:$0xff] }
 0x2a6   : > { %8894 = vst [vmem:[#allocation56_spill] sm:$0xff] %v8266_v32  ;;  %v2280_v24 = vpop.f32.mrf.mxu1  ;;  %5984 = vmatprep.mubr.msk.f32.mxu1 %vm386_vm0, %v6171_v11  ;;  %v2055_v52 = vadd.f32 %v8903_v49, %v8026_v55 }
 0x2a7   : > { %8898 = vst [vmem:[#allocation23_spill] sm:$0xff] %v8271_v62  ;;  %v2327_v58 = vadd.f32 %v2280_v24, %v2053_v10  ;;  %v8275_v42 = vpop.f32.mrf.mxu0  ;;  %v8278_v21 = vadd.f32 %v8900_v30, %v2328_v16  ;;  %v6172_v24 = vld [vmem:[%s6478_s19 + $0xf8] sm:$0xff] }
 0x2a8   : > { %8899 = vst [vmem:[#allocation20_spill] sm:$0xff] %v8275_v42  ;;  %v5642_v26 = vpop.f32.mrf.mxu1  ;;  %5985 = vmatmul.mubr.msk.f32.gmra.mxu1 %vm386_vm0, %v6172_v24 }
 0x2a9   : > { %8901 = vst [vmem:[#allocation22_spill] sm:$0xff] %v8278_v21  ;;  %v2330_v60 = vadd.f32 %v5642_v26, %v8032_v6  ;;  %v8283_v43 = vpop.f32.mrf.mxu0  ;;  %v8288_v32 = vadd.f32 %v8021_v51, %v2327_v58 }
 0x2aa   : > { %8902 = vst [vmem:[#allocation25_spill] sm:$0xff] %v8283_v43  ;;  %v2290_v10 = vpop.f32.mrf.mxu1 }
 0x2ab   : > { %8904 = vst [vmem:[#allocation28_spill] sm:$0xff] %v8288_v32  ;;  %v2329_v16 = vadd.f32 %v2290_v10, %v2055_v52  ;;  %v8292_v40 = vpop.f32.mrf.mxu0  ;;  %v8295_v30 = vadd.f32 %v8028_v31, %v2330_v60 }
 0x2ac   : > { %8905 = vst [vmem:[#allocation57_spill] sm:$0xff] %v8292_v40  ;;  %v5709_v11 = vpop.f32.mrf.mxu1 }
 0x2ad   : > { %8906 = vst [vmem:[#allocation58_spill] sm:$0xff] %v8295_v30  ;;  %v8298_v6 = vadd.f32 %v8040_v14, %v2329_v16  ;;  %v8300_v26 = vpop.f32.mrf.mxu0 }
 0x2ae   : > { %8908 = vst [vmem:[#allocation60_spill] sm:$0xff] %v8300_v26  ;;  %v2678_v55 = vpop.f32.mrf.mxu1 }
 0x2af   : > { %8907 = vst [vmem:[#allocation59_spill] sm:$0xff] %v8298_v6  ;;  %v5877_v51 = vpop.f32.mrf.mxu0 }
 0x2b0   : > { %v5712_v49 = vpop.f32.mrf.mxu1 }
 0x2b1   : > { %v3490_v42 = vpop.f32.mrf.mxu0 }
 0x2b2   : > { %v2688_v58 = vpop.f32.mrf.mxu1 }
 0x2b3   : > { %v8304_v52 = vpop.f32.mrf.mxu0 }
 0x2b4   : > { %v5715_v43 = vpop.f32.mrf.mxu1 }
 0x2b5   : > { %v8310_v60 = vpop.f32.mrf.mxu0 }
 0x2b6   : > { %v2698_v32 = vpop.f32.mrf.mxu1 }
 0x2b7   : > { %v8316_v26 = vpop.f32.mrf.mxu0 }
 0x2b8   : > { %v8302_v24 = vpop.f32.mrf.mxu1 }
 0x2b9   : > { %v8322_v30 = vpop.f32.mrf.mxu0 }
 0x2ba   : > { %v8306_v10 = vpop.f32.mrf.mxu1 }
 0x2bb   : > { %v8328_v35 = vpop.f32.mrf.mxu0 }
 0x2bc   : > { %v8308_v31 = vpop.f32.mrf.mxu1 }
 0x2bd   : > { %v8334_v28 = vpop.f32.mrf.mxu0 }
 0x2be   : > { %v8312_v14 = vpop.f32.mrf.mxu1 }
 0x2bf   : > { %v8340_v61 = vpop.f32.mrf.mxu0 }
 0x2c0   : > { %v8314_v16 = vpop.f32.mrf.mxu1 }
 0x2c1   : > { %v8346_v20 = vpop.f32.mrf.mxu0 }
 0x2c2   : > { %v8318_v40 = vpop.f32.mrf.mxu1 }
 0x2c3   : > { %v8352_v8 = vpop.f32.mrf.mxu0 }
 0x2c4   : > { %v8320_v6 = vpop.f32.mrf.mxu1 }
 0x2c5   : > { %v8358_v45 = vpop.f32.mrf.mxu0 }
 0x2c6   : > { %v8324_v21 = vpop.f32.mrf.mxu1 }
 0x2c8   : > { %v8326_v62 = vpop.f32.mrf.mxu1 }
 0x2ca   : > { %v8330_v50 = vpop.f32.mrf.mxu1 }
 0x2cc   : > { %v8332_v19 = vpop.f32.mrf.mxu1 }
 0x2cd   : > { %8909 = vst [vmem:[#allocation61_spill] sm:$0xff] %v8332_v19 }
 0x2ce   : > { %v8336_v38 = vpop.f32.mrf.mxu1 }
 0x2cf   : > { %8910 = vst [vmem:[#allocation62_spill] sm:$0xff] %v8336_v38 }
 0x2d0   : > { %v8338_v15 = vpop.f32.mrf.mxu1 }
 0x2d1   : > { %8911 = vst [vmem:[#allocation63_spill] sm:$0xff] %v8338_v15 }
 0x2d2   : > { %v8342_v9 = vpop.f32.mrf.mxu1 }
 0x2d3   : > { %8912 = vst [vmem:[#allocation64_spill] sm:$0xff] %v8342_v9  ;;  %v8364_v9 = vpop.f32.mrf.mxu0 }
 0x2d4   : > { %v8344_v39 = vpop.f32.mrf.mxu1  ;;  %8920 = vst [vmem:[#allocation72_spill] sm:$0xff] %v8364_v9 }
 0x2d5   : > { %8913 = vst [vmem:[#allocation65_spill] sm:$0xff] %v8344_v39 }
 0x2d6   : > { %v8348_v7 = vpop.f32.mrf.mxu1 }
 0x2d7   : > { %8914 = vst [vmem:[#allocation66_spill] sm:$0xff] %v8348_v7  ;;  %v8370_v7 = vpop.f32.mrf.mxu0 }
 0x2d8   : > { %v8350_v37 = vpop.f32.mrf.mxu1  ;;  %8923 = vst [vmem:[#allocation75_spill] sm:$0xff] %v8370_v7 }
 0x2d9   : > { %8915 = vst [vmem:[#allocation67_spill] sm:$0xff] %v8350_v37  ;;  %v8379_v19 = vpop.f32.mrf.mxu0 }
 0x2da   : > { %v8354_v22 = vpop.f32.mrf.mxu1 }
 0x2db   : > { %8916 = vst [vmem:[#allocation68_spill] sm:$0xff] %v8354_v22  ;;  %v2838_v22 = vadd.f32 %v5709_v11, %v8051_v18 }
 0x2dc   : > { %v8356_v63 = vpop.f32.mrf.mxu1 }
 0x2dd   : > { %8917 = vst [vmem:[#allocation69_spill] sm:$0xff] %v8356_v63  ;;  %v8925_v63 = vld [vmem:[#allocation29_spill] sm:$0xff]  ;;  %v3112_v7 = vadd.f32 %v8048_v48, %v2838_v22 }
 0x2de   : > { %v8360_v15 = vpop.f32.mrf.mxu1  ;;  %v2565_v53 = vadd.f32 %v8925_v63, %v8046_v41  ;;  %v2842_v41 = vadd.f32 %v5715_v43, %v8086_v5  ;;  %v8931_v5 = vld [vmem:[#allocation19_spill] sm:$0xff] }
 0x2df   : > { %8918 = vst [vmem:[#allocation70_spill] sm:$0xff] %v8360_v15 }
 0x2e0   : > { %v8362_v12 = vpop.f32.mrf.mxu1  ;;  %v2837_v15 = vadd.f32 %v2678_v55, %v2565_v53  ;;  %v8929_v53 = vld [vmem:[#allocation32_spill] sm:$0xff]  ;;  %v8391_v55 = vpop.f32.mrf.mxu0 }
 0x2e1   : > { %8919 = vst [vmem:[#allocation71_spill] sm:$0xff] %v8362_v12  ;;  %v2569_v63 = vadd.f32 %v8929_v53, %v8081_v25  ;;  %v8932_v25 = vld [vmem:[#allocation33_spill] sm:$0xff] }
 0x2e2   : > { %v8366_v39 = vpop.f32.mrf.mxu1  ;;  %v3111_v11 = vadd.f32 %v8058_v27, %v2837_v15  ;;  %v8402_v43 = vpop.f32.mrf.mxu0 }
 0x2e3   : > { %8921 = vst [vmem:[#allocation73_spill] sm:$0xff] %v8366_v39  ;;  %v2840_v39 = vadd.f32 %v5712_v49, %v8070_v47  ;;  %v8930_v47 = vld [vmem:[#allocation24_spill] sm:$0xff] }
 0x2e4   : > { %v8368_v38 = vpop.f32.mrf.mxu1 }
 0x2e5   : > { %8922 = vst [vmem:[#allocation74_spill] sm:$0xff] %v8368_v38  ;;  %v8928_v38 = vld [vmem:[#allocation31_spill] sm:$0xff]  ;;  %v3114_v22 = vadd.f32 %v8930_v47, %v2840_v39 }
 0x2e6   : > { %v8372_v37 = vpop.f32.mrf.mxu1  ;;  %v2567_v9 = vadd.f32 %v8928_v38, %v8065_v54  ;;  %v8396_v54 = vld [vmem:[%s8749_s4] ss:$0 sm:$0xff]  ;;  %v2571_v38 = vadd.f32 %v8932_v25, %v8096_v59 }
 0x2e7   : > { %8924 = vst [vmem:[#allocation76_spill] sm:$0xff] %v8372_v37 }
 0x2e8   : > { %v8377_v3 = vpop.f32.mrf.mxu1  ;;  %v2839_v1 = vadd.f32 %v2688_v58, %v2567_v9  ;;  %v3116_v58 = vadd.f32 %v8083_v36, %v2842_v41  ;;  %v2843_v59 = vadd.f32 %v8306_v10, %v2571_v38  ;;  %v2846_v36 = vadd.f32 %v8308_v31, %v8116_v0  ;;  %v8934_v41 = vld [vmem:[#allocation34_spill] sm:$0xff] }
 0x2e9   : > { %8926 = vst [vmem:[#allocation29_spill] sm:$0xff] %v8377_v3 }
 0x2ea   : > { %v8381_v12 = vpop.f32.mrf.mxu1  ;;  %v3113_v15 = vadd.f32 %v8931_v5, %v2839_v1  ;;  %v8933_v1 = vld [vmem:[#allocation21_spill] sm:$0xff] }
 0x2eb   : > { %8927 = vst [vmem:[#allocation77_spill] sm:$0xff] %v8381_v12 }
 0x2ec   : > { %v5821_v37 = vpop.f32.mrf.mxu1 }
 0x2ed   : > { %v3378_v18 = vadd.f32 %v5821_v37, %v3112_v7  ;;  %v2841_v7 = vadd.f32 %v2698_v32, %v2569_v63 }
 0x2ee   : > { %v3218_v12 = vpop.f32.mrf.mxu1 }
 0x2ef   : > { %v3650_v3 = vadd.f32 %v5877_v51, %v3378_v18  ;;  %v3377_v48 = vadd.f32 %v3218_v12, %v3111_v11  ;;  %v2844_v12 = vadd.f32 %v8302_v24, %v8101_v46  ;;  %v3115_v11 = vadd.f32 %v8933_v1, %v2841_v7  ;;  %v8417_v24 = vpop.f32.mrf.mxu0 }
 0x2f0   : > { %v5824_v9 = vpop.f32.mrf.mxu1  ;;  %v2573_v46 = vadd.f32 %v8934_v41, %v8111_v34 }
 0x2f1   : > { %v3649_v27 = vadd.f32 %v3490_v42, %v3377_v48  ;;  %v3380_v37 = vadd.f32 %v5824_v9, %v3114_v22  ;;  %v3689_v49 = vadd.f32 %v8396_v54, %v3650_v3 }
 0x2f2   : > { %v3228_v51 = vpop.f32.mrf.mxu1  ;;  %v2845_v0 = vadd.f32 %v8312_v14, %v2573_v46  ;;  %v3120_v14 = vadd.f32 %v8113_v23, %v2846_v36 }
 0x2f3   : > { %v3688_v39 = vadd.f32 %v8396_v54, %v3649_v27  ;;  %v3652_v32 = vadd.f32 %v8304_v52, %v3380_v37  ;;  %v3379_v42 = vadd.f32 %v3228_v51, %v3113_v15  ;;  %v3721_v48 = vmax.f32 %v3689_v49, 0.0  ;;  %v8935_v37 = vld [vmem:[#allocation26_spill] sm:$0xff]  ;;  %v8936_v15 = vld [vmem:[#allocation35_spill] sm:$0xff] }
 0x2f4   : > { %v5827_v18 = vpop.f32.mrf.mxu1  ;;  %v3117_v5 = vadd.f32 %v8935_v37, %v2843_v59  ;;  %v2575_v25 = vadd.f32 %v8936_v15, %v8126_v33  ;;  %v2848_v51 = vadd.f32 %v8314_v16, %v8131_v4  ;;  %v8937_v33 = vld [vmem:[#allocation27_spill] sm:$0xff]  ;;  %v2850_v4 = vadd.f32 %v8320_v6, %v8146_v44  ;;  %v8938_v16 = vld [vmem:[#allocation36_spill] sm:$0xff] }
 0x2f5   : > { %v3720_v53 = vmax.f32 %v3688_v39, 0.0  ;;  %v3651_v63 = vadd.f32 %v8310_v60, %v3379_v42  ;;  %v3382_v3 = vadd.f32 %v5827_v18, %v3116_v58  ;;  %v3691_v52 = vadd.f32 %v8396_v54, %v3652_v32 }
 0x2f6   : > { %v3238_v47 = vpop.f32.mrf.mxu1  ;;  %v3118_v60 = vadd.f32 %v8098_v56, %v2844_v12  ;;  %v3119_v32 = vadd.f32 %v8937_v33, %v2845_v0  ;;  %v2847_v42 = vadd.f32 %v8318_v40, %v2575_v25  ;;  %v8947_v33 = vld [vmem:[#allocation75_spill] sm:$0xff] }
 0x2f7   : > { %v3690_v22 = vadd.f32 %v8396_v54, %v3651_v63  ;;  %v3654_v10 = vadd.f32 %v8316_v26, %v3382_v3  ;;  %v3381_v7 = vadd.f32 %v3238_v47, %v3115_v11  ;;  %5995 = vmatprep.mubr.msk.f32.mxu0 %vm740_vm1, %v3720_v53  ;;  %v8430_v26 = vpop.f32.mrf.mxu0  ;;  %v3723_v38 = vmax.f32 %v3691_v52, 0.0 }
 0x2f8   : > { %v5830_v31 = vpop.f32.mrf.mxu1  ;;  %5996 = vmatmul.mubr.msk.f32.vlgmr.msra.gmra.mxu0 %vm740_vm1, %v3721_v48  ;;  %v8939_v48 = vld [vmem:[#allocation30_spill] sm:$0xff] }
 0x2f9   : > { %v3722_v34 = vmax.f32 %v3690_v22, 0.0  ;;  %v3653_v9 = vadd.f32 %v8322_v30, %v3381_v7  ;;  %v3384_v27 = vadd.f32 %v5830_v31, %v3118_v60  ;;  %v3693_v49 = vadd.f32 %v8396_v54, %v3654_v10  ;;  %v8447_v11 = vpop.f32.mrf.mxu0  ;;  %v8940_v31 = vld [vmem:[#allocation38_spill] sm:$0xff] }
 0x2fa   : > { %v3248_v56 = vpop.f32.mrf.mxu1  ;;  %v3121_v52 = vadd.f32 %v8939_v48, %v2847_v42  ;;  %v3124_v7 = vadd.f32 %v8143_v57, %v2850_v4  ;;  %v8954_v48 = vld [vmem:[#allocation64_spill] sm:$0xff] }
 0x2fb   : > { %v3692_v58 = vadd.f32 %v8396_v54, %v3653_v9  ;;  %v3656_v30 = vadd.f32 %v8328_v35, %v3384_v27  ;;  %v3383_v12 = vadd.f32 %v3248_v56, %v3117_v5  ;;  %5998 = vmatprep.mubr.msk.f32.mxu0 %vm740_vm1, %v3722_v34  ;;  %v2577_v35 = vadd.f32 %v8938_v16, %v8141_v2  ;;  %v8458_v47 = vpop.f32.mrf.mxu0  ;;  %v8943_v56 = vld [vmem:[#allocation72_spill] sm:$0xff] }
 0x2fc   : > { %v5833_v39 = vpop.f32.mrf.mxu1  ;;  %5999 = vmatmul.mubr.msk.f32.gmra.mxu0 %vm740_vm1, %v3723_v38  ;;  %v3725_v59 = vmax.f32 %v3693_v49, 0.0  ;;  %v2851_v9 = vadd.f32 %v8330_v50, %v8169_v29  ;;  %v8944_v29 = vld [vmem:[#allocation39_spill] sm:$0xff] }
 0x2fd   : > { %v3724_v18 = vmax.f32 %v3692_v58, 0.0  ;;  %v3655_v23 = vadd.f32 %v8334_v28, %v3383_v12  ;;  %v3386_v1 = vadd.f32 %v5833_v39, %v3120_v14  ;;  %v3695_v53 = vadd.f32 %v8396_v54, %v3656_v30  ;;  %v8474_v15 = vpop.f32.mrf.mxu0  ;;  %v8946_v58 = vld [vmem:[#allocation62_spill] sm:$0xff] }
 0x2fe   : > { %v3258_v63 = vpop.f32.mrf.mxu1  ;;  %v3122_v28 = vadd.f32 %v8128_v17, %v2848_v51  ;;  %v2849_v44 = vadd.f32 %v8324_v21, %v2577_v35  ;;  %v2852_v17 = vadd.f32 %v8326_v62, %v8159_v13  ;;  %v8941_v13 = vld [vmem:[#allocation41_spill] sm:$0xff] }
 0x2ff   : > { %v3694_v3 = vadd.f32 %v8396_v54, %v3655_v23  ;;  %v3658_v40 = vadd.f32 %v8340_v61, %v3386_v1  ;;  %v3385_v36 = vadd.f32 %v3258_v63, %v3119_v32  ;;  %6001 = vmatprep.mubr.msk.f32.mxu0 %vm740_vm1, %v3724_v18  ;;  %v3727_v22 = vmax.f32 %v3695_v53, 0.0  ;;  %v8942_v62 = vld [vmem:[#allocation61_spill] sm:$0xff]  ;;  %v8948_v18 = vld [vmem:[#allocation40_spill] sm:$0xff]  ;;  %v8486_v1 = vpop.f32.mrf.mxu0 }
 0x300   : > { %v5836_v6 = vpop.f32.mrf.mxu1  ;;  %6002 = vmatmul.mubr.msk.f32.gmra.mxu0 %vm740_vm1, %v3725_v59  ;;  %v3123_v34 = vadd.f32 %v8940_v31, %v2849_v44  ;;  %v2854_v5 = vadd.f32 %v8942_v62, %v8941_v13  ;;  %v3126_v50 = vadd.f32 %v8944_v29, %v2852_v17  ;;  %v3125_v23 = vadd.f32 %v8948_v18, %v2851_v9  ;;  %v8949_v59 = vld [vmem:[#allocation13_spill] sm:$0xff]  ;;  %v8950_v63 = vld [vmem:[#allocation44_spill] sm:$0xff]  ;;  %v8961_v29 = vld [vmem:[#allocation46_spill] sm:$0xff] }
 0x301   : > { %v3726_v2 = vmax.f32 %v3694_v3, 0.0  ;;  %v3657_v41 = vadd.f32 %v8346_v20, %v3385_v36  ;;  %v3388_v46 = vadd.f32 %v5836_v6, %v3122_v28  ;;  %v3697_v61 = vadd.f32 %v8396_v54, %v3658_v40  ;;  %v8951_v3 = vld [vmem:[#allocation63_spill] sm:$0xff]  ;;  %v8956_v17 = vld [vmem:[#allocation65_spill] sm:$0xff] }
 0x302   : > { %v3268_v10 = vpop.f32.mrf.mxu1  ;;  %v3128_v53 = vadd.f32 %v8949_v59, %v2854_v5  ;;  %v2856_v40 = vadd.f32 %v8951_v3, %v8950_v63  ;;  %v8965_v18 = vld [vmem:[#allocation17_spill] sm:$0xff] }
 0x303   : > { %v3696_v21 = vadd.f32 %v8396_v54, %v3657_v41  ;;  %v3660_v60 = vadd.f32 %v8352_v8, %v3388_v46  ;;  %v3387_v0 = vadd.f32 %v3268_v10, %v3121_v52  ;;  %6004 = vmatprep.mubr.msk.f32.mxu0 %vm740_vm1, %v3726_v2  ;;  %v3729_v8 = vmax.f32 %v3697_v61, 0.0  ;;  %v8952_v2 = vld [vmem:[#allocation42_spill] sm:$0xff]  ;;  %v8953_v46 = vld [vmem:[#allocation15_spill] sm:$0xff]  ;;  %v8968_v63 = vld [vmem:[#allocation69_spill] sm:$0xff] }
 0x304   : > { %v5839_v20 = vpop.f32.mrf.mxu1  ;;  %6005 = vmatmul.mubr.msk.f32.gmra.mxu0 %vm740_vm1, %v3727_v22  ;;  %v2855_v52 = vadd.f32 %v8954_v48, %v8953_v46  ;;  %v8970_v48 = vld [vmem:[#allocation18_spill] sm:$0xff] }
 0x305   : > { %v3728_v27 = vmax.f32 %v3696_v21, 0.0  ;;  %v3659_v57 = vadd.f32 %v8358_v45, %v3387_v0  ;;  %v3390_v37 = vadd.f32 %v5839_v20, %v3124_v7  ;;  %v3699_v25 = vadd.f32 %v8396_v54, %v3660_v60  ;;  %v8945_v45 = vld [vmem:[#allocation14_spill] sm:$0xff]  ;;  %v8955_v7 = vld [vmem:[#allocation47_spill] sm:$0xff]  ;;  %v8502_v60 = vpop.f32.mrf.mxu0 }
 0x306   : > { %v3278_v38 = vpop.f32.mrf.mxu1  ;;  %v2853_v30 = vadd.f32 %v8946_v58, %v8945_v45  ;;  %v2858_v21 = vadd.f32 %v8956_v17, %v8955_v7  ;;  %v8962_v45 = vld [vmem:[#allocation50_spill] sm:$0xff]  ;;  %v8963_v58 = vld [vmem:[#allocation67_spill] sm:$0xff] }
 0x307   : > { %v3698_v49 = vadd.f32 %v8396_v54, %v3659_v57  ;;  %v3662_v14 = vadd.f32 %v8943_v56, %v3390_v37  ;;  %v3389_v51 = vadd.f32 %v3278_v38, %v3123_v34  ;;  %6007 = vmatprep.mubr.msk.f32.mxu0 %vm740_vm1, %v3728_v27  ;;  %v3731_v4 = vmax.f32 %v3699_v25, 0.0  ;;  %v8957_v27 = vld [vmem:[#allocation43_spill] sm:$0xff]  ;;  %v8959_v37 = vld [vmem:[#allocation66_spill] sm:$0xff]  ;;  %v8960_v38 = vld [vmem:[#allocation45_spill] sm:$0xff]  ;;  %v5913_v56 = vpop.f32.mrf.mxu0 }
 0x308   : > { %v5842_v12 = vpop.f32.mrf.mxu1  ;;  %6008 = vmatmul.mubr.msk.f32.gmra.mxu0 %vm740_vm1, %v3729_v8  ;;  %v3127_v41 = vadd.f32 %v8952_v2, %v2853_v30  ;;  %v3130_v57 = vadd.f32 %v8957_v27, %v2856_v40  ;;  %v2860_v30 = vadd.f32 %v8963_v58, %v8962_v45  ;;  %v8972_v17 = vld [vmem:[#allocation51_spill] sm:$0xff] }
 0x309   : > { %v3730_v39 = vmax.f32 %v3698_v49, 0.0  ;;  %v3661_v32 = vadd.f32 %v8947_v33, %v3389_v51  ;;  %v3392_v42 = vadd.f32 %v5842_v12, %v3126_v50  ;;  %v3701_v16 = vadd.f32 %v8396_v54, %v3662_v14  ;;  %v3610_v40 = vpop.f32.mrf.mxu0  ;;  %v8975_v27 = vld [vmem:[#allocation71_spill] sm:$0xff] }
 0x30a   : > { %v3288_v35 = vpop.f32.mrf.mxu1  ;;  %v3129_v49 = vadd.f32 %v8960_v38, %v2855_v52  ;;  %v3132_v50 = vadd.f32 %v8961_v29, %v2858_v21  ;;  %v8980_v29 = vld [vmem:[#allocation74_spill] sm:$0xff] }
 0x30b   : > { %v3700_v36 = vadd.f32 %v8396_v54, %v3661_v32  ;;  %v3664_v28 = vadd.f32 %v8379_v19, %v3392_v42  ;;  %v3391_v44 = vadd.f32 %v3288_v35, %v3125_v23  ;;  %6010 = vmatprep.mubr.msk.f32.mxu0 %vm740_vm1, %v3730_v39  ;;  %v3733_v19 = vmax.f32 %v3701_v16, 0.0  ;;  %v8964_v32 = vld [vmem:[#allocation48_spill] sm:$0xff] }
 0x30c   : > { %v5845_v6 = vpop.f32.mrf.mxu1  ;;  %6011 = vmatmul.mubr.msk.f32.gmra.mxu0 %vm740_vm1, %v3731_v4  ;;  %v8966_v23 = vld [vmem:[#allocation68_spill] sm:$0xff] }
 0x30d   : > { %v3732_v22 = vmax.f32 %v3700_v36, 0.0  ;;  %v3663_v61 = vadd.f32 %v8391_v55, %v3391_v44  ;;  %v3394_v10 = vadd.f32 %v5845_v6, %v3128_v53  ;;  %v3703_v0 = vadd.f32 %v8396_v54, %v3664_v28  ;;  %v8958_v55 = vld [vmem:[#allocation16_spill] sm:$0xff]  ;;  %v8967_v53 = vld [vmem:[#allocation53_spill] sm:$0xff] }
 0x30e   : > { %v3298_v20 = vpop.f32.mrf.mxu1  ;;  %v2857_v13 = vadd.f32 %v8959_v37, %v8958_v55  ;;  %v2859_v4 = vadd.f32 %v8966_v23, %v8965_v18  ;;  %v2862_v3 = vadd.f32 %v8968_v63, %v8967_v53  ;;  %v8983_v18 = vld [vmem:[#allocation76_spill] sm:$0xff] }
 0x30f   : > { %v3702_v31 = vadd.f32 %v8396_v54, %v3663_v61  ;;  %v3666_v34 = vadd.f32 %v8402_v43, %v3394_v10  ;;  %v3393_v9 = vadd.f32 %v3298_v20, %v3127_v41  ;;  %6013 = vmatprep.mubr.msk.f32.mxu0 %vm740_vm1, %v3732_v22  ;;  %v3735_v14 = vmax.f32 %v3703_v0, 0.0  ;;  %v8969_v41 = vld [vmem:[#allocation49_spill] sm:$0xff] }
 0x310   : > { %v5848_v62 = vpop.f32.mrf.mxu1  ;;  %6014 = vmatmul.mubr.msk.f32.gmra.mxu0 %vm740_vm1, %v3733_v19  ;;  %v3131_v42 = vadd.f32 %v8964_v32, %v2857_v13  ;;  %v3134_v46 = vadd.f32 %v8969_v41, %v2860_v30  ;;  %v3133_v21 = vadd.f32 %v8972_v17, %v2859_v4  ;;  %v5916_v19 = vpop.f32.mrf.mxu0 }
 0x311   : > { %v3734_v5 = vmax.f32 %v3702_v31, 0.0  ;;  %v3665_v8 = vadd.f32 %v8417_v24, %v3393_v9  ;;  %v3396_v25 = vadd.f32 %v5848_v62, %v3130_v57  ;;  %v3705_v43 = vadd.f32 %v8396_v54, %v3666_v34  ;;  %v8973_v31 = vld [vmem:[#allocation52_spill] sm:$0xff]  ;;  %v8974_v9 = vld [vmem:[#allocation37_spill] sm:$0xff]  ;;  %v8976_v62 = vld [vmem:[#allocation54_spill] sm:$0xff] }
 0x312   : > { %v3308_v51 = vpop.f32.mrf.mxu1  ;;  %v3136_v34 = vadd.f32 %v8973_v31, %v2862_v3  ;;  %v2864_v57 = vadd.f32 %v8975_v27, %v8974_v9  ;;  %v3620_v45 = vpop.f32.mrf.mxu0  ;;  %v8991_v27 = vld [vmem:[#allocation57_spill] sm:$0xff] }
 0x313   : > { %v3704_v12 = vadd.f32 %v8396_v54, %v3665_v8  ;;  %v3668_v39 = vadd.f32 %v8430_v26, %v3396_v25  ;;  %v3395_v33 = vadd.f32 %v3308_v51, %v3129_v49  ;;  %6016 = vmatprep.mubr.msk.f32.mxu0 %vm740_vm1, %v3734_v5  ;;  %v3737_v26 = vmax.f32 %v3705_v43, 0.0  ;;  %v8977_v8 = vld [vmem:[#allocation23_spill] sm:$0xff]  ;;  %v8978_v25 = vld [vmem:[#allocation73_spill] sm:$0xff]  ;;  %v8979_v51 = vld [vmem:[#allocation22_spill] sm:$0xff] }
 0x314   : > { %v5851_v24 = vpop.f32.mrf.mxu1  ;;  %6017 = vmatmul.mubr.msk.f32.gmra.mxu0 %vm740_vm1, %v3735_v14  ;;  %v2863_v38 = vadd.f32 %v8978_v25, %v8977_v8  ;;  %v5919_v63 = vpop.f32.mrf.mxu0 }
 0x315   : > { %v3736_v16 = vmax.f32 %v3704_v12, 0.0  ;;  %v3667_v35 = vadd.f32 %v8447_v11, %v3395_v33  ;;  %v3398_v59 = vadd.f32 %v5851_v24, %v3132_v50  ;;  %v3707_v36 = vadd.f32 %v8396_v54, %v3668_v39  ;;  %v8971_v11 = vld [vmem:[#allocation70_spill] sm:$0xff]  ;;  %v8981_v24 = vld [vmem:[#allocation55_spill] sm:$0xff] }
 0x316   : > { %v3318_v28 = vpop.f32.mrf.mxu1  ;;  %v2861_v52 = vadd.f32 %v8971_v11, %v8970_v48  ;;  %v2866_v50 = vadd.f32 %v8980_v29, %v8979_v51  ;;  %v3138_v32 = vadd.f32 %v8981_v24, %v2864_v57  ;;  %v8988_v11 = vld [vmem:[#allocation25_spill] sm:$0xff] }
 0x317   : > { %v3706_v44 = vadd.f32 %v8396_v54, %v3667_v35  ;;  %v3670_v6 = vadd.f32 %v8458_v47, %v3398_v59  ;;  %v3397_v2 = vadd.f32 %v3318_v28, %v3131_v42  ;;  %6019 = vmatprep.mubr.msk.f32.mxu0 %vm740_vm1, %v3736_v16  ;;  %v3739_v0 = vmax.f32 %v3707_v36, 0.0  ;;  %v8982_v42 = vld [vmem:[#allocation28_spill] sm:$0xff] }
 0x318   : > { %v5854_v22 = vpop.f32.mrf.mxu1  ;;  %6020 = vmatmul.mubr.msk.f32.gmra.mxu0 %vm740_vm1, %v3737_v26  ;;  %v3135_v5 = vadd.f32 %v8976_v62, %v2861_v52  ;;  %v8984_v59 = vld [vmem:[#allocation56_spill] sm:$0xff] }
 0x319   : > { %v3738_v61 = vmax.f32 %v3706_v44, 0.0  ;;  %v3669_v10 = vadd.f32 %v8474_v15, %v3397_v2  ;;  %v3400_v7 = vadd.f32 %v5854_v22, %v3134_v46  ;;  %v3709_v47 = vadd.f32 %v8396_v54, %v3670_v6  ;;  %v8985_v36 = vld [vmem:[#allocation20_spill] sm:$0xff]  ;;  %v8986_v44 = vld [vmem:[#allocation58_spill] sm:$0xff]  ;;  %v8987_v6 = vld [vmem:[#allocation29_spill] sm:$0xff] }
 0x31a   : > { %v3328_v20 = vpop.f32.mrf.mxu1  ;;  %v3137_v53 = vadd.f32 %v8984_v59, %v2863_v38  ;;  %v3140_v28 = vadd.f32 %v8985_v36, %v2866_v50  ;;  %v2868_v2 = vadd.f32 %v8987_v6, %v8986_v44  ;;  %v8989_v22 = vld [vmem:[#allocation59_spill] sm:$0xff] }
 0x31b   : > { %v3708_v55 = vadd.f32 %v8396_v54, %v3669_v10  ;;  %v3672_v37 = vadd.f32 %v8486_v1, %v3400_v7  ;;  %v3399_v13 = vadd.f32 %v3328_v20, %v3133_v21  ;;  %6022 = vmatprep.mubr.msk.f32.mxu0 %vm740_vm1, %v3738_v61  ;;  %v3741_v1 = vmax.f32 %v3709_v47, 0.0  ;;  %v8990_v61 = vld [vmem:[#allocation77_spill] sm:$0xff] }
 0x31c   : > { %v5857_v15 = vpop.f32.mrf.mxu1  ;;  %6023 = vmatmul.mubr.msk.f32.gmra.mxu0 %vm740_vm1, %v3739_v0  ;;  %v2867_v10 = vadd.f32 %v8990_v61, %v8989_v22  ;;  %v3630_v0 = vpop.f32.mrf.mxu0  ;;  %v3142_v57 = vadd.f32 %v8991_v27, %v2868_v2 }
 0x31d   : > { %v3740_v49 = vmax.f32 %v3708_v55, 0.0  ;;  %v3671_v14 = vadd.f32 %v8502_v60, %v3399_v13  ;;  %v3402_v43 = vadd.f32 %v5857_v15, %v3136_v34  ;;  %v3711_v58 = vadd.f32 %v8396_v54, %v3672_v37 }
 0x31e   : > { %v3338_v30 = vpop.f32.mrf.mxu1  ;;  %v2865_v60 = vadd.f32 %v8983_v18, %v8982_v42  ;;  %v5922_v37 = vpop.f32.mrf.mxu0 }
 0x31f   : > { %v3710_v12 = vadd.f32 %v8396_v54, %v3671_v14  ;;  %v3674_v39 = vadd.f32 %v5913_v56, %v3402_v43  ;;  %v3401_v33 = vadd.f32 %v3338_v30, %v3135_v5  ;;  %6025 = vmatprep.mubr.msk.f32.mxu0 %vm740_vm1, %v3740_v49  ;;  %v3743_v3 = vmax.f32 %v3711_v58, 0.0  ;;  %v8992_v5 = vld [vmem:[#allocation60_spill] sm:$0xff] }
 0x320   : > { %v5860_v23 = vpop.f32.mrf.mxu1  ;;  %6026 = vmatmul.mubr.msk.f32.gmra.mxu0 %vm740_vm1, %v3741_v1  ;;  %v3139_v52 = vadd.f32 %v8988_v11, %v2865_v60  ;;  %v3141_v8 = vadd.f32 %v8992_v5, %v2867_v10  ;;  %v3640_v29 = vpop.f32.mrf.mxu0 }
 0x321   : > { %v3742_v4 = vmax.f32 %v3710_v12, 0.0  ;;  %v3673_v16 = vadd.f32 %v3610_v40, %v3401_v33  ;;  %v3404_v35 = vadd.f32 %v5860_v23, %v3138_v32  ;;  %v3713_v56 = vadd.f32 %v8396_v54, %v3674_v39 }
 0x322   : > { %v3348_v26 = vpop.f32.mrf.mxu1 }
 0x323   : > { %v3712_v41 = vadd.f32 %v8396_v54, %v3673_v16  ;;  %v3676_v46 = vadd.f32 %v5916_v19, %v3404_v35  ;;  %v3403_v48 = vadd.f32 %v3348_v26, %v3137_v53  ;;  %6028 = vmatprep.mubr.msk.f32.mxu0 %vm740_vm1, %v3742_v4  ;;  %v3745_v47 = vmax.f32 %v3713_v56, 0.0 }
 0x324   : > { %v5863_v40 = vpop.f32.mrf.mxu1  ;;  %6029 = vmatmul.mubr.msk.f32.gmra.mxu0 %vm740_vm1, %v3743_v3 }
 0x325   : > { %v3744_v7 = vmax.f32 %v3712_v41, 0.0  ;;  %v3675_v17 = vadd.f32 %v3620_v45, %v3403_v48  ;;  %v3406_v21 = vadd.f32 %v5863_v40, %v3140_v28  ;;  %v3715_v20 = vadd.f32 %v8396_v54, %v3676_v46  ;;  %v8601_v28 = vld [vmem:[%s8752_s7] ss:$0 sm:$0xff] }
 0x326   : > { %v3358_v31 = vpop.f32.mrf.mxu1 }
 0x327   : > { %v3714_v19 = vadd.f32 %v8396_v54, %v3675_v17  ;;  %v3678_v34 = vadd.f32 %v5919_v63, %v3406_v21  ;;  %v3405_v9 = vadd.f32 %v3358_v31, %v3139_v52  ;;  %6031 = vmatprep.mubr.msk.f32.mxu0 %vm740_vm1, %v3744_v7  ;;  %v3747_v25 = vmax.f32 %v3715_v20, 0.0 }
 0x328   : > { %v5866_v55 = vpop.f32.mrf.mxu1  ;;  %6032 = vmatmul.mubr.msk.f32.gmra.mxu0 %vm740_vm1, %v3745_v47 }
 0x329   : > { %v3746_v13 = vmax.f32 %v3714_v19, 0.0  ;;  %v3677_v15 = vadd.f32 %v3630_v0, %v3405_v9  ;;  %v3408_v62 = vadd.f32 %v5866_v55, %v3142_v57  ;;  %v3717_v38 = vadd.f32 %v8396_v54, %v3678_v34 }
 0x32a   : > { %v3368_v49 = vpop.f32.mrf.mxu1 }
 0x32b   : > { %v3716_v14 = vadd.f32 %v8396_v54, %v3677_v15  ;;  %v3680_v43 = vadd.f32 %v5922_v37, %v3408_v62  ;;  %v3407_v51 = vadd.f32 %v3368_v49, %v3141_v8  ;;  %6034 = vmatprep.mubr.msk.f32.mxu0 %vm740_vm1, %v3746_v13  ;;  %v3749_v1 = vmax.f32 %v3717_v38, 0.0 }
 0x32c   : > { %6035 = vmatmul.mubr.msk.f32.gmra.mxu0 %vm740_vm1, %v3747_v25  ;;  %v5941_v33 = vpop.f32.mrf.mxu1 }
 0x32d   : > { %v3748_v50 = vmax.f32 %v3716_v14, 0.0  ;;  %v3679_v45 = vadd.f32 %v3640_v29, %v3407_v51  ;;  %v3719_v58 = vadd.f32 %v8396_v54, %v3680_v43 }
 0x32e   : > { %v3830_v24 = vpop.f32.mrf.mxu1 }
 0x32f   : > { %v3718_v30 = vadd.f32 %v8396_v54, %v3679_v45  ;;  %6037 = vmatprep.mubr.msk.f32.mxu0 %vm740_vm1, %v3748_v50  ;;  %v3751_v39 = vmax.f32 %v3719_v58, 0.0 }
 0x330   : > { %6038 = vmatmul.mubr.msk.f32.gmra.mxu0 %vm740_vm1, %v3749_v1  ;;  %v5944_v32 = vpop.f32.mrf.mxu1 }
 0x331   : > { %v3750_v12 = vmax.f32 %v3718_v30, 0.0 }
 0x332   : > { %v3840_v42 = vpop.f32.mrf.mxu1 }
 0x333   : > { %6040 = vmatprep.mubr.msk.f32.mxu1 %vm740_vm1, %v3750_v12 }
 0x334   : > { %6041 = vmatmul.mubr.msk.f32.vlgmr.msra.gmra.mxu1 %vm740_vm1, %v3751_v39  ;;  %v5947_v18 = vpop.f32.mrf.mxu1 }
 0x336   : > { %v3850_v60 = vpop.f32.mrf.mxu1 }
 0x338   : > { %v5950_v23 = vpop.f32.mrf.mxu1 }
 0x33a   : > { %v3860_v4 = vpop.f32.mrf.mxu1 }
 0x33c   : > { %v5953_v16 = vpop.f32.mrf.mxu1 }
 0x33e   : > { %v3870_v54 = vpop.f32.mrf.mxu1 }
 0x340   : > { %v5956_v35 = vpop.f32.mrf.mxu1 }
 0x342   : > { %v8586_v59 = vpop.f32.mrf.mxu1 }
 0x344   : > { %v8588_v53 = vpop.f32.mrf.mxu1 }
 0x346   : > { %v8590_v63 = vpop.f32.mrf.mxu1 }
 0x348   : > { %v8592_v3 = vpop.f32.mrf.mxu1 }
 0x34a   : > { %v8594_v56 = vpop.f32.mrf.mxu1 }
 0x34c   : > { %v8596_v26 = vpop.f32.mrf.mxu1 }
 0x34e   : > { %v8603_v2 = vpop.f32.mrf.mxu1 }
 0x350   : > { %v8607_v61 = vpop.f32.mrf.mxu1 }
 0x352   : > { %v8617_v19 = vpop.f32.mrf.mxu1 }
 0x354   : > { %v8623_v62 = vpop.f32.mrf.mxu1 }
 0x356   : > { %v8629_v29 = vpop.f32.mrf.mxu1 }
 0x3b8   : > { %v5997_v36 = vpop.f32.mrf.mxu0 }
 0x3b9   : > { %v4157_v44 = vadd.f32 %v5997_v36, %v5941_v33 }
 0x3ba   : > { %v4151_v6 = vpop.f32.mrf.mxu0 }
 0x3bb   : > { %v4318_v41 = vadd.f32 %v8601_v28, %v4157_v44  ;;  %v4152_v46 = vadd.f32 %v4151_v6, %v3830_v24  ;;  %v8635_v24 = vpop.f32.mrf.mxu1 }
 0x3bc   : > { %v6000_v48 = vpop.f32.mrf.mxu0 }
 0x3bd   : > { %v4350_v40 = vmax.f32 %v4318_v41, 0.0  ;;  %v4317_v11 = vadd.f32 %v8601_v28, %v4152_v46  ;;  %v4167_v52 = vadd.f32 %v6000_v48, %v5944_v32 }
 0x3be   : > { %v4161_v22 = vpop.f32.mrf.mxu0 }
 0x3bf   : > { %4382 = vst [vmem:[%s8611_s21 + $0x8] sm:$0xff] %v4350_v40  ;;  %v4349_v10 = vmax.f32 %v4317_v11, 0.0  ;;  %v4320_v7 = vadd.f32 %v8601_v28, %v4167_v52  ;;  %v4162_v17 = vadd.f32 %v4161_v22, %v3840_v42 }
 0x3c0   : > { %v6003_v21 = vpop.f32.mrf.mxu0 }
 0x3c1   : > { %4381 = vst [vmem:[%s8611_s21] sm:$0xff] %v4349_v10  ;;  %v4352_v0 = vmax.f32 %v4320_v7, 0.0  ;;  %v4319_v47 = vadd.f32 %v8601_v28, %v4162_v17  ;;  %v4177_v20 = vadd.f32 %v6003_v21, %v5947_v18 }
 0x3c2   : > { %v4171_v31 = vpop.f32.mrf.mxu0 }
 0x3c3   : > { %4384 = vst [vmem:[%s8611_s21 + $0x18] sm:$0xff] %v4352_v0  ;;  %v4351_v34 = vmax.f32 %v4319_v47, 0.0  ;;  %v4322_v9 = vadd.f32 %v8601_v28, %v4177_v20  ;;  %v4172_v27 = vadd.f32 %v4171_v31, %v3850_v60 }
 0x3c4   : > { %v6006_v57 = vpop.f32.mrf.mxu0 }
 0x3c5   : > { %4383 = vst [vmem:[%s8611_s21 + $0x10] sm:$0xff] %v4351_v34  ;;  %v4354_v55 = vmax.f32 %v4322_v9, 0.0  ;;  %v4321_v37 = vadd.f32 %v8601_v28, %v4172_v27  ;;  %v4187_v13 = vadd.f32 %v6006_v57, %v5950_v23 }
 0x3c6   : > { %v4181_v15 = vpop.f32.mrf.mxu0 }
 0x3c7   : > { %4386 = vst [vmem:[%s8611_s21 + $0x28] sm:$0xff] %v4354_v55  ;;  %v4353_v5 = vmax.f32 %v4321_v37, 0.0  ;;  %v4324_v8 = vadd.f32 %v8601_v28, %v4187_v13  ;;  %v4182_v25 = vadd.f32 %v4181_v15, %v3860_v4 }
 0x3c8   : > { %v6009_v38 = vpop.f32.mrf.mxu0 }
 0x3c9   : > { %4385 = vst [vmem:[%s8611_s21 + $0x20] sm:$0xff] %v4353_v5  ;;  %v4356_v49 = vmax.f32 %v4324_v8, 0.0  ;;  %v4323_v14 = vadd.f32 %v8601_v28, %v4182_v25  ;;  %v4197_v43 = vadd.f32 %v6009_v38, %v5953_v16 }
 0x3ca   : > { %v4191_v51 = vpop.f32.mrf.mxu0 }
 0x3cb   : > { %4388 = vst [vmem:[%s8611_s21 + $0x38] sm:$0xff] %v4356_v49  ;;  %v4355_v50 = vmax.f32 %v4323_v14, 0.0  ;;  %v4326_v45 = vadd.f32 %v8601_v28, %v4197_v43  ;;  %v4192_v1 = vadd.f32 %v4191_v51, %v3870_v54 }
 0x3cc   : > { %v6012_v58 = vpop.f32.mrf.mxu0 }
 0x3cd   : > { %4387 = vst [vmem:[%s8611_s21 + $0x30] sm:$0xff] %v4355_v50  ;;  %v4358_v30 = vmax.f32 %v4326_v45, 0.0  ;;  %v4325_v12 = vadd.f32 %v8601_v28, %v4192_v1  ;;  %v4207_v39 = vadd.f32 %v6012_v58, %v5956_v35  ;;  %v3940_v35 = vpop.f32.mrf.mxu1 }
 0x3ce   : > { %v4201_v33 = vpop.f32.mrf.mxu0 }
 0x3cf   : > { %4390 = vst [vmem:[%s8611_s21 + $0x48] sm:$0xff] %v4358_v30  ;;  %v4357_v32 = vmax.f32 %v4325_v12, 0.0  ;;  %v4328_v42 = vadd.f32 %v8601_v28, %v4207_v39  ;;  %v4202_v18 = vadd.f32 %v4201_v33, %v8586_v59  ;;  %v5977_v11 = vpop.f32.mrf.mxu1 }
 0x3d0   : > { %v6015_v60 = vpop.f32.mrf.mxu0 }
 0x3d1   : > { %4389 = vst [vmem:[%s8611_s21 + $0x40] sm:$0xff] %v4357_v32  ;;  %v4360_v23 = vmax.f32 %v4328_v42, 0.0  ;;  %v4327_v4 = vadd.f32 %v8601_v28, %v4202_v18  ;;  %v4217_v16 = vadd.f32 %v6015_v60, %v8588_v53  ;;  %v3950_v0 = vpop.f32.mrf.mxu1 }
 0x3d2   : > { %v4211_v54 = vpop.f32.mrf.mxu0 }
 0x3d3   : > { %4392 = vst [vmem:[%s8611_s21 + $0x58] sm:$0xff] %v4360_v23  ;;  %v4359_v36 = vmax.f32 %v4327_v4, 0.0  ;;  %v4330_v44 = vadd.f32 %v8601_v28, %v4217_v16  ;;  %v4212_v6 = vadd.f32 %v4211_v54, %v8590_v63  ;;  %v5980_v57 = vpop.f32.mrf.mxu1 }
 0x3d4   : > { %v6018_v41 = vpop.f32.mrf.mxu0 }
 0x3d5   : > { %4391 = vst [vmem:[%s8611_s21 + $0x50] sm:$0xff] %v4359_v36  ;;  %v4362_v59 = vmax.f32 %v4330_v44, 0.0  ;;  %v4329_v46 = vadd.f32 %v8601_v28, %v4212_v6  ;;  %v4227_v48 = vadd.f32 %v6018_v41, %v8592_v3  ;;  %v3960_v25 = vpop.f32.mrf.mxu1 }
 0x3d6   : > { %v4221_v40 = vpop.f32.mrf.mxu0 }
 0x3d7   : > { %4394 = vst [vmem:[%s8611_s21 + $0x68] sm:$0xff] %v4362_v59  ;;  %v4361_v53 = vmax.f32 %v4329_v46, 0.0  ;;  %v4332_v52 = vadd.f32 %v8601_v28, %v4227_v48  ;;  %v4222_v22 = vadd.f32 %v4221_v40, %v8594_v56  ;;  %v5983_v45 = vpop.f32.mrf.mxu1 }
 0x3d8   : > { %v6021_v10 = vpop.f32.mrf.mxu0 }
 0x3d9   : > { %4393 = vst [vmem:[%s8611_s21 + $0x60] sm:$0xff] %v4361_v53  ;;  %v4364_v63 = vmax.f32 %v4332_v52, 0.0  ;;  %v4331_v7 = vadd.f32 %v8601_v28, %v4222_v22  ;;  %v4237_v17 = vadd.f32 %v6021_v10, %v8596_v26  ;;  %v3970_v32 = vpop.f32.mrf.mxu1 }
 0x3da   : > { %v4231_v21 = vpop.f32.mrf.mxu0 }
 0x3db   : > { %4396 = vst [vmem:[%s8611_s21 + $0x78] sm:$0xff] %v4364_v63  ;;  %v4363_v3 = vmax.f32 %v4331_v7, 0.0  ;;  %v4334_v47 = vadd.f32 %v8601_v28, %v4237_v17  ;;  %v4232_v20 = vadd.f32 %v4231_v21, %v8603_v2  ;;  %v5986_v54 = vpop.f32.mrf.mxu1 }
 0x3dc   : > { %v6024_v31 = vpop.f32.mrf.mxu0 }
 0x3dd   : > { %4395 = vst [vmem:[%s8611_s21 + $0x70] sm:$0xff] %v4363_v3  ;;  %v4366_v56 = vmax.f32 %v4334_v47, 0.0  ;;  %v4333_v34 = vadd.f32 %v8601_v28, %v4232_v20  ;;  %v4247_v9 = vadd.f32 %v6024_v31, %v8607_v61  ;;  %v3980_v40 = vpop.f32.mrf.mxu1 }
 0x3de   : > { %v4241_v27 = vpop.f32.mrf.mxu0 }
 0x3df   : > { %4398 = vst [vmem:[%s8611_s21 + $0x88] sm:$0xff] %v4366_v56  ;;  %v4365_v26 = vmax.f32 %v4333_v34, 0.0  ;;  %v4336_v55 = vadd.f32 %v8601_v28, %v4247_v9  ;;  %v4242_v37 = vadd.f32 %v4241_v27, %v8617_v19 }
 0x3e0   : > { %v6027_v13 = vpop.f32.mrf.mxu0 }
 0x3e1   : > { %4397 = vst [vmem:[%s8611_s21 + $0x80] sm:$0xff] %v4365_v26  ;;  %v4368_v2 = vmax.f32 %v4336_v55, 0.0  ;;  %v4335_v15 = vadd.f32 %v8601_v28, %v4242_v37  ;;  %v4257_v5 = vadd.f32 %v6027_v13, %v8623_v62 }
 0x3e2   : > { %v4251_v8 = vpop.f32.mrf.mxu0 }
 0x3e3   : > { %4400 = vst [vmem:[%s8611_s21 + $0x98] sm:$0xff] %v4368_v2  ;;  %v4367_v61 = vmax.f32 %v4335_v15, 0.0  ;;  %v4338_v38 = vadd.f32 %v8601_v28, %v4257_v5  ;;  %v4252_v49 = vadd.f32 %v4251_v8, %v8629_v29 }
 0x3e4   : > { %v6030_v14 = vpop.f32.mrf.mxu0 }
 0x3e5   : > { %4399 = vst [vmem:[%s8611_s21 + $0x90] sm:$0xff] %v4367_v61  ;;  %v4370_v19 = vmax.f32 %v4338_v38, 0.0  ;;  %v4337_v43 = vadd.f32 %v8601_v28, %v4252_v49  ;;  %v4267_v51 = vadd.f32 %v6030_v14, %v8635_v24 }
 0x3e6   : > { %v4261_v50 = vpop.f32.mrf.mxu0 }
 0x3e7   : > { %4402 = vst [vmem:[%s8611_s21 + $0xa8] sm:$0xff] %v4370_v19  ;;  %v4369_v62 = vmax.f32 %v4337_v43, 0.0  ;;  %v4340_v1 = vadd.f32 %v8601_v28, %v4267_v51  ;;  %v4262_v58 = vadd.f32 %v4261_v50, %v3940_v35 }
 0x3e8   : > { %v6033_v30 = vpop.f32.mrf.mxu0 }
 0x3e9   : > { %4401 = vst [vmem:[%s8611_s21 + $0xa0] sm:$0xff] %v4369_v62  ;;  %v4372_v12 = vmax.f32 %v4340_v1, 0.0  ;;  %v4339_v29 = vadd.f32 %v8601_v28, %v4262_v58  ;;  %v4277_v39 = vadd.f32 %v6033_v30, %v5977_v11 }
 0x3ea   : > { %v4271_v33 = vpop.f32.mrf.mxu0 }
 0x3eb   : > { %4404 = vst [vmem:[%s8611_s21 + $0xb8] sm:$0xff] %v4372_v12  ;;  %v4371_v24 = vmax.f32 %v4339_v29, 0.0  ;;  %v4342_v42 = vadd.f32 %v8601_v28, %v4277_v39  ;;  %v4272_v18 = vadd.f32 %v4271_v33, %v3950_v0 }
 0x3ec   : > { %v6036_v60 = vpop.f32.mrf.mxu0 }
 0x3ed   : > { %4403 = vst [vmem:[%s8611_s21 + $0xb0] sm:$0xff] %v4371_v24  ;;  %v4374_v23 = vmax.f32 %v4342_v42, 0.0  ;;  %v4341_v4 = vadd.f32 %v8601_v28, %v4272_v18  ;;  %v4287_v16 = vadd.f32 %v6036_v60, %v5980_v57 }
 0x3ee   : > { %v4281_v35 = vpop.f32.mrf.mxu0 }
 0x3ef   : > { %4406 = vst [vmem:[%s8611_s21 + $0xc8] sm:$0xff] %v4374_v23  ;;  %v4373_v36 = vmax.f32 %v4341_v4, 0.0  ;;  %v4344_v44 = vadd.f32 %v8601_v28, %v4287_v16  ;;  %v4282_v6 = vadd.f32 %v4281_v35, %v3960_v25 }
 0x3f0   : > { %v6039_v41 = vpop.f32.mrf.mxu0 }
 0x3f1   : > { %4405 = vst [vmem:[%s8611_s21 + $0xc0] sm:$0xff] %v4373_v36  ;;  %v4376_v59 = vmax.f32 %v4344_v44, 0.0  ;;  %v4343_v46 = vadd.f32 %v8601_v28, %v4282_v6  ;;  %v4297_v48 = vadd.f32 %v6039_v41, %v5983_v45 }
 0x3f2   : > { %v4291_v11 = vpop.f32.mrf.mxu0 }
 0x3f3   : > { %4408 = vst [vmem:[%s8611_s21 + $0xd8] sm:$0xff] %v4376_v59  ;;  %v4375_v53 = vmax.f32 %v4343_v46, 0.0  ;;  %v4346_v52 = vadd.f32 %v8601_v28, %v4297_v48  ;;  %v4292_v22 = vadd.f32 %v4291_v11, %v3970_v32 }
 0x3f4   : > { %v6042_v10 = vpop.f32.mrf.mxu1 }
 0x3f5   : > { %4407 = vst [vmem:[%s8611_s21 + $0xd0] sm:$0xff] %v4375_v53  ;;  %v4378_v63 = vmax.f32 %v4346_v52, 0.0  ;;  %v4345_v7 = vadd.f32 %v8601_v28, %v4292_v22  ;;  %v4307_v17 = vadd.f32 %v6042_v10, %v5986_v54 }
 0x3f6   : > { %v4301_v21 = vpop.f32.mrf.mxu1 }
 0x3f7   : > { %4410 = vst [vmem:[%s8611_s21 + $0xe8] sm:$0xff] %v4378_v63  ;;  %v4377_v0 = vmax.f32 %v4345_v7, 0.0  ;;  %v4348_v3 = vadd.f32 %v8601_v28, %v4307_v17  ;;  %v4302_v47 = vadd.f32 %v4301_v21, %v3980_v40 }
 0x3f9   : > { %4409 = vst [vmem:[%s8611_s21 + $0xe0] sm:$0xff] %v4377_v0  ;;  %v4380_v20 = vmax.f32 %v4348_v3, 0.0  ;;  %v4347_v31 = vadd.f32 %v8601_v28, %v4302_v47 }
 0x3fb   : > { %4412 = vst [vmem:[%s8611_s21 + $0xf8] sm:$0xff] %v4380_v20  ;;  %v4379_v56 = vmax.f32 %v4347_v31, 0.0 }
 0x3fd   : > { %4411 = vst [vmem:[%s8611_s21 + $0xf0] sm:$0xff] %v4379_v56 }
 0x3fe   : > { %6240 = shalt.err (!%p6237_p0)
}
 0x3ff   : > { %s6241_s19 = scalar_lea.hbm %s8698_s23, 4096  ;;  %s6245_s17 = scalar_lea.hbm %s8753_s8, 8192 }
 0x400   : > { %p6242_p5 = scmp.ne.s32.totalorder %s8698_s23, %s6241_s19  ;;  %p6246_p4 = scmp.lt.s32.totalorder %s8698_s23, %s8753_s8 }
 0x401   : > { %p6247_p6 = scmp.lt.s32.totalorder %s6245_s17, %s6241_s19 }
 0x402   : > { %p6243_p2 = pnand %p6242_p5, %p8993_p11 }
 0x403   : > { %p6248_p8 = por %p6247_p6, %p6246_p4 }
 0x404   : > { %p6244_p1 = pneg %p6243_p2 }
 0x406   : > { %p6249_p3 = pnand %p6248_p8, %p6244_p1 }
 0x408   : > { %6252 = shalt.err (!%p6249_p3)
}
 0x409   : > { %s6303_s16 = smov 128   ;;  %s6304_s13 = smov 8  }
 0x40a   : > { %6057 = dma.vmem_to_hbm [thread:$0]  (%p8993_p11), %s8700_s14, 4096, %s8698_s23, %s4414_s18, %s6303_s16, %s6303_s16, %s6304_s13  }
 0x40b PF: > { %s4442_s9 = sand.u32 1, %s6283_s27   ;;  %p8994_p7 = scmp.ne.s32.totalorder %s8786_s12, 0 }
 0x40c   : > { %p8995_p9 = scmp.ge.s32.totalorder %s6295_s30, 2  ;;  %s4443_s24 = scalar_lea.sflag [#allocation5], %s4442_s9 }
 0x40e   : > { %p6068_p10 = pnand %p8995_p9, %p8994_p7 }
 0x410   : > { %p6069_p12 = pneg %p6068_p10 }
 0x412   : > { %6278 = dma.done.wait (%p6069_p12), %s4443_s24, 4096  }
 0x413   : > { %6280 = vsyncadd (%p6069_p12), %s4443_s24, 4294963200  ;;  %s8996_s30 = sld [smem:[#allocation12_spill]]  ;;  %s8997_s27 = smov %s6287_s28 }
 0x414   : > { %s8998_s28 = smov %s6291_s29  ;;  %s8999_s29 = smov %s6424_s25 }
 0x419   : > { %p22_p13 = scmp.ge.s32.totalorder %s8996_s30, 4  }
 0x41b   :  { %24 = sbr.rel (!%p22_p13) target bundleno = 8 (0x8), region = 110 }
 0x420   :  { %4448 = vsyncpa [#allocation4], 1 }
 0x421   :  { %4450 = vsyncpa [#allocation4 + $0x1], 1 }
 0x422   :  { %4451 = vsyncpa [#allocation7], 1 }
 0x423   :  { %4452 = vsyncpa [#allocation5], 1 }
 0x424   :  { %4454 = vsyncpa [#allocation5 + $0x1], 1 }

</bundles_post_ra>
